<compile_context>
chip_gen: v7x
topology: tpu7x:2x2x1
jax: 0.10.0
libtpu: 0.0.40
codegen_flags: <defaults>
</compile_context>

<pallas_src>
import functools

import jax
import jax.numpy as jnp
from jax import lax
from jax.experimental import pallas as pl
from jax.experimental.pallas import tpu as pltpu

LANE = 128


def br_kernel(xmain_ref, xtail_ref, w1_ref, b1_ref, w2_ref, b2_ref, out_ref,
              mid_ref, patch_ref, *, n_zero_bottom):
    """One (image, H-tile) grid step.

    xmain_ref : (tH,   W+2, Cp) f32   padded-input rows [t*tH, t*tH + tH)
    xtail_ref : (4,    W+2, Cp) f32   padded-input rows [t*tH + tH, t*tH + tH + 4)
    w*_ref    : (9*Cp, Cp)     bf16   fused weight slab, row = (ky*3+kx)*Cp + cin
    b*_ref    : (1, Cp)        f32
    out_ref   : (tH, W, Cp)    f32
    mid_ref   : (tH+2, W+2, Cp)   bf16 scratch: zero-padded relu(conv1), +/-1 row halo
    patch_ref : ((tH+2)*W, 9*Cp)  bf16 scratch: im2col patch (reused by both convs)
    """
    tH, W, Cp = out_ref.shape
    R = tH + 2                               # conv1 output rows (with +/-1 halo)
    t = pl.program_id(1)

    # ---- conv1: im2col straight from the two input views (no tile assembly) ----
    for ky in range(3):
        n_main = tH - ky                     # tap rows supplied by the main view
        n_tail = ky + 2                      # tap rows supplied by the 4-row halo
        for kx in range(3):
            tap = ky * 3 + kx
            patch_ref[0:n_main * W, tap * Cp:(tap + 1) * Cp] = (
                xmain_ref[ky:tH, kx:kx + W, :]
                .reshape(n_main * W, Cp).astype(jnp.bfloat16))
            patch_ref[n_main * W:R * W, tap * Cp:(tap + 1) * Cp] = (
                xtail_ref[0:n_tail, kx:kx + W, :]
                .reshape(n_tail * W, Cp).astype(jnp.bfloat16))

    # ONE fused MXU matmul, K = 9*Cp, bf16 operands, f32 accumulation.
    h1 = jnp.dot(patch_ref[...], w1_ref[...], preferred_element_type=jnp.float32)
    h1 = jnp.maximum(h1 + b1_ref[...], 0.0)          # bias + ReLU in f32
    h1 = h1.reshape(R, W, Cp)

    # mid = zero-padded relu(conv1): interior from h1, 1-px W border zeroed.
    mid_ref[:, 0:1, :] = jnp.zeros((R, 1, Cp), jnp.bfloat16)
    mid_ref[:, W + 1:W + 2, :] = jnp.zeros((R, 1, Cp), jnp.bfloat16)
    mid_ref[:, 1:W + 1, :] = h1.astype(jnp.bfloat16)

    # Rows of relu(conv1) that fall outside the true image are conv2's zero
    # padding; only the first / last H-tile ever has such rows.
    @pl.when(t == 0)
    def _():
        mid_ref[0:1, :, :] = jnp.zeros((1, W + 2, Cp), jnp.bfloat16)

    @pl.when(t == pl.num_programs(1) - 1)
    def _():
        mid_ref[R - n_zero_bottom:R, :, :] = jnp.zeros(
            (n_zero_bottom, W + 2, Cp), jnp.bfloat16)

    # ---- conv2 over the tH output rows: same fused K = 9*Cp matmul ----
    M2 = tH * W
    for ky in range(3):
        for kx in range(3):
            tap = ky * 3 + kx
            patch_ref[0:M2, tap * Cp:(tap + 1) * Cp] = (
                mid_ref[ky:ky + tH, kx:kx + W, :].reshape(M2, Cp))

    h2 = jnp.dot(patch_ref[0:M2, :], w2_ref[...],
                 preferred_element_type=jnp.float32)
    h2 = (h2 + b2_ref[...]).reshape(tH, W, Cp)

    # ---- residual add (f32); residual rows split across the main / halo views ----
    out_ref[0:tH - 2, :, :] = (
        xmain_ref[2:tH, 1:W + 1, :] + h2[0:tH - 2]).astype(out_ref.dtype)
    out_ref[tH - 2:tH, :, :] = (
        xtail_ref[0:2, 1:W + 1, :] + h2[tH - 2:tH]).astype(out_ref.dtype)


def _vmem_limit_bytes():
    """~0.65x physical VMEM: ~41 MiB on v7x (64 MiB/TC), ~83 MiB on v5e/v6e."""
    cap = 64 * 1024 * 1024                       # conservative (v7x-sized) fallback
    try:
        info = pltpu.get_tpu_info()
        cap = int(getattr(info, "vmem_capacity_bytes", cap) or cap)
    except Exception:
        pass
    return int(cap * 0.65)


def _pick_tile_h(H, W, Cp, N, budget_bytes):
    """Largest H-tile (multiple of 4) whose per-step VMEM footprint fits."""
    f32, bf16 = 4, 2

    def footprint(tH):
        R = tH + 2
        return (R * (W + 2) * Cp * bf16            # mid scratch (bf16)
                + R * W * 9 * Cp * bf16            # im2col patch scratch (bf16)
                + 2 * tH * (W + 2) * Cp * f32      # double-buffered main input blocks
                + 2 * 4 * (W + 2) * Cp * f32       # double-buffered halo blocks
                + 2 * tH * W * Cp * f32            # double-buffered output blocks
                + 2 * 2 * 9 * Cp * Cp * bf16       # double-buffered weight slabs
                + 3 * R * W * Cp * f32)            # matmul result / h1 / h2 temps

    h_cap = -(-H // 4) * 4
    best, cand = 4, 8
    while cand <= h_cap and footprint(cand) <= budget_bytes:
        best = cand
        cand += 4
    # Keep >= 2 grid steps when N == 1 so a 2-TC chip (v7x) can split the work.
    if N == 1 and H > 4:
        half = -(-((H + 1) // 2) // 4) * 4
        best = min(best, max(4, half))
    return best


@functools.partial(jax.jit, static_argnames=("tile_h",))
def br_forward(x_nchw, w1_oihw, b1, w2_oihw, b2, *, tile_h=None):
    """x_nchw: (N, C, H, W) float32. Returns (N, C, H, W). Matches torch BR.forward."""
    N, C, H, W = x_nchw.shape
    Cp = -(-C // LANE) * LANE                    # lane-pad channels to a 128 multiple

    vmem_limit = _vmem_limit_bytes()
    tH = tile_h if tile_h is not None else _pick_tile_h(
        H, W, Cp, N, int(vmem_limit * 0.85))
    assert tH >= 4 and tH % 4 == 0
    Hp = -(-H // tH) * tH                        # H rounded up to a tile multiple
    nT = Hp // tH
    nzero = Hp + 1 - H                           # conv1 rows past the true image
                                                 # (only ever on the last H-tile)

    # TODO(synk): accept/return NHWC when the surrounding model allows it; the
    # NCHW<->NHWC transposes and the pad/crop below are extra HBM passes.
    # NCHW -> NHWC (channels on the lane dim); zero-pad 2 rows top,
    # (Hp-H)+2 rows bottom (H-tiling halo), 1 col left/right, channels to Cp.
    x = jnp.transpose(x_nchw, (0, 2, 3, 1)).astype(jnp.float32)
    xp = jnp.pad(x, ((0, 0), (2, Hp - H + 2), (1, 1), (0, Cp - C)))

    # OIHW -> channel-pad -> (ky, kx, Cin, Cout) -> single (9*Cp, Cp) bf16 slab.
    def slab(w):
        wp = jnp.pad(w.astype(jnp.float32),
                     ((0, Cp - C), (0, Cp - C), (0, 0), (0, 0)))
        return jnp.transpose(wp, (2, 3, 1, 0)).reshape(9 * Cp, Cp).astype(jnp.bfloat16)

    w1s, w2s = slab(w1_oihw), slab(w2_oihw)
    b1r = jnp.pad(b1.astype(jnp.float32), (0, Cp - C)).reshape(1, Cp)
    b2r = jnp.pad(b2.astype(jnp.float32), (0, Cp - C)).reshape(1, Cp)

    macs = N * nT * (2 * tH + 2) * W * 9 * Cp * Cp
    cost = pl.CostEstimate(
        flops=2 * macs,
        transcendentals=0,
        bytes_accessed=4 * N * ((Hp + 4) * (W + 2) * Cp        # padded input read
                                + nT * 4 * (W + 2) * Cp        # halo re-reads
                                + Hp * W * Cp)                 # output write
                       + 2 * 2 * 9 * Cp * Cp + 4 * 2 * Cp)     # bf16 weights + bias

    kernel = functools.partial(br_kernel, n_zero_bottom=nzero)

    out_nhwc = pl.pallas_call(
        kernel,
        out_shape=jax.ShapeDtypeStruct((N, Hp, W, Cp), jnp.float32),
        grid_spec=pltpu.PrefetchScalarGridSpec(
            num_scalar_prefetch=0,
            grid=(N, nT),
            in_specs=[
                # main rows of the padded input: [t*tH, t*tH + tH)
                pl.BlockSpec((None, tH, W + 2, Cp), lambda n, t: (n, t, 0, 0)),
                # 4 halo rows: [t*tH + tH, t*tH + tH + 4)  (same array, shifted view)
                pl.BlockSpec((None, 4, W + 2, Cp),
                             lambda n, t: (n, (t + 1) * (tH // 4), 0, 0)),
                pl.BlockSpec((9 * Cp, Cp), lambda n, t: (0, 0)),
                pl.BlockSpec((1, Cp), lambda n, t: (0, 0)),
                pl.BlockSpec((9 * Cp, Cp), lambda n, t: (0, 0)),
                pl.BlockSpec((1, Cp), lambda n, t: (0, 0)),
            ],
            out_specs=pl.BlockSpec((None, tH, W, Cp), lambda n, t: (n, t, 0, 0)),
            scratch_shapes=[
                pltpu.VMEM((tH + 2, W + 2, Cp), jnp.bfloat16),      # padded relu(conv1)
                pltpu.VMEM(((tH + 2) * W, 9 * Cp), jnp.bfloat16),   # im2col patch
            ],
        ),
        compiler_params=pltpu.CompilerParams(
            dimension_semantics=("parallel", "parallel"),
            vmem_limit_bytes=vmem_limit),
        cost_estimate=cost,
    )(xp, xp, w1s, b1r, w2s, b2r)

    # crop the H rounding rows + channel padding, NHWC -> NCHW
    return jnp.transpose(out_nhwc[:, :H, :, :C], (0, 3, 1, 2)).astype(x_nchw.dtype)


def _reference(x_nchw, w1, b1, w2, b2):
    """Pure-JAX f32 reference (cross-correlation, same as torch Conv2d)."""
    dn = lax.conv_dimension_numbers(x_nchw.shape, w1.shape,
                                    ("NCHW", "OIHW", "NCHW"))
    r = lax.conv_general_dilated(x_nchw, w1, (1, 1), [(1, 1), (1, 1)],
                                 dimension_numbers=dn)
    r = jnp.maximum(r + b1[None, :, None, None], 0.0)
    r = lax.conv_general_dilated(r, w2, (1, 1), [(1, 1), (1, 1)],
                                 dimension_numbers=dn)
    return x_nchw + r + b2[None, :, None, None]


if __name__ == "__main__":
    N, C, H, W = 2, 4, 16, 16
    key = jax.random.PRNGKey(0)
    kx_, kw1, kb1, kw2, kb2 = jax.random.split(key, 5)

    x = jax.random.normal(kx_, (N, C, H, W), dtype=jnp.float32)

    # Deterministic conv parameter init (~kaiming-uniform scale, fan_in = C*9)
    fan_in = C * 3 * 3
    bound = 1.0 / float(fan_in) ** 0.5
    w1 = jax.random.uniform(kw1, (C, C, 3, 3), jnp.float32, -bound, bound)
    b1 = jax.random.uniform(kb1, (C,), jnp.float32, -bound, bound)
    w2 = jax.random.uniform(kw2, (C, C, 3, 3), jnp.float32, -bound, bound)
    b2 = jax.random.uniform(kb2, (C,), jnp.float32, -bound, bound)

    # tile_h=8 -> two H-tiles per image, exercising the halo / tiling path.
    out = jax.block_until_ready(br_forward(x, w1, b1, w2, b2, tile_h=8))
    ref = jax.block_until_ready(_reference(x, w1, b1, w2, b2))

    assert out.shape == (N, C, H, W)
    # bf16 MXU operands -> relaxed tolerance vs the f32 reference.
    max_err = float(jnp.max(jnp.abs(out - ref)))
    assert jnp.allclose(out, ref, atol=3e-2, rtol=3e-2), max_err

    print("KERNEL_OK")
</pallas_src>

<mosaic_0001>
module attributes {stable_mosaic.version = 11 : i64} {
  func.func @br_kernel(%arg0: i32, %arg1: i32, %arg2: memref<1x8x18x128xf32, #tpu.memory_space<vmem>>, %arg3: memref<1x4x18x128xf32, #tpu.memory_space<vmem>>, %arg4: memref<1152x128xbf16, #tpu.memory_space<vmem>>, %arg5: memref<1x128xf32, #tpu.memory_space<vmem>>, %arg6: memref<1152x128xbf16, #tpu.memory_space<vmem>>, %arg7: memref<1x128xf32, #tpu.memory_space<vmem>>, %arg8: memref<1x8x16x128xf32, #tpu.memory_space<vmem>>, %arg9: memref<10x18x128xbf16, #tpu.memory_space<vmem>>, %arg10: memref<160x1152xbf16, #tpu.memory_space<vmem>>) attributes {dimension_semantics = [#tpu.dimension_semantics<parallel>, #tpu.dimension_semantics<parallel>], iteration_bounds = array<i64: 2, 2>, scalar_prefetch = 0 : i64, scratch_operands = 2 : i64, tpu.core_type = #tpu.core_type<tc>, window_params = [{transform_indices = @transform_0, window_bounds = array<i64: 1, 8, 18, 128>}, {transform_indices = @transform_1, window_bounds = array<i64: 1, 4, 18, 128>}, {pipeline_mode = #tpu.pipeline_mode<synchronous>, transform_indices = @transform_2, window_bounds = array<i64: 1152, 128>}, {pipeline_mode = #tpu.pipeline_mode<synchronous>, transform_indices = @transform_3, window_bounds = array<i64: 1, 128>}, {pipeline_mode = #tpu.pipeline_mode<synchronous>, transform_indices = @transform_4, window_bounds = array<i64: 1152, 128>}, {pipeline_mode = #tpu.pipeline_mode<synchronous>, transform_indices = @transform_5, window_bounds = array<i64: 1, 128>}, {transform_indices = @transform_6, window_bounds = array<i64: 1, 8, 16, 128>}]} {
    %c0 = arith.constant 0 : index
    %c0_0 = arith.constant 0 : index
    %c0_1 = arith.constant 0 : index
    %c0_2 = arith.constant 0 : index
    %0 = vector.load %arg2[%c0, %c0_0, %c0_1, %c0_2] : memref<1x8x18x128xf32, #tpu.memory_space<vmem>>, vector<1x8x16x128xf32>
    %1 = vector.shape_cast %0 : vector<1x8x16x128xf32> to vector<8x16x128xf32>
    %2 = vector.shape_cast %1 : vector<8x16x128xf32> to vector<128x128xf32>
    %3 = arith.truncf %2 : vector<128x128xf32> to vector<128x128xbf16>
    %c0_3 = arith.constant 0 : index
    %c0_4 = arith.constant 0 : index
    %4 = vector.load %arg10[%c0_3, %c0_4] : memref<160x1152xbf16, #tpu.memory_space<vmem>>, vector<128x128xbf16>
    tpu.vector_store %arg10[%c0_3, %c0_4], %3 {strides = array<i32>} : memref<160x1152xbf16, #tpu.memory_space<vmem>>, vector<128x128xbf16>,
    %c0_5 = arith.constant 0 : index
    %c0_6 = arith.constant 0 : index
    %c0_7 = arith.constant 0 : index
    %c0_8 = arith.constant 0 : index
    %5 = vector.load %arg3[%c0_5, %c0_6, %c0_7, %c0_8] : memref<1x4x18x128xf32, #tpu.memory_space<vmem>>, vector<1x2x16x128xf32>
    %6 = vector.shape_cast %5 : vector<1x2x16x128xf32> to vector<2x16x128xf32>
    %7 = vector.shape_cast %6 : vector<2x16x128xf32> to vector<32x128xf32>
    %8 = arith.truncf %7 : vector<32x128xf32> to vector<32x128xbf16>
    %c128 = arith.constant 128 : index
    %c0_9 = arith.constant 0 : index
    %9 = vector.load %arg10[%c128, %c0_9] : memref<160x1152xbf16, #tpu.memory_space<vmem>>, vector<32x128xbf16>
    tpu.vector_store %arg10[%c128, %c0_9], %8 {strides = array<i32>} : memref<160x1152xbf16, #tpu.memory_space<vmem>>, vector<32x128xbf16>,
    %c0_10 = arith.constant 0 : index
    %c0_11 = arith.constant 0 : index
    %c1 = arith.constant 1 : index
    %c0_12 = arith.constant 0 : index
    %10 = vector.load %arg2[%c0_10, %c0_11, %c1, %c0_12] : memref<1x8x18x128xf32, #tpu.memory_space<vmem>>, vector<1x8x16x128xf32>
    %11 = vector.shape_cast %10 : vector<1x8x16x128xf32> to vector<8x16x128xf32>
    %12 = vector.shape_cast %11 : vector<8x16x128xf32> to vector<128x128xf32>
    %13 = arith.truncf %12 : vector<128x128xf32> to vector<128x128xbf16>
    %c0_13 = arith.constant 0 : index
    %c128_14 = arith.constant 128 : index
    %14 = vector.load %arg10[%c0_13, %c128_14] : memref<160x1152xbf16, #tpu.memory_space<vmem>>, vector<128x128xbf16>
    tpu.vector_store %arg10[%c0_13, %c128_14], %13 {strides = array<i32>} : memref<160x1152xbf16, #tpu.memory_space<vmem>>, vector<128x128xbf16>,
    %c0_15 = arith.constant 0 : index
    %c0_16 = arith.constant 0 : index
    %c1_17 = arith.constant 1 : index
    %c0_18 = arith.constant 0 : index
    %15 = vector.load %arg3[%c0_15, %c0_16, %c1_17, %c0_18] : memref<1x4x18x128xf32, #tpu.memory_space<vmem>>, vector<1x2x16x128xf32>
    %16 = vector.shape_cast %15 : vector<1x2x16x128xf32> to vector<2x16x128xf32>
    %17 = vector.shape_cast %16 : vector<2x16x128xf32> to vector<32x128xf32>
    %18 = arith.truncf %17 : vector<32x128xf32> to vector<32x128xbf16>
    %c128_19 = arith.constant 128 : index
    %c128_20 = arith.constant 128 : index
    %19 = vector.load %arg10[%c128_19, %c128_20] : memref<160x1152xbf16, #tpu.memory_space<vmem>>, vector<32x128xbf16>
    tpu.vector_store %arg10[%c128_19, %c128_20], %18 {strides = array<i32>} : memref<160x1152xbf16, #tpu.memory_space<vmem>>, vector<32x128xbf16>,
    %c0_21 = arith.constant 0 : index
    %c0_22 = arith.constant 0 : index
    %c2 = arith.constant 2 : index
    %c0_23 = arith.constant 0 : index
    %20 = vector.load %arg2[%c0_21, %c0_22, %c2, %c0_23] : memref<1x8x18x128xf32, #tpu.memory_space<vmem>>, vector<1x8x16x128xf32>
    %21 = vector.shape_cast %20 : vector<1x8x16x128xf32> to vector<8x16x128xf32>
    %22 = vector.shape_cast %21 : vector<8x16x128xf32> to vector<128x128xf32>
    %23 = arith.truncf %22 : vector<128x128xf32> to vector<128x128xbf16>
    %c0_24 = arith.constant 0 : index
    %c256 = arith.constant 256 : index
    %24 = vector.load %arg10[%c0_24, %c256] : memref<160x1152xbf16, #tpu.memory_space<vmem>>, vector<128x128xbf16>
    tpu.vector_store %arg10[%c0_24, %c256], %23 {strides = array<i32>} : memref<160x1152xbf16, #tpu.memory_space<vmem>>, vector<128x128xbf16>,
    %c0_25 = arith.constant 0 : index
    %c0_26 = arith.constant 0 : index
    %c2_27 = arith.constant 2 : index
    %c0_28 = arith.constant 0 : index
    %25 = vector.load %arg3[%c0_25, %c0_26, %c2_27, %c0_28] : memref<1x4x18x128xf32, #tpu.memory_space<vmem>>, vector<1x2x16x128xf32>
    %26 = vector.shape_cast %25 : vector<1x2x16x128xf32> to vector<2x16x128xf32>
    %27 = vector.shape_cast %26 : vector<2x16x128xf32> to vector<32x128xf32>
    %28 = arith.truncf %27 : vector<32x128xf32> to vector<32x128xbf16>
    %c128_29 = arith.constant 128 : index
    %c256_30 = arith.constant 256 : index
    %29 = vector.load %arg10[%c128_29, %c256_30] : memref<160x1152xbf16, #tpu.memory_space<vmem>>, vector<32x128xbf16>
    tpu.vector_store %arg10[%c128_29, %c256_30], %28 {strides = array<i32>} : memref<160x1152xbf16, #tpu.memory_space<vmem>>, vector<32x128xbf16>,
    %c0_31 = arith.constant 0 : index
    %c1_32 = arith.constant 1 : index
    %c0_33 = arith.constant 0 : index
    %c0_34 = arith.constant 0 : index
    %30 = vector.load %arg2[%c0_31, %c1_32, %c0_33, %c0_34] : memref<1x8x18x128xf32, #tpu.memory_space<vmem>>, vector<1x7x16x128xf32>
    %31 = vector.shape_cast %30 : vector<1x7x16x128xf32> to vector<7x16x128xf32>
    %32 = vector.shape_cast %31 : vector<7x16x128xf32> to vector<112x128xf32>
    %33 = arith.truncf %32 : vector<112x128xf32> to vector<112x128xbf16>
    %c0_35 = arith.constant 0 : index
    %c384 = arith.constant 384 : index
    %34 = vector.load %arg10[%c0_35, %c384] : memref<160x1152xbf16, #tpu.memory_space<vmem>>, vector<112x128xbf16>
    tpu.vector_store %arg10[%c0_35, %c384], %33 {strides = array<i32>} : memref<160x1152xbf16, #tpu.memory_space<vmem>>, vector<112x128xbf16>,
    %c0_36 = arith.constant 0 : index
    %c0_37 = arith.constant 0 : index
    %c0_38 = arith.constant 0 : index
    %c0_39 = arith.constant 0 : index
    %35 = vector.load %arg3[%c0_36, %c0_37, %c0_38, %c0_39] : memref<1x4x18x128xf32, #tpu.memory_space<vmem>>, vector<1x3x16x128xf32>
    %36 = vector.shape_cast %35 : vector<1x3x16x128xf32> to vector<3x16x128xf32>
    %37 = vector.shape_cast %36 : vector<3x16x128xf32> to vector<48x128xf32>
    %38 = arith.truncf %37 : vector<48x128xf32> to vector<48x128xbf16>
    %c112 = arith.constant 112 : index
    %c384_40 = arith.constant 384 : index
    %39 = vector.load %arg10[%c112, %c384_40] : memref<160x1152xbf16, #tpu.memory_space<vmem>>, vector<48x128xbf16>
    tpu.vector_store %arg10[%c112, %c384_40], %38 {strides = array<i32>} : memref<160x1152xbf16, #tpu.memory_space<vmem>>, vector<48x128xbf16>,
    %c0_41 = arith.constant 0 : index
    %c1_42 = arith.constant 1 : index
    %c1_43 = arith.constant 1 : index
    %c0_44 = arith.constant 0 : index
    %40 = vector.load %arg2[%c0_41, %c1_42, %c1_43, %c0_44] : memref<1x8x18x128xf32, #tpu.memory_space<vmem>>, vector<1x7x16x128xf32>
    %41 = vector.shape_cast %40 : vector<1x7x16x128xf32> to vector<7x16x128xf32>
    %42 = vector.shape_cast %41 : vector<7x16x128xf32> to vector<112x128xf32>
    %43 = arith.truncf %42 : vector<112x128xf32> to vector<112x128xbf16>
    %c0_45 = arith.constant 0 : index
    %c512 = arith.constant 512 : index
    %44 = vector.load %arg10[%c0_45, %c512] : memref<160x1152xbf16, #tpu.memory_space<vmem>>, vector<112x128xbf16>
    tpu.vector_store %arg10[%c0_45, %c512], %43 {strides = array<i32>} : memref<160x1152xbf16, #tpu.memory_space<vmem>>, vector<112x128xbf16>,
    %c0_46 = arith.constant 0 : index
    %c0_47 = arith.constant 0 : index
    %c1_48 = arith.constant 1 : index
    %c0_49 = arith.constant 0 : index
    %45 = vector.load %arg3[%c0_46, %c0_47, %c1_48, %c0_49] : memref<1x4x18x128xf32, #tpu.memory_space<vmem>>, vector<1x3x16x128xf32>
    %46 = vector.shape_cast %45 : vector<1x3x16x128xf32> to vector<3x16x128xf32>
    %47 = vector.shape_cast %46 : vector<3x16x128xf32> to vector<48x128xf32>
    %48 = arith.truncf %47 : vector<48x128xf32> to vector<48x128xbf16>
    %c112_50 = arith.constant 112 : index
    %c512_51 = arith.constant 512 : index
    %49 = vector.load %arg10[%c112_50, %c512_51] : memref<160x1152xbf16, #tpu.memory_space<vmem>>, vector<48x128xbf16>
    tpu.vector_store %arg10[%c112_50, %c512_51], %48 {strides = array<i32>} : memref<160x1152xbf16, #tpu.memory_space<vmem>>, vector<48x128xbf16>,
    %c0_52 = arith.constant 0 : index
    %c1_53 = arith.constant 1 : index
    %c2_54 = arith.constant 2 : index
    %c0_55 = arith.constant 0 : index
    %50 = vector.load %arg2[%c0_52, %c1_53, %c2_54, %c0_55] : memref<1x8x18x128xf32, #tpu.memory_space<vmem>>, vector<1x7x16x128xf32>
    %51 = vector.shape_cast %50 : vector<1x7x16x128xf32> to vector<7x16x128xf32>
    %52 = vector.shape_cast %51 : vector<7x16x128xf32> to vector<112x128xf32>
    %53 = arith.truncf %52 : vector<112x128xf32> to vector<112x128xbf16>
    %c0_56 = arith.constant 0 : index
    %c640 = arith.constant 640 : index
    %54 = vector.load %arg10[%c0_56, %c640] : memref<160x1152xbf16, #tpu.memory_space<vmem>>, vector<112x128xbf16>
    tpu.vector_store %arg10[%c0_56, %c640], %53 {strides = array<i32>} : memref<160x1152xbf16, #tpu.memory_space<vmem>>, vector<112x128xbf16>,
    %c0_57 = arith.constant 0 : index
    %c0_58 = arith.constant 0 : index
    %c2_59 = arith.constant 2 : index
    %c0_60 = arith.constant 0 : index
    %55 = vector.load %arg3[%c0_57, %c0_58, %c2_59, %c0_60] : memref<1x4x18x128xf32, #tpu.memory_space<vmem>>, vector<1x3x16x128xf32>
    %56 = vector.shape_cast %55 : vector<1x3x16x128xf32> to vector<3x16x128xf32>
    %57 = vector.shape_cast %56 : vector<3x16x128xf32> to vector<48x128xf32>
    %58 = arith.truncf %57 : vector<48x128xf32> to vector<48x128xbf16>
    %c112_61 = arith.constant 112 : index
    %c640_62 = arith.constant 640 : index
    %59 = vector.load %arg10[%c112_61, %c640_62] : memref<160x1152xbf16, #tpu.memory_space<vmem>>, vector<48x128xbf16>
    tpu.vector_store %arg10[%c112_61, %c640_62], %58 {strides = array<i32>} : memref<160x1152xbf16, #tpu.memory_space<vmem>>, vector<48x128xbf16>,
    %c0_63 = arith.constant 0 : index
    %c2_64 = arith.constant 2 : index
    %c0_65 = arith.constant 0 : index
    %c0_66 = arith.constant 0 : index
    %60 = vector.load %arg2[%c0_63, %c2_64, %c0_65, %c0_66] : memref<1x8x18x128xf32, #tpu.memory_space<vmem>>, vector<1x6x16x128xf32>
    %61 = vector.shape_cast %60 : vector<1x6x16x128xf32> to vector<6x16x128xf32>
    %62 = vector.shape_cast %61 : vector<6x16x128xf32> to vector<96x128xf32>
    %63 = arith.truncf %62 : vector<96x128xf32> to vector<96x128xbf16>
    %c0_67 = arith.constant 0 : index
    %c768 = arith.constant 768 : index
    %64 = vector.load %arg10[%c0_67, %c768] : memref<160x1152xbf16, #tpu.memory_space<vmem>>, vector<96x128xbf16>
    tpu.vector_store %arg10[%c0_67, %c768], %63 {strides = array<i32>} : memref<160x1152xbf16, #tpu.memory_space<vmem>>, vector<96x128xbf16>,
    %c0_68 = arith.constant 0 : index
    %c0_69 = arith.constant 0 : index
    %c0_70 = arith.constant 0 : index
    %c0_71 = arith.constant 0 : index
    %65 = vector.load %arg3[%c0_68, %c0_69, %c0_70, %c0_71] : memref<1x4x18x128xf32, #tpu.memory_space<vmem>>, vector<1x4x16x128xf32>
    %66 = vector.shape_cast %65 : vector<1x4x16x128xf32> to vector<4x16x128xf32>
    %67 = vector.shape_cast %66 : vector<4x16x128xf32> to vector<64x128xf32>
    %68 = arith.truncf %67 : vector<64x128xf32> to vector<64x128xbf16>
    %c96 = arith.constant 96 : index
    %c768_72 = arith.constant 768 : index
    %69 = vector.load %arg10[%c96, %c768_72] : memref<160x1152xbf16, #tpu.memory_space<vmem>>, vector<64x128xbf16>
    tpu.vector_store %arg10[%c96, %c768_72], %68 {strides = array<i32>} : memref<160x1152xbf16, #tpu.memory_space<vmem>>, vector<64x128xbf16>,
    %c0_73 = arith.constant 0 : index
    %c2_74 = arith.constant 2 : index
    %c1_75 = arith.constant 1 : index
    %c0_76 = arith.constant 0 : index
    %70 = vector.load %arg2[%c0_73, %c2_74, %c1_75, %c0_76] : memref<1x8x18x128xf32, #tpu.memory_space<vmem>>, vector<1x6x16x128xf32>
    %71 = vector.shape_cast %70 : vector<1x6x16x128xf32> to vector<6x16x128xf32>
    %72 = vector.shape_cast %71 : vector<6x16x128xf32> to vector<96x128xf32>
    %73 = arith.truncf %72 : vector<96x128xf32> to vector<96x128xbf16>
    %c0_77 = arith.constant 0 : index
    %c896 = arith.constant 896 : index
    %74 = vector.load %arg10[%c0_77, %c896] : memref<160x1152xbf16, #tpu.memory_space<vmem>>, vector<96x128xbf16>
    tpu.vector_store %arg10[%c0_77, %c896], %73 {strides = array<i32>} : memref<160x1152xbf16, #tpu.memory_space<vmem>>, vector<96x128xbf16>,
    %c0_78 = arith.constant 0 : index
    %c0_79 = arith.constant 0 : index
    %c1_80 = arith.constant 1 : index
    %c0_81 = arith.constant 0 : index
    %75 = vector.load %arg3[%c0_78, %c0_79, %c1_80, %c0_81] : memref<1x4x18x128xf32, #tpu.memory_space<vmem>>, vector<1x4x16x128xf32>
    %76 = vector.shape_cast %75 : vector<1x4x16x128xf32> to vector<4x16x128xf32>
    %77 = vector.shape_cast %76 : vector<4x16x128xf32> to vector<64x128xf32>
    %78 = arith.truncf %77 : vector<64x128xf32> to vector<64x128xbf16>
    %c96_82 = arith.constant 96 : index
    %c896_83 = arith.constant 896 : index
    %79 = vector.load %arg10[%c96_82, %c896_83] : memref<160x1152xbf16, #tpu.memory_space<vmem>>, vector<64x128xbf16>
    tpu.vector_store %arg10[%c96_82, %c896_83], %78 {strides = array<i32>} : memref<160x1152xbf16, #tpu.memory_space<vmem>>, vector<64x128xbf16>,
    %c0_84 = arith.constant 0 : index
    %c2_85 = arith.constant 2 : index
    %c2_86 = arith.constant 2 : index
    %c0_87 = arith.constant 0 : index
    %80 = vector.load %arg2[%c0_84, %c2_85, %c2_86, %c0_87] : memref<1x8x18x128xf32, #tpu.memory_space<vmem>>, vector<1x6x16x128xf32>
    %81 = vector.shape_cast %80 : vector<1x6x16x128xf32> to vector<6x16x128xf32>
    %82 = vector.shape_cast %81 : vector<6x16x128xf32> to vector<96x128xf32>
    %83 = arith.truncf %82 : vector<96x128xf32> to vector<96x128xbf16>
    %c0_88 = arith.constant 0 : index
    %c1024 = arith.constant 1024 : index
    %84 = vector.load %arg10[%c0_88, %c1024] : memref<160x1152xbf16, #tpu.memory_space<vmem>>, vector<96x128xbf16>
    tpu.vector_store %arg10[%c0_88, %c1024], %83 {strides = array<i32>} : memref<160x1152xbf16, #tpu.memory_space<vmem>>, vector<96x128xbf16>,
    %c0_89 = arith.constant 0 : index
    %c0_90 = arith.constant 0 : index
    %c2_91 = arith.constant 2 : index
    %c0_92 = arith.constant 0 : index
    %85 = vector.load %arg3[%c0_89, %c0_90, %c2_91, %c0_92] : memref<1x4x18x128xf32, #tpu.memory_space<vmem>>, vector<1x4x16x128xf32>
    %86 = vector.shape_cast %85 : vector<1x4x16x128xf32> to vector<4x16x128xf32>
    %87 = vector.shape_cast %86 : vector<4x16x128xf32> to vector<64x128xf32>
    %88 = arith.truncf %87 : vector<64x128xf32> to vector<64x128xbf16>
    %c96_93 = arith.constant 96 : index
    %c1024_94 = arith.constant 1024 : index
    %89 = vector.load %arg10[%c96_93, %c1024_94] : memref<160x1152xbf16, #tpu.memory_space<vmem>>, vector<64x128xbf16>
    tpu.vector_store %arg10[%c96_93, %c1024_94], %88 {strides = array<i32>} : memref<160x1152xbf16, #tpu.memory_space<vmem>>, vector<64x128xbf16>,
    %c0_95 = arith.constant 0 : index
    %c0_96 = arith.constant 0 : index
    %90 = vector.load %arg10[%c0_95, %c0_96] : memref<160x1152xbf16, #tpu.memory_space<vmem>>, vector<160x1152xbf16>
    %c0_97 = arith.constant 0 : index
    %c0_98 = arith.constant 0 : index
    %91 = vector.load %arg4[%c0_97, %c0_98] : memref<1152x128xbf16, #tpu.memory_space<vmem>>, vector<1152x128xbf16>
    %cst = arith.constant dense<0.000000e+00> : vector<160x128xf32>
    %92 = tpu.matmul %90, %91, %cst {dimension_numbers = #tpu.dot_dimension_numbers<[1], [0], [0], [1], [0, 0, 1, 1], [], []>} : vector<160x1152xbf16>, vector<1152x128xbf16>, vector<160x128xf32> -> vector<160x128xf32>
    %c0_99 = arith.constant 0 : index
    %c0_100 = arith.constant 0 : index
    %93 = vector.load %arg5[%c0_99, %c0_100] : memref<1x128xf32, #tpu.memory_space<vmem>>, vector<1x128xf32>
    %94 = vector.broadcast %93 : vector<1x128xf32> to vector<160x128xf32>
    %95 = arith.addf %92, %94 : vector<160x128xf32>
    %cst_101 = arith.constant 0.000000e+00 : f32
    %96 = vector.broadcast %cst_101 : f32 to vector<160x128xf32>
    %97 = arith.maximumf %95, %96 : vector<160x128xf32>
    %98 = vector.shape_cast %97 : vector<160x128xf32> to vector<10x16x128xf32>
    %cst_102 = arith.constant 0.000000e+00 : bf16
    %99 = vector.broadcast %cst_102 : bf16 to vector<10x1x128xbf16>
    %c0_103 = arith.constant 0 : index
    %c0_104 = arith.constant 0 : index
    %c0_105 = arith.constant 0 : index
    %100 = vector.load %arg9[%c0_103, %c0_104, %c0_105] : memref<10x18x128xbf16, #tpu.memory_space<vmem>>, vector<10x1x128xbf16>
    tpu.vector_store %arg9[%c0_103, %c0_104, %c0_105], %99 {strides = array<i32>} : memref<10x18x128xbf16, #tpu.memory_space<vmem>>, vector<10x1x128xbf16>,
    %cst_106 = arith.constant 0.000000e+00 : bf16
    %101 = vector.broadcast %cst_106 : bf16 to vector<10x1x128xbf16>
    %c0_107 = arith.constant 0 : index
    %c17 = arith.constant 17 : index
    %c0_108 = arith.constant 0 : index
    %102 = vector.load %arg9[%c0_107, %c17, %c0_108] : memref<10x18x128xbf16, #tpu.memory_space<vmem>>, vector<10x1x128xbf16>
    tpu.vector_store %arg9[%c0_107, %c17, %c0_108], %101 {strides = array<i32>} : memref<10x18x128xbf16, #tpu.memory_space<vmem>>, vector<10x1x128xbf16>,
    %103 = arith.truncf %98 : vector<10x16x128xf32> to vector<10x16x128xbf16>
    %c0_109 = arith.constant 0 : index
    %c1_110 = arith.constant 1 : index
    %c0_111 = arith.constant 0 : index
    %104 = vector.load %arg9[%c0_109, %c1_110, %c0_111] : memref<10x18x128xbf16, #tpu.memory_space<vmem>>, vector<10x16x128xbf16>
    tpu.vector_store %arg9[%c0_109, %c1_110, %c0_111], %103 {strides = array<i32>} : memref<10x18x128xbf16, #tpu.memory_space<vmem>>, vector<10x16x128xbf16>,
    %c0_i32 = arith.constant 0 : i32
    %105 = arith.cmpi eq, %arg1, %c0_i32 : i32
    %106 = arith.extui %105 : i1 to i32
    %c0_i32_112 = arith.constant 0 : i32
    %107 = arith.cmpi ne, %106, %c0_i32_112 : i32
    scf.if %107 {
      %cst_181 = arith.constant 0.000000e+00 : bf16
      %159 = vector.broadcast %cst_181 : bf16 to vector<1x18x128xbf16>
      %c0_182 = arith.constant 0 : index
      %c0_183 = arith.constant 0 : index
      %c0_184 = arith.constant 0 : index
      %160 = vector.load %arg9[%c0_182, %c0_183, %c0_184] : memref<10x18x128xbf16, #tpu.memory_space<vmem>>, vector<1x18x128xbf16>
      tpu.vector_store %arg9[%c0_182, %c0_183, %c0_184], %159 {strides = array<i32>} : memref<10x18x128xbf16, #tpu.memory_space<vmem>>, vector<1x18x128xbf16>,
    } else {
    }
    %c1_i32 = arith.constant 1 : i32
    %108 = arith.cmpi eq, %arg1, %c1_i32 : i32
    %109 = arith.extui %108 : i1 to i32
    %c0_i32_113 = arith.constant 0 : i32
    %110 = arith.cmpi ne, %109, %c0_i32_113 : i32
    scf.if %110 {
      %cst_181 = arith.constant 0.000000e+00 : bf16
      %159 = vector.broadcast %cst_181 : bf16 to vector<1x18x128xbf16>
      %c9 = arith.constant 9 : index
      %c0_182 = arith.constant 0 : index
      %c0_183 = arith.constant 0 : index
      %160 = vector.load %arg9[%c9, %c0_182, %c0_183] : memref<10x18x128xbf16, #tpu.memory_space<vmem>>, vector<1x18x128xbf16>
      tpu.vector_store %arg9[%c9, %c0_182, %c0_183], %159 {strides = array<i32>} : memref<10x18x128xbf16, #tpu.memory_space<vmem>>, vector<1x18x128xbf16>,
    } else {
    }
    %c0_114 = arith.constant 0 : index
    %c0_115 = arith.constant 0 : index
    %c0_116 = arith.constant 0 : index
    %111 = vector.load %arg9[%c0_114, %c0_115, %c0_116] : memref<10x18x128xbf16, #tpu.memory_space<vmem>>, vector<8x16x128xbf16>
    %112 = vector.shape_cast %111 : vector<8x16x128xbf16> to vector<128x128xbf16>
    %c0_117 = arith.constant 0 : index
    %c0_118 = arith.constant 0 : index
    %113 = vector.load %arg10[%c0_117, %c0_118] : memref<160x1152xbf16, #tpu.memory_space<vmem>>, vector<128x128xbf16>
    tpu.vector_store %arg10[%c0_117, %c0_118], %112 {strides = array<i32>} : memref<160x1152xbf16, #tpu.memory_space<vmem>>, vector<128x128xbf16>,
    %c0_119 = arith.constant 0 : index
    %c1_120 = arith.constant 1 : index
    %c0_121 = arith.constant 0 : index
    %114 = vector.load %arg9[%c0_119, %c1_120, %c0_121] : memref<10x18x128xbf16, #tpu.memory_space<vmem>>, vector<8x16x128xbf16>
    %115 = vector.shape_cast %114 : vector<8x16x128xbf16> to vector<128x128xbf16>
    %c0_122 = arith.constant 0 : index
    %c128_123 = arith.constant 128 : index
    %116 = vector.load %arg10[%c0_122, %c128_123] : memref<160x1152xbf16, #tpu.memory_space<vmem>>, vector<128x128xbf16>
    tpu.vector_store %arg10[%c0_122, %c128_123], %115 {strides = array<i32>} : memref<160x1152xbf16, #tpu.memory_space<vmem>>, vector<128x128xbf16>,
    %c0_124 = arith.constant 0 : index
    %c2_125 = arith.constant 2 : index
    %c0_126 = arith.constant 0 : index
    %117 = vector.load %arg9[%c0_124, %c2_125, %c0_126] : memref<10x18x128xbf16, #tpu.memory_space<vmem>>, vector<8x16x128xbf16>
    %118 = vector.shape_cast %117 : vector<8x16x128xbf16> to vector<128x128xbf16>
    %c0_127 = arith.constant 0 : index
    %c256_128 = arith.constant 256 : index
    %119 = vector.load %arg10[%c0_127, %c256_128] : memref<160x1152xbf16, #tpu.memory_space<vmem>>, vector<128x128xbf16>
    tpu.vector_store %arg10[%c0_127, %c256_128], %118 {strides = array<i32>} : memref<160x1152xbf16, #tpu.memory_space<vmem>>, vector<128x128xbf16>,
    %c1_129 = arith.constant 1 : index
    %c0_130 = arith.constant 0 : index
    %c0_131 = arith.constant 0 : index
    %120 = vector.load %arg9[%c1_129, %c0_130, %c0_131] : memref<10x18x128xbf16, #tpu.memory_space<vmem>>, vector<8x16x128xbf16>
    %121 = vector.shape_cast %120 : vector<8x16x128xbf16> to vector<128x128xbf16>
    %c0_132 = arith.constant 0 : index
    %c384_133 = arith.constant 384 : index
    %122 = vector.load %arg10[%c0_132, %c384_133] : memref<160x1152xbf16, #tpu.memory_space<vmem>>, vector<128x128xbf16>
    tpu.vector_store %arg10[%c0_132, %c384_133], %121 {strides = array<i32>} : memref<160x1152xbf16, #tpu.memory_space<vmem>>, vector<128x128xbf16>,
    %c1_134 = arith.constant 1 : index
    %c1_135 = arith.constant 1 : index
    %c0_136 = arith.constant 0 : index
    %123 = vector.load %arg9[%c1_134, %c1_135, %c0_136] : memref<10x18x128xbf16, #tpu.memory_space<vmem>>, vector<8x16x128xbf16>
    %124 = vector.shape_cast %123 : vector<8x16x128xbf16> to vector<128x128xbf16>
    %c0_137 = arith.constant 0 : index
    %c512_138 = arith.constant 512 : index
    %125 = vector.load %arg10[%c0_137, %c512_138] : memref<160x1152xbf16, #tpu.memory_space<vmem>>, vector<128x128xbf16>
    tpu.vector_store %arg10[%c0_137, %c512_138], %124 {strides = array<i32>} : memref<160x1152xbf16, #tpu.memory_space<vmem>>, vector<128x128xbf16>,
    %c1_139 = arith.constant 1 : index
    %c2_140 = arith.constant 2 : index
    %c0_141 = arith.constant 0 : index
    %126 = vector.load %arg9[%c1_139, %c2_140, %c0_141] : memref<10x18x128xbf16, #tpu.memory_space<vmem>>, vector<8x16x128xbf16>
    %127 = vector.shape_cast %126 : vector<8x16x128xbf16> to vector<128x128xbf16>
    %c0_142 = arith.constant 0 : index
    %c640_143 = arith.constant 640 : index
    %128 = vector.load %arg10[%c0_142, %c640_143] : memref<160x1152xbf16, #tpu.memory_space<vmem>>, vector<128x128xbf16>
    tpu.vector_store %arg10[%c0_142, %c640_143], %127 {strides = array<i32>} : memref<160x1152xbf16, #tpu.memory_space<vmem>>, vector<128x128xbf16>,
    %c2_144 = arith.constant 2 : index
    %c0_145 = arith.constant 0 : index
    %c0_146 = arith.constant 0 : index
    %129 = vector.load %arg9[%c2_144, %c0_145, %c0_146] : memref<10x18x128xbf16, #tpu.memory_space<vmem>>, vector<8x16x128xbf16>
    %130 = vector.shape_cast %129 : vector<8x16x128xbf16> to vector<128x128xbf16>
    %c0_147 = arith.constant 0 : index
    %c768_148 = arith.constant 768 : index
    %131 = vector.load %arg10[%c0_147, %c768_148] : memref<160x1152xbf16, #tpu.memory_space<vmem>>, vector<128x128xbf16>
    tpu.vector_store %arg10[%c0_147, %c768_148], %130 {strides = array<i32>} : memref<160x1152xbf16, #tpu.memory_space<vmem>>, vector<128x128xbf16>,
    %c2_149 = arith.constant 2 : index
    %c1_150 = arith.constant 1 : index
    %c0_151 = arith.constant 0 : index
    %132 = vector.load %arg9[%c2_149, %c1_150, %c0_151] : memref<10x18x128xbf16, #tpu.memory_space<vmem>>, vector<8x16x128xbf16>
    %133 = vector.shape_cast %132 : vector<8x16x128xbf16> to vector<128x128xbf16>
    %c0_152 = arith.constant 0 : index
    %c896_153 = arith.constant 896 : index
    %134 = vector.load %arg10[%c0_152, %c896_153] : memref<160x1152xbf16, #tpu.memory_space<vmem>>, vector<128x128xbf16>
    tpu.vector_store %arg10[%c0_152, %c896_153], %133 {strides = array<i32>} : memref<160x1152xbf16, #tpu.memory_space<vmem>>, vector<128x128xbf16>,
    %c2_154 = arith.constant 2 : index
    %c2_155 = arith.constant 2 : index
    %c0_156 = arith.constant 0 : index
    %135 = vector.load %arg9[%c2_154, %c2_155, %c0_156] : memref<10x18x128xbf16, #tpu.memory_space<vmem>>, vector<8x16x128xbf16>
    %136 = vector.shape_cast %135 : vector<8x16x128xbf16> to vector<128x128xbf16>
    %c0_157 = arith.constant 0 : index
    %c1024_158 = arith.constant 1024 : index
    %137 = vector.load %arg10[%c0_157, %c1024_158] : memref<160x1152xbf16, #tpu.memory_space<vmem>>, vector<128x128xbf16>
    tpu.vector_store %arg10[%c0_157, %c1024_158], %136 {strides = array<i32>} : memref<160x1152xbf16, #tpu.memory_space<vmem>>, vector<128x128xbf16>,
    %c0_159 = arith.constant 0 : index
    %c0_160 = arith.constant 0 : index
    %138 = vector.load %arg10[%c0_159, %c0_160] : memref<160x1152xbf16, #tpu.memory_space<vmem>>, vector<128x1152xbf16>
    %c0_161 = arith.constant 0 : index
    %c0_162 = arith.constant 0 : index
    %139 = vector.load %arg6[%c0_161, %c0_162] : memref<1152x128xbf16, #tpu.memory_space<vmem>>, vector<1152x128xbf16>
    %cst_163 = arith.constant dense<0.000000e+00> : vector<128x128xf32>
    %140 = tpu.matmul %138, %139, %cst_163 {dimension_numbers = #tpu.dot_dimension_numbers<[1], [0], [0], [1], [0, 0, 1, 1], [], []>} : vector<128x1152xbf16>, vector<1152x128xbf16>, vector<128x128xf32> -> vector<128x128xf32>
    %c0_164 = arith.constant 0 : index
    %c0_165 = arith.constant 0 : index
    %141 = vector.load %arg7[%c0_164, %c0_165] : memref<1x128xf32, #tpu.memory_space<vmem>>, vector<1x128xf32>
    %142 = vector.broadcast %141 : vector<1x128xf32> to vector<128x128xf32>
    %143 = arith.addf %140, %142 : vector<128x128xf32>
    %144 = vector.shape_cast %143 : vector<128x128xf32> to vector<8x16x128xf32>
    %c0_166 = arith.constant 0 : index
    %c2_167 = arith.constant 2 : index
    %c1_168 = arith.constant 1 : index
    %c0_169 = arith.constant 0 : index
    %145 = vector.load %arg2[%c0_166, %c2_167, %c1_168, %c0_169] : memref<1x8x18x128xf32, #tpu.memory_space<vmem>>, vector<1x6x16x128xf32>
    %146 = vector.shape_cast %145 : vector<1x6x16x128xf32> to vector<6x16x128xf32>
    %147 = vector.extract_strided_slice %144 {offsets = [0, 0, 0], sizes = [6, 16, 128], strides = [1, 1, 1]} : vector<8x16x128xf32> to vector<6x16x128xf32>
    %148 = arith.addf %146, %147 : vector<6x16x128xf32>
    %c0_170 = arith.constant 0 : index
    %c0_171 = arith.constant 0 : index
    %c0_172 = arith.constant 0 : index
    %c0_173 = arith.constant 0 : index
    %149 = vector.load %arg8[%c0_170, %c0_171, %c0_172, %c0_173] : memref<1x8x16x128xf32, #tpu.memory_space<vmem>>, vector<1x6x16x128xf32>
    %150 = vector.shape_cast %149 : vector<1x6x16x128xf32> to vector<6x16x128xf32>
    %151 = vector.shape_cast %148 : vector<6x16x128xf32> to vector<1x6x16x128xf32>
    tpu.vector_store %arg8[%c0_170, %c0_171, %c0_172, %c0_173], %151 {strides = array<i32>} : memref<1x8x16x128xf32, #tpu.memory_space<vmem>>, vector<1x6x16x128xf32>,
    %c0_174 = arith.constant 0 : index
    %c0_175 = arith.constant 0 : index
    %c1_176 = arith.constant 1 : index
    %c0_177 = arith.constant 0 : index
    %152 = vector.load %arg3[%c0_174, %c0_175, %c1_176, %c0_177] : memref<1x4x18x128xf32, #tpu.memory_space<vmem>>, vector<1x2x16x128xf32>
    %153 = vector.shape_cast %152 : vector<1x2x16x128xf32> to vector<2x16x128xf32>
    %154 = vector.extract_strided_slice %144 {offsets = [6, 0, 0], sizes = [2, 16, 128], strides = [1, 1, 1]} : vector<8x16x128xf32> to vector<2x16x128xf32>
    %155 = arith.addf %153, %154 : vector<2x16x128xf32>
    %c0_178 = arith.constant 0 : index
    %c6 = arith.constant 6 : index
    %c0_179 = arith.constant 0 : index
    %c0_180 = arith.constant 0 : index
    %156 = vector.load %arg8[%c0_178, %c6, %c0_179, %c0_180] : memref<1x8x16x128xf32, #tpu.memory_space<vmem>>, vector<1x2x16x128xf32>
    %157 = vector.shape_cast %156 : vector<1x2x16x128xf32> to vector<2x16x128xf32>
    %158 = vector.shape_cast %155 : vector<2x16x128xf32> to vector<1x2x16x128xf32>
    tpu.vector_store %arg8[%c0_178, %c6, %c0_179, %c0_180], %158 {strides = array<i32>} : memref<1x8x16x128xf32, #tpu.memory_space<vmem>>, vector<1x2x16x128xf32>,
    return
  }
  func.func @transform_0(%arg0: i32, %arg1: i32) -> (i32, i32, i32, i32) {
    %c0_i32 = arith.constant 0 : i32
    %c0_i32_0 = arith.constant 0 : i32
    %c0_i32_1 = arith.constant 0 : i32
    return %arg0, %arg1, %c0_i32, %c0_i32_0 : i32, i32, i32, i32
  }
  func.func @transform_1(%arg0: i32, %arg1: i32) -> (i32, i32, i32, i32) {
    %c1_i32 = arith.constant 1 : i32
    %0 = arith.addi %arg1, %c1_i32 : i32
    %c2_i32 = arith.constant 2 : i32
    %1 = arith.muli %0, %c2_i32 : i32
    %c0_i32 = arith.constant 0 : i32
    %c0_i32_0 = arith.constant 0 : i32
    %c0_i32_1 = arith.constant 0 : i32
    return %arg0, %1, %c0_i32, %c0_i32_0 : i32, i32, i32, i32
  }
  func.func @transform_2(%arg0: i32, %arg1: i32) -> (i32, i32) {
    %c0_i32 = arith.constant 0 : i32
    %c0_i32_0 = arith.constant 0 : i32
    %c0_i32_1 = arith.constant 0 : i32
    return %c0_i32, %c0_i32_0 : i32, i32
  }
  func.func @transform_3(%arg0: i32, %arg1: i32) -> (i32, i32) {
    %c0_i32 = arith.constant 0 : i32
    %c0_i32_0 = arith.constant 0 : i32
    %c0_i32_1 = arith.constant 0 : i32
    return %c0_i32, %c0_i32_0 : i32, i32
  }
  func.func @transform_4(%arg0: i32, %arg1: i32) -> (i32, i32) {
    %c0_i32 = arith.constant 0 : i32
    %c0_i32_0 = arith.constant 0 : i32
    %c0_i32_1 = arith.constant 0 : i32
    return %c0_i32, %c0_i32_0 : i32, i32
  }
  func.func @transform_5(%arg0: i32, %arg1: i32) -> (i32, i32) {
    %c0_i32 = arith.constant 0 : i32
    %c0_i32_0 = arith.constant 0 : i32
    %c0_i32_1 = arith.constant 0 : i32
    return %c0_i32, %c0_i32_0 : i32, i32
  }
  func.func @transform_6(%arg0: i32, %arg1: i32) -> (i32, i32, i32, i32) {
    %c0_i32 = arith.constant 0 : i32
    %c0_i32_0 = arith.constant 0 : i32
    %c0_i32_1 = arith.constant 0 : i32
    return %arg0, %arg1, %c0_i32, %c0_i32_0 : i32, i32, i32, i32
  }
}

</mosaic_0001>

<bundles_post_ra>
// kernel: br_forward.1
= control target key start
LH: loop header
LB: loop body
LE: loop exit
PB: predicated region body
PF: predicated region fallthrough
CT: control target
= control target key end

     0   :  { %s6499_s21 = smov 0   ;;  %s6501_s22 = smov 0   ;;  %s7954_s0 = inlined_call_operand.vmem [shape: f32[2,20,18,128], index: 0, kind: input, shape index: {}, may-alias: {0,1}]   ;;  %s7955_s1 = inlined_call_operand.vmem [shape: f32[2,20,18,128], index: 1, kind: input, shape index: {}, may-alias: {0,1}]   ;;  %s7956_s2 = inlined_call_operand.vmem [shape: bf16[1152,128], index: 2, kind: input, shape index: {}]   ;;  %s7957_s3 = inlined_call_operand.vmem [shape: f32[1,128], index: 3, kind: input, shape index: {}]   ;;  %s7958_s4 = inlined_call_operand.vmem [shape: bf16[1152,128], index: 4, kind: input, shape index: {}]   ;;  %s7959_s5 = inlined_call_operand.vmem [shape: f32[1,128], index: 5, kind: input, shape index: {}]   ;;  %s7960_s6 = inlined_call_operand.vmem [shape: f32[2,16,16,128], index: 6, kind: output, shape index: {}]  }
   0x1   :  { %s6503_s23 = smov 0   ;;  %s6505_s24 = smov 0  }
   0x2   :  { %s6507_s25 = smov 0  }
   0x3 LB: > { %s25_s26 = sadd.s32 1, %s6452_s23  ;;  %s28_s27 = sadd.s32 1, %s6456_s24  ;;  %s6460_s25 = sphi %s6507_s25, %s16_s25   ;;  %s6456_s24 = sphi %s6505_s24, %s7977_s24   ;;  %s6452_s23 = sphi %s6503_s23, %s7976_s23   ;;  %s6448_s22 = sphi %s6501_s22, %s7975_s22   ;;  %s6444_s21 = sphi %s6499_s21, %s7974_s21  }
   0x4   : > { %p26_p0 = scmp.ge.s32.totalorder %s25_s26, 2  ;;  %p5148_p1 = scmp.ge.s32.totalorder %s6460_s25, 1 }
   0x5   : > { %p270_p2 = scmp.lt.s32.totalorder %s6460_s25, 5 }
   0x6   : > { %s7979_s26 = smov (%p26_p0, %s25_s26), 0  ;;  %s7981_s27 = smov (!%p26_p0, %s28_s27), %s6456_s24 }
   0x7   : > { %p271_p3 = pnand %p5148_p1, %p270_p2  ;;  %p30_p4 = scmp.ge.s32.totalorder %s7981_s27, 2 }
   0x8   : > { %v6254_v0 = vld [vmem:[%s7956_s2 + $0x40] sm:$0xff] (!%p271_p3)   ;;  %s6546_s12 = sshll.u32 (!%p271_p3), %s6444_s21, 3  ;;  %v6258_v4 = vld [vmem:[%s7956_s2 + $0x48] sm:$0xff] (!%p271_p3)   ;;  %p333_p5 = scmp.lt.s32.totalorder (!%p271_p3), %s6448_s22, 1  ;;  %v6262_v8 = vld [vmem:[%s7956_s2 + $0x50] sm:$0xff] (!%p271_p3)   ;;  %vm1995_vm0 = vcmask (!%p271_p3), 1040384  }
   0x9   : > { %s7983_s27 = smov (%p30_p4, %s7981_s27), 0  ;;  %274 = sbr.rel (%p271_p3) target bundleno = 893 (0x37d), region = 44 }
   0xa   : > { %v6255_v1 = vld [vmem:[%s7956_s2] sm:$0xff] (!%p271_p3)   ;;  %5547 = vmatprep.subr.bf16.mxu0 (!%p271_p3), %v6254_v0  ;;  %v6259_v5 = vld [vmem:[%s7956_s2 + $0x8] sm:$0xff] (!%p271_p3)   ;;  %p335_p6 = scmp.lt.s32.totalorder (!%p271_p3), %s6546_s12, 19  ;;  %p366_p7 = scmp.lt.s32.totalorder (!%p271_p3), %s6546_s12, 15  ;;  %v6263_v9 = vld [vmem:[%s7956_s2 + $0x10] sm:$0xff] (!%p271_p3)   ;;  %vm2322_vm5 = vcmask (!%p271_p3), 1043456  }
   0xb   : > { %v6256_v2 = vld [vmem:[%s7956_s2 + $0xc0] sm:$0xff] (!%p271_p3)   ;;  %5548 = vmatpush3.bf16.msra.mxu0 (!%p271_p3), %v6255_v1  ;;  %v6260_v6 = vld [vmem:[%s7956_s2 + $0xc8] sm:$0xff] (!%p271_p3)   ;;  %v6264_v10 = vld [vmem:[%s7956_s2 + $0xd0] sm:$0xff] (!%p271_p3)   ;;  %s5546_s28 = sadd.s32 (!%p271_p3), 8, %s6546_s12  ;;  %vm1996_vm1 = vsmask.f32 (!%p271_p3), 256 }
   0xc   : > { %v6257_v3 = vld [vmem:[%s7956_s2 + $0x80] sm:$0xff] (!%p271_p3)   ;;  %5623 = vmatprep.subr.bf16.mxu1 (!%p271_p3), %v6256_v2  ;;  %5549 = vmatprep.subr.bf16.mxu0 (!%p271_p3), %v6258_v4  ;;  %v6261_v7 = vld [vmem:[%s7956_s2 + $0x88] sm:$0xff] (!%p271_p3)   ;;  %v6265_v11 = vld [vmem:[%s7956_s2 + $0x90] sm:$0xff] (!%p271_p3)   ;;  %p6708_p8 = scmp.lt.s32.totalorder (!%p271_p3), %s5546_s28, 19  ;;  %vm2028_vm3 = vsmask.f32 (!%p271_p3), 7938 }
   0xd   : > { %5624 = vmatpush3.bf16.msra.mxu1 (!%p271_p3), %v6257_v3  ;;  %v6266_v12 = vld [vmem:[%s7956_s2 + $0x58] sm:$0xff] (!%p271_p3)   ;;  %v6270_v16 = vld [vmem:[%s7956_s2 + $0x60] sm:$0xff] (!%p271_p3)   ;;  %v6274_v20 = vld [vmem:[%s7956_s2 + $0x68] sm:$0xff] (!%p271_p3)   ;;  %vm2120_vm6 = vsmask.f32 (!%p271_p3), 4368  ;;  %p5329_p9 = scmp.ne.s32.totalorder (!%p271_p3), %s6444_s21, 0 }
   0xe   : > { %5625 = vmatprep.subr.bf16.mxu1 (!%p271_p3), %v6260_v6  ;;  %v6267_v13 = vld [vmem:[%s7956_s2 + $0x18] sm:$0xff] (!%p271_p3)   ;;  %v6271_v17 = vld [vmem:[%s7956_s2 + $0x20] sm:$0xff] (!%p271_p3)   ;;  %v6275_v21 = vld [vmem:[%s7956_s2 + $0x28] sm:$0xff] (!%p271_p3)  }
   0xf   : > { %5550 = vmatpush3.bf16.msra.mxu0 (!%p271_p3), %v6259_v5  ;;  %v6268_v14 = vld [vmem:[%s7956_s2 + $0xd8] sm:$0xff] (!%p271_p3)   ;;  %v6272_v18 = vld [vmem:[%s7956_s2 + $0xe0] sm:$0xff] (!%p271_p3)   ;;  %v6276_v22 = vld [vmem:[%s7956_s2 + $0xe8] sm:$0xff] (!%p271_p3)  }
  0x10   : > { %s7985_s22 = smov (!%p333_p5, %s6448_s22), 1  ;;  %5551 = vmatprep.subr.bf16.mxu0 %v6262_v8  ;;  %v6269_v15 = vld [vmem:[%s7956_s2 + $0x98] sm:$0xff]   ;;  %v6273_v19 = vld [vmem:[%s7956_s2 + $0xa0] sm:$0xff]   ;;  %v6277_v23 = vld [vmem:[%s7956_s2 + $0xa8] sm:$0xff]   ;;  %s7987_s28 = smov (!%p6708_p8, %s5546_s28), 19 }
  0x11   : > { %5626 = vmatpush3.bf16.msra.mxu1 %v6261_v7  ;;  %s5156_s10 = sshll.u32 %s7985_s22, 5  ;;  %s6210_s19 = smul.u32 60, %s7985_s22  ;;  %v6278_v24 = vld [vmem:[%s7956_s2 + $0x70] sm:$0xff]   ;;  %v6282_v28 = vld [vmem:[%s7956_s2 + $0x78] sm:$0xff]   ;;  %v6286_v38 = vld [vmem:[%s7956_s2 + $0x140] sm:$0xff]  }
  0x12   : > { %s367_s14 = scalar_select %p366_p7, %s6546_s12, 15  ;;  %5627 = vmatprep.subr.bf16.mxu1 %v6264_v10  ;;  %v6279_v25 = vld [vmem:[%s7956_s2 + $0x30] sm:$0xff]   ;;  %v6283_v29 = vld [vmem:[%s7956_s2 + $0x38] sm:$0xff]   ;;  %v6287_v42 = vld [vmem:[%s7956_s2 + $0x100] sm:$0xff]  }
  0x13   : > { %5552 = vmatpush3.bf16.msra.mxu0 %v6263_v9  ;;  %s336_s17 = scalar_select %p335_p6, %s6546_s12, 19  ;;  %v6280_v26 = vld [vmem:[%s7956_s2 + $0xf0] sm:$0xff]   ;;  %v6284_v30 = vld [vmem:[%s7956_s2 + $0xf8] sm:$0xff]   ;;  %v6288_v55 = vld [vmem:[%s7956_s2 + $0x148] sm:$0xff]  }
  0x14   : > { %s5155_s20 = sshll.u32 %s367_s14, 1  ;;  %5553 = vmatprep.subr.bf16.mxu0 %v6266_v12  ;;  %v6281_v27 = vld [vmem:[%s7956_s2 + $0xb0] sm:$0xff]   ;;  %v6285_v34 = vld [vmem:[%s7956_s2 + $0xb8] sm:$0xff]   ;;  %v6289_v56 = vld [vmem:[%s7956_s2 + $0x108] sm:$0xff]  }
  0x15   : > { %5628 = vmatpush3.bf16.msra.mxu1 %v6265_v11  ;;  %s370_s30 = sadd.s32 %s5156_s10, %s5155_s20  ;;  %s6209_s29 = smul.u32 3, %s336_s17  ;;  %v6290_v2 = vld [vmem:[%s7956_s2 + $0x150] sm:$0xff]   ;;  %vm7097_vm2 = vmand %vm1995_vm0, %vm1996_vm1 }
  0x16   : > { %s5157_s9 = sshll.u32 %s370_s30, 3  ;;  %5629 = vmatprep.subr.bf16.mxu1 %v6268_v14  ;;  %v6291_v3 = vld [vmem:[%s7956_s2 + $0x110] sm:$0xff]   ;;  %s6211_s10 = smul.u32 3, %s7987_s28  ;;  %vm7104_vm4 = vmand %vm1995_vm0, %vm2028_vm3 }
  0x17   : > { %5554 = vmatpush3.bf16.msra.mxu0 %v6267_v13  ;;  %s6601_s14 = scalar_lea.vmem %s7960_s6, %s5157_s9  ;;  %s339_s17 = sadd.s32 %s6210_s19, %s6209_s29  ;;  %v6292_v13 = vld [vmem:[%s7956_s2 + $0x158] sm:$0xff]   ;;  %vm7247_vm7 = vmand %vm2322_vm5, %vm2028_vm3 }
  0x18   : > { %5555 = vmatprep.subr.bf16.mxu0 %v6270_v16  ;;  %s5150_s8 = sshll.u32 %s339_s17, 3  ;;  %s357_s11 = sadd.s32 %s6211_s10, %s6210_s19  ;;  %vm7254_vm8 = vmor %vm1996_vm1, %vm2120_vm6 }
  0x19   : > { %5630 = vmatpush3.bf16.msra.mxu1 %v6269_v15  ;;  %s6645_s20 = scalar_lea.vmem %s7954_s0, %s5150_s8  ;;  %s5153_s15 = sshll.u32 %s357_s11, 3 }
  0x1a   : > { %5631 = vmatprep.subr.bf16.mxu1 %v6272_v18  ;;  %v415_v31 = vld [vmem:[%s6645_s20 + $0x1] sm:$0xff]  ;;  %v416_v32 = vld [vmem:[%s6645_s20 + $0x9] sm:$0xff]  ;;  %v5158_v39 = vld [vmem:[%s6645_s20 + $0x18] sm:$0xff]  ;;  %s6811_s17 = scalar_lea.vmem %s7955_s1, %s5153_s15 }
  0x1b   : > { %5556 = vmatpush3.bf16.msra.mxu0 %v6271_v17  ;;  %v431_v33 = vpack.c.bf16 %v416_v32, %v415_v31  ;;  %v375_v35 = vld [vmem:[%s6645_s20] sm:$0xff]  ;;  %v376_v36 = vld [vmem:[%s6645_s20 + $0x8] sm:$0xff]  ;;  %v5160_v48 = vld [vmem:[%s6645_s20 + $0x30] sm:$0xff] }
  0x1c   : > { %5557 = vmatprep.subr.bf16.mxu0 %v6274_v20  ;;  %v391_v37 = vpack.c.bf16 %v376_v36, %v375_v35  ;;  %v5159_v40 = vld [vmem:[%s6645_s20 + $0x20] sm:$0xff]  ;;  %v456_v44 = vld [vmem:[%s6645_s20 + $0xa] sm:$0xff]  ;;  %v5161_v49 = vld [vmem:[%s6645_s20 + $0x38] sm:$0xff] }
  0x1d   : > { %5632 = vmatpush3.bf16.msra.mxu1 %v6273_v19  ;;  %1442 = vmatprep.mubr.bf16.mxu0 %v431_v33  ;;  %v510_v41 = vpack.c.bf16 %v5159_v40, %v5158_v39  ;;  %v455_v43 = vld [vmem:[%s6645_s20 + $0x2] sm:$0xff]  ;;  %v417_v45 = vld [vmem:[%s6645_s20 + $0x19] sm:$0xff]  ;;  %v6676_v51 = vpack.c.bf16 %v5161_v49, %v5160_v48  ;;  %v419_v57 = vld [vmem:[%s6645_s20 + $0x31] sm:$0xff] }
  0x1e   : > { %5633 = vmatprep.subr.bf16.mxu1 %v6276_v22  ;;  %v471_v46 = vpack.c.bf16 %v456_v44, %v455_v43  ;;  %v418_v47 = vld [vmem:[%s6645_s20 + $0x21] sm:$0xff]  ;;  %v420_v58 = vld [vmem:[%s6645_s20 + $0x39] sm:$0xff]  ;;  %v5163_v60 = vld [vmem:[%s6645_s20 + $0x50] sm:$0xff] }
  0x1f   : > { %5558 = vmatpush3.bf16.msra.mxu0 %v6275_v21  ;;  %1555 = vmatprep.mubr.bf16.mxu1 %v510_v41  ;;  %v6674_v50 = vpack.c.bf16 %v418_v47, %v417_v45  ;;  %v457_v52 = vld [vmem:[%s6645_s20 + $0x1a] sm:$0xff]  ;;  %v458_v53 = vld [vmem:[%s6645_s20 + $0x22] sm:$0xff]  ;;  %v6695_v61 = vpack.c.bf16 %v420_v58, %v419_v57  ;;  %v459_v63 = vld [vmem:[%s6645_s20 + $0x32] sm:$0xff] }
  0x20   : > { %5559 = vmatprep.subr.bf16.mxu0 %v6278_v24  ;;  %v6680_v54 = vpack.c.bf16 %v458_v53, %v457_v52  ;;  %v5162_v59 = vld [vmem:[%s6645_s20 + $0x48] sm:$0xff]  ;;  %v460_v0 = vld [vmem:[%s6645_s20 + $0x3a] sm:$0xff]  ;;  %v422_v5 = vld [vmem:[%s6645_s20 + $0x51] sm:$0xff] }
  0x21   : > { %5634 = vmatpush3.bf16.msra.mxu1 %v6277_v23  ;;  %v6697_v62 = vpack.c.bf16 %v5163_v60, %v5162_v59  ;;  %v6701_v1 = vpack.c.bf16 %v460_v0, %v459_v63  ;;  %v421_v4 = vld [vmem:[%s6645_s20 + $0x49] sm:$0xff]  ;;  %v5164_v6 = vld [vmem:[%s6645_s20 + $0x60] sm:$0xff]  ;;  %v462_v11 = vld [vmem:[%s6645_s20 + $0x52] sm:$0xff] }
  0x22   : > { %5635 = vmatprep.subr.bf16.mxu1 %v6280_v26  ;;  %v5165_v7 = vld [vmem:[%s6645_s20 + $0x68] sm:$0xff]  ;;  %v6720_v8 = vpack.c.bf16 %v422_v5, %v421_v4  ;;  %v6293_v17 = vld [vmem:[%s7956_s2 + $0x118] sm:$0xff]   ;;  %v5167_v19 = vld [vmem:[%s6645_s20 + $0x80] sm:$0xff] }
  0x23   : > { %5560 = vmatpush3.bf16.msra.mxu0 %v6279_v25  ;;  %v6722_v9 = vpack.c.bf16 %v5165_v7, %v5164_v6  ;;  %v461_v10 = vld [vmem:[%s6645_s20 + $0x4a] sm:$0xff]  ;;  %v423_v14 = vld [vmem:[%s6645_s20 + $0x61] sm:$0xff]  ;;  %v5166_v18 = vld [vmem:[%s6645_s20 + $0x78] sm:$0xff] }
  0x24   : > { %5561 = vmatprep.subr.bf16.mxu0 %v6282_v28  ;;  %v6727_v12 = vpack.c.bf16 %v462_v11, %v461_v10  ;;  %v424_v15 = vld [vmem:[%s6645_s20 + $0x69] sm:$0xff]  ;;  %v6748_v20 = vpack.c.bf16 %v5167_v19, %v5166_v18  ;;  %v6294_v24 = vld [vmem:[%s7956_s2 + $0x1c0] sm:$0xff]   ;;  %v5169_v31 = vld [vmem:[%s6645_s20 + $0x98] sm:$0xff] }
  0x25   : > { %5636 = vmatpush3.bf16.msra.mxu1 %v6281_v27  ;;  %v6741_v16 = vpack.c.bf16 %v424_v15, %v423_v14  ;;  %v463_v21 = vld [vmem:[%s6645_s20 + $0x62] sm:$0xff]  ;;  %v464_v22 = vld [vmem:[%s6645_s20 + $0x6a] sm:$0xff]  ;;  %v425_v26 = vld [vmem:[%s6645_s20 + $0x79] sm:$0xff] }
  0x26   : > { %5637 = vmatprep.subr.bf16.mxu1 %v6284_v30  ;;  %v6752_v23 = vpack.c.bf16 %v464_v22, %v463_v21  ;;  %v6295_v25 = vld [vmem:[%s7956_s2 + $0x180] sm:$0xff]   ;;  %v5168_v30 = vld [vmem:[%s6645_s20 + $0x90] sm:$0xff]  ;;  %v6300_v48 = vld [vmem:[%s7956_s2 + $0x168] sm:$0xff]  }
  0x27   : > { %5562 = vmatpush3.bf16.msra.mxu0 %v6283_v29  ;;  %v426_v27 = vld [vmem:[%s6645_s20 + $0x81] sm:$0xff]  ;;  %v6773_v32 = vpack.c.bf16 %v5169_v31, %v5168_v30  ;;  %v428_v39 = vld [vmem:[%s6645_s20 + $0x99] sm:$0xff]  ;;  %v5171_v43 = vld [vmem:[%s6645_s20 + $0xb0] sm:$0xff] }
  0x28   : > { %5699 = vmatprep.subr.bf16.mxu0 %v6286_v38  ;;  %v6765_v28 = vpack.c.bf16 %v426_v27, %v425_v26  ;;  %v6296_v29 = vld [vmem:[%s7956_s2 + $0x160] sm:$0xff]   ;;  %v427_v38 = vld [vmem:[%s6645_s20 + $0x91] sm:$0xff]  ;;  %v6301_v49 = vld [vmem:[%s7956_s2 + $0x128] sm:$0xff]  }
  0x29   : > { %5638 = vmatpush3.bf16.msra.mxu1 %v6285_v34  ;;  %v6297_v33 = vld [vmem:[%s7956_s2 + $0x120] sm:$0xff]   ;;  %v6790_v40 = vpack.c.bf16 %v428_v39, %v427_v38  ;;  %v467_v45 = vld [vmem:[%s6645_s20 + $0x92] sm:$0xff]  ;;  %v429_v52 = vld [vmem:[%s6645_s20 + $0xa9] sm:$0xff] }
  0x2a   : > { %1443 = vmatmul.mubr.bf16.vlgmr.msra.gmra.mrb[0].mxu0 %v391_v37  ;;  %5775 = vmatprep.subr.bf16.mxu1 %v6294_v24  ;;  %v465_v34 = vld [vmem:[%s6645_s20 + $0x7a] sm:$0xff]  ;;  %v466_v35 = vld [vmem:[%s6645_s20 + $0x82] sm:$0xff]  ;;  %v430_v53 = vld [vmem:[%s6645_s20 + $0xb1] sm:$0xff] }
  0x2b   : > { %5700 = vmatpush3.bf16.msra.mxu0 %v6287_v42  ;;  %1450 = vmatprep.mubr.bf16.mxu0 %v6674_v50  ;;  %v6783_v36 = vpack.c.bf16 %v466_v35, %v465_v34  ;;  %v6298_v37 = vld [vmem:[%s7956_s2 + $0x1c8] sm:$0xff]   ;;  %v524_v57 = vld [vmem:[%s6811_s17] sm:$0xff]  ;;  %v6303_v60 = vld [vmem:[%s7956_s2 + $0x190] sm:$0xff]  }
  0x2c   : > { %1556 = vmatmul.mubr.bf16.vlgmr.msra.gmra.mrb[0].mxu1 %v471_v46  ;;  %5701 = vmatprep.subr.bf16.mxu0 %v6288_v55  ;;  %v5170_v42 = vld [vmem:[%s6645_s20 + $0xa8] sm:$0xff]  ;;  %v468_v46 = vld [vmem:[%s6645_s20 + $0x9a] sm:$0xff]  ;;  %v6820_v55 = vpack.c.bf16 %v430_v53, %v429_v52  ;;  %v470_v0 = vld [vmem:[%s6645_s20 + $0xb2] sm:$0xff] }
  0x2d   : > { %1563 = vmatprep.mubr.bf16.mxu1 %v6676_v51  ;;  %5776 = vmatpush3.bf16.msra.mxu1 %v6295_v25  ;;  %v6798_v44 = vpack.c.bf16 %v5171_v43, %v5170_v42  ;;  %v6803_v47 = vpack.c.bf16 %v468_v46, %v467_v45  ;;  %v525_v58 = vld [vmem:[%s6811_s17 + $0x8] sm:$0xff]  ;;  %v6305_v4 = vld [vmem:[%s7956_s2 + $0x130] sm:$0xff]   ;;  %v6306_v5 = vld [vmem:[%s7956_s2 + $0x1d8] sm:$0xff]  }
  0x2e   : > { %5777 = vmatprep.subr.bf16.mxu1 %v6298_v37  ;;  %v6827_v59 = vpack.c.bf16 %v525_v58, %v524_v57  ;;  %v469_v63 = vld [vmem:[%s6645_s20 + $0xaa] sm:$0xff]  ;;  %v447_v6 = vld [vmem:[%s6811_s17 + $0x1] sm:$0xff]  ;;  %v6307_v11 = vld [vmem:[%s7956_s2 + $0x198] sm:$0xff]  }
  0x2f   : > { %5702 = vmatpush3.bf16.msra.mxu0 %v6289_v56  ;;  %v6302_v56 = vld [vmem:[%s7956_s2 + $0x1d0] sm:$0xff]   ;;  %v527_v14 = vld [vmem:[%s6811_s17 + $0x20] sm:$0xff]  ;;  %v6310_v24 = vld [vmem:[%s7956_s2 + $0x178] sm:$0xff]  }
  0x30   : > { %5703 = vmatprep.subr.bf16.mxu0 %v6290_v2  ;;  %v6834_v2 = vpack.c.bf16 %v470_v0, %v469_v63  ;;  %v448_v7 = vld [vmem:[%s6811_s17 + $0x9] sm:$0xff]  ;;  %v6308_v21 = vld [vmem:[%s7956_s2 + $0x1e0] sm:$0xff]   ;;  %v6312_v30 = vld [vmem:[%s7956_s2 + $0x138] sm:$0xff]  }
  0x31   : > { %v6850_v10 = vpack.c.bf16 %v448_v7, %v447_v6  ;;  %v488_v18 = vld [vmem:[%s6811_s17 + $0xa] sm:$0xff]  ;;  %v6309_v22 = vld [vmem:[%s7956_s2 + $0x1a0] sm:$0xff]   ;;  %v529_v34 = vld [vmem:[%s6811_s17 + $0x38] sm:$0xff] }
  0x32   : > { %1451 = vmatmul.mubr.bf16.gmra.mrb[4].mxu0 %v510_v41  ;;  %v6299_v41 = vld [vmem:[%s7956_s2 + $0x188] sm:$0xff]   ;;  %v449_v26 = vld [vmem:[%s6811_s17 + $0x19] sm:$0xff]  ;;  %v6315_v42 = vld [vmem:[%s7956_s2 + $0x1b0] sm:$0xff]  }
  0x33   : > { %1458 = vmatprep.mubr.bf16.mxu0 %v6695_v61  ;;  %5704 = vmatpush3.bf16.msra.mxu0 %v6291_v3  ;;  %v6304_v3 = vld [vmem:[%s7956_s2 + $0x170] sm:$0xff]   ;;  %v6311_v25 = vld [vmem:[%s7956_s2 + $0x1e8] sm:$0xff]   ;;  %v489_v37 = vld [vmem:[%s6811_s17 + $0x1a] sm:$0xff] }
  0x34   : > { %1564 = vmatmul.mubr.bf16.gmra.mrb[4].mxu1 %v6680_v54  ;;  %5705 = vmatprep.subr.bf16.mxu0 %v6292_v13  ;;  %v526_v13 = vld [vmem:[%s6811_s17 + $0x18] sm:$0xff]  ;;  %v450_v27 = vld [vmem:[%s6811_s17 + $0x21] sm:$0xff]  ;;  %v6928_v58 = vld [vmem:[%s6811_s17 + $0x49] sm:$0xff] }
  0x35   : > { %1571 = vmatprep.mubr.bf16.mxu1 %v6697_v62  ;;  %5778 = vmatpush3.bf16.msra.mxu1 %v6299_v41  ;;  %v6858_v15 = vpack.c.bf16 %v527_v14, %v526_v13  ;;  %v6313_v31 = vld [vmem:[%s7956_s2 + $0x1a8] sm:$0xff]   ;;  %v6314_v41 = vld [vmem:[%s7956_s2 + $0x1f0] sm:$0xff]   ;;  %v6316_v43 = vld [vmem:[%s7956_s2 + $0x1f8] sm:$0xff]  }
  0x36   : > { %5779 = vmatprep.subr.bf16.mxu1 %v6302_v56  ;;  %v490_v38 = vld [vmem:[%s6811_s17 + $0x22] sm:$0xff]  ;;  %v6317_v45 = vld [vmem:[%s7956_s2 + $0x1b8] sm:$0xff]  }
  0x37   : > { %5706 = vmatpush3.bf16.msra.mxu0 %v6293_v17  ;;  %v487_v17 = vld [vmem:[%s6811_s17 + $0x2] sm:$0xff]  ;;  %v6896_v39 = vpack.c.bf16 %v490_v38, %v489_v37  ;;  %v608_v53 = vld [vmem:[%s6811_s17 + $0x32] sm:$0xff]  ;;  %v609_v56 = vld [vmem:[%s6811_s17 + $0x3a] sm:$0xff] }
  0x38   : > { %5707 = vmatprep.subr.bf16.mxu0 %v6296_v29  ;;  %v6862_v19 = vpack.c.bf16 %v488_v18, %v487_v17  ;;  %v6880_v29 = vpack.c.bf16 %v450_v27, %v449_v26  ;;  %v6318_v46 = vld [vmem:[%s7956_s2 + $0x200] sm:$0xff]   ;;  %v6925_v57 = vpack.c.bf16 %v609_v56, %v608_v53  ;;  %v6934_v63 = vld [vmem:[%s6811_s17 + $0x48] sm:$0xff]  ;;  %v6957_v13 = vld [vmem:[%s6645_s20 + $0x52] sm:$0xff] }
  0x39   : > { %5780 = vmatpush3.bf16.msra.mxu1 %v6303_v60  ;;  %v6931_v60 = vld [vmem:[%s6811_s17 + $0x51] sm:$0xff]  ;;  %v6960_v14 = vld [vmem:[%s6645_s20 + $0x62] sm:$0xff] }
  0x3a   : > { %1459 = vmatmul.mubr.bf16.gmra.mrb[8].mxu0 %v6676_v51  ;;  %5781 = vmatprep.subr.bf16.mxu1 %v6306_v5  ;;  %v692_v0 = vpack.c.bf16 %v6931_v60, %v6928_v58  ;;  %v6946_v5 = vld [vmem:[%s6645_s20 + $0x3a] sm:$0xff]  ;;  %v6965_v18 = vld [vmem:[%s6645_s20 + $0x6a] sm:$0xff] }
  0x3b   : > { %1466 = vmatprep.mubr.bf16.mxu0 %v6720_v8  ;;  %5708 = vmatpush3.bf16.msra.mxu0 %v6297_v33  ;;  %v528_v33 = vld [vmem:[%s6811_s17 + $0x30] sm:$0xff]  ;;  %v6319_v26 = vld [vmem:[%s7956_s2 + $0x208] sm:$0xff]  }
  0x3c   : > { %1572 = vmatmul.mubr.bf16.gmra.mrb[8].mxu1 %v6701_v1  ;;  %5709 = vmatprep.subr.bf16.mxu0 %v6300_v48  ;;  %v6892_v35 = vpack.c.bf16 %v529_v34, %v528_v33  ;;  %v685_v48 = vld [vmem:[%s6811_s17 + $0x31] sm:$0xff] }
  0x3d   : > { %1579 = vmatprep.mubr.bf16.mxu1 %v6722_v9  ;;  %5782 = vmatpush3.bf16.msra.mxu1 %v6307_v11  ;;  %v6954_v11 = vld [vmem:[%s6645_s20 + $0x4a] sm:$0xff] }
  0x3e   : > { %5783 = vmatprep.subr.bf16.mxu1 %v6308_v21  ;;  %v710_v17 = vpack.c.bf16 %v6957_v13, %v6954_v11  ;;  %v6968_v21 = vld [vmem:[%s6811_s17 + $0x4a] sm:$0xff] }
  0x3f   : > { %5710 = vmatpush3.bf16.msra.mxu0 %v6301_v49  ;;  %v686_v49 = vld [vmem:[%s6811_s17 + $0x39] sm:$0xff]  ;;  %v6320_v27 = vld [vmem:[%s7956_s2 + $0x210] sm:$0xff]  }
  0x40   : > { %5711 = vmatprep.subr.bf16.mxu0 %v6304_v3  ;;  %v6921_v52 = vpack.c.bf16 %v686_v49, %v685_v48  ;;  %v6940_v3 = vld [vmem:[%s6811_s17 + $0x50] sm:$0xff] }
  0x41   : > { %5784 = vmatpush3.bf16.msra.mxu1 %v6309_v22  ;;  %v652_v6 = vpack.c.bf16 %v6940_v3, %v6934_v63  ;;  %v6971_v22 = vld [vmem:[%s6811_s17 + $0x52] sm:$0xff] }
  0x42   : > { %1467 = vmatmul.mubr.bf16.gmra.mrb[12].mxu0 %v6697_v62  ;;  %5785 = vmatprep.subr.bf16.mxu1 %v6311_v25  ;;  %v732_v25 = vpack.c.bf16 %v6971_v22, %v6968_v21 }
  0x43   : > { %1474 = vmatprep.mubr.bf16.mxu0 %v6741_v16  ;;  %5712 = vmatpush3.bf16.msra.mxu0 %v6305_v4  ;;  %v6943_v4 = vld [vmem:[%s6645_s20 + $0x32] sm:$0xff] }
  0x44   : > { %1580 = vmatmul.mubr.bf16.gmra.mrb[12].mxu1 %v6727_v12  ;;  %5713 = vmatprep.subr.bf16.mxu0 %v6310_v24  ;;  %v709_v7 = vpack.c.bf16 %v6946_v5, %v6943_v4  ;;  %v711_v24 = vpack.c.bf16 %v6965_v18, %v6960_v14 }
  0x45   : > { %1587 = vmatprep.mubr.bf16.mxu1 %v6748_v20  ;;  %5786 = vmatpush3.bf16.msra.mxu1 %v6313_v31 }
  0x46   : > { %5787 = vmatprep.subr.bf16.mxu1 %v6314_v41 }
  0x47   : > { %5714 = vmatpush3.bf16.msra.mxu0 %v6312_v30 }
  0x48   : > { %6141 = vmatprep.subr.bf16.mxu0 %v6318_v46 }
  0x49   : > { %5788 = vmatpush3.bf16.msra.mxu1 %v6315_v42 }
  0x4a   : > { %1475 = vmatmul.mubr.bf16.gmra.mrb[16].mxu0 %v6722_v9  ;;  %5789 = vmatprep.subr.bf16.mxu1 %v6316_v43 }
  0x4b   : > { %1482 = vmatprep.mubr.bf16.mxu0 %v6765_v28 }
  0x4c   : > { %1588 = vmatmul.mubr.bf16.gmra.mrb[16].mxu1 %v6752_v23 }
  0x4d   : > { %1595 = vmatprep.mubr.bf16.mxu1 %v6773_v32  ;;  %5790 = vmatpush3.bf16.msra.mxu1 %v6317_v45 }
  0x52   : > { %1483 = vmatmul.mubr.bf16.gmra.mrb[20].mxu0 %v6748_v20 }
  0x53   : > { %1490 = vmatprep.mubr.bf16.mxu0 %v6790_v40 }
  0x54   : > { %1596 = vmatmul.mubr.bf16.gmra.mrb[20].mxu1 %v6783_v36 }
  0x55   : > { %1603 = vmatprep.mubr.bf16.mxu1 %v6798_v44 }
  0x5a   : > { %1491 = vmatmul.mubr.bf16.gmra.mrb[24].mxu0 %v6773_v32 }
  0x5b   : > { %1498 = vmatprep.mubr.bf16.mxu0 %v6820_v55 }
  0x5c   : > { %1604 = vmatmul.mubr.bf16.gmra.mrb[24].mxu1 %v6803_v47 }
  0x5d   : > { %1611 = vmatprep.mubr.bf16.mxu1 %v6827_v59 }
  0x62   : > { %1499 = vmatmul.mubr.bf16.gmra.mrb[28].mxu0 %v6798_v44 }
  0x63   : > { %1506 = vmatprep.mubr.bf16.mxu0 %v6850_v10 }
  0x64   : > { %1612 = vmatmul.mubr.bf16.gmra.mrb[28].mxu1 %v6834_v2 }
  0x65   : > { %1619 = vmatprep.mubr.bf16.mxu1 %v6858_v15 }
  0x6a   : > { %1507 = vmatmul.mubr.bf16.gmra.mrb[32].mxu0 %v6827_v59 }
  0x6b   : > { %1514 = vmatprep.mubr.bf16.mxu0 %v6880_v29 }
  0x6c   : > { %1620 = vmatmul.mubr.bf16.gmra.mrb[32].mxu1 %v6862_v19 }
  0x6d   : > { %1627 = vmatprep.mubr.bf16.mxu1 %v6892_v35 }
  0x72   : > { %1515 = vmatmul.mubr.bf16.gmra.mrb[36].mxu0 %v6858_v15 }
  0x73   : > { %1668 = vmatprep.mubr.bf16.mxu0 %v6680_v54  ;;  %v6321_v54 = vld [vmem:[%s7956_s2 + $0x218] sm:$0xff]  }
  0x74   : > { %1628 = vmatmul.mubr.bf16.gmra.mrb[36].mxu1 %v6896_v39 }
  0x75   : > { %1781 = vmatprep.mubr.bf16.mxu1 %v6695_v61 }
  0x7a   : > { %1669 = vmatmul.mubr.bf16.vlgmr.msra.gmra.mrb[40].mxu0 %v6674_v50  ;;  %v6322_v50 = vld [vmem:[%s7956_s2 + $0x220] sm:$0xff]  }
  0x7b   : > { %6142 = vmatpush3.bf16.msra.mxu0 %v6318_v46  ;;  %1676 = vmatprep.mubr.bf16.mxu0 %v6701_v1 }
  0x7c   : > { %6143 = vmatprep.subr.bf16.mxu0 %v6319_v26  ;;  %1782 = vmatmul.mubr.bf16.vlgmr.msra.gmra.mrb[40].mxu1 %v6676_v51  ;;  %v6323_v51 = vld [vmem:[%s7956_s2 + $0x228] sm:$0xff]  }
  0x7d   : > { %1789 = vmatprep.mubr.bf16.mxu1 %v6720_v8 }
  0x7f   : > { %6144 = vmatpush3.bf16.msra.mxu0 %v6319_v26 }
  0x80   : > { %6145 = vmatprep.subr.bf16.mxu0 %v6320_v27 }
  0x82   : > { %1677 = vmatmul.mubr.bf16.gmra.mrb[44].mxu0 %v6695_v61  ;;  %v6324_v61 = vld [vmem:[%s7956_s2 + $0x230] sm:$0xff]  }
  0x83   : > { %1684 = vmatprep.mubr.bf16.mxu0 %v6727_v12  ;;  %6146 = vmatpush3.bf16.msra.mxu0 %v6320_v27 }
  0x84   : > { %6147 = vmatprep.subr.bf16.mxu0 %v6321_v54  ;;  %1790 = vmatmul.mubr.bf16.gmra.mrb[44].mxu1 %v6697_v62  ;;  %v6325_v62 = vld [vmem:[%s7956_s2 + $0x238] sm:$0xff]  }
  0x85   : > { %1797 = vmatprep.mubr.bf16.mxu1 %v6741_v16 }
  0x87   : > { %6148 = vmatpush3.bf16.msra.mxu0 %v6321_v54 }
  0x88   : > { %6149 = vmatprep.subr.bf16.mxu0 %v6322_v50 }
  0x8a   : > { %1685 = vmatmul.mubr.bf16.gmra.mrb[48].mxu0 %v6720_v8  ;;  %v7069_v8 = vld [vmem:[%s7957_s3] ss:$0 sm:$0xff] }
  0x8b   : > { %1692 = vmatprep.mubr.bf16.mxu0 %v6752_v23  ;;  %6150 = vmatpush3.bf16.msra.mxu0 %v6322_v50 }
  0x8c   : > { %6151 = vmatprep.subr.bf16.mxu0 %v6323_v51  ;;  %1798 = vmatmul.mubr.bf16.gmra.mrb[48].mxu1 %v6722_v9 }
  0x8d   : > { %1805 = vmatprep.mubr.bf16.mxu1 %v6765_v28 }
  0x8f   : > { %6152 = vmatpush3.bf16.msra.mxu0 %v6323_v51 }
  0x90   : > { %6153 = vmatprep.subr.bf16.mxu0 %v6324_v61 }
  0x92   : > { %1693 = vmatmul.mubr.bf16.gmra.mrb[52].mxu0 %v6741_v16 }
  0x93   : > { %1700 = vmatprep.mubr.bf16.mxu0 %v6783_v36  ;;  %6154 = vmatpush3.bf16.msra.mxu0 %v6324_v61 }
  0x94   : > { %6155 = vmatprep.subr.bf16.mxu0 %v6325_v62  ;;  %1806 = vmatmul.mubr.bf16.gmra.mrb[52].mxu1 %v6748_v20 }
  0x95   : > { %1813 = vmatprep.mubr.bf16.mxu1 %v6790_v40 }
  0x97   : > { %6156 = vmatpush3.bf16.msra.mxu0 %v6325_v62 }
  0x9a   : > { %1701 = vmatmul.mubr.bf16.gmra.mrb[56].mxu0 %v6765_v28 }
  0x9b   : > { %1708 = vmatprep.mubr.bf16.mxu0 %v6803_v47 }
  0x9c   : > { %1814 = vmatmul.mubr.bf16.gmra.mrb[56].mxu1 %v6773_v32 }
  0x9d   : > { %1821 = vmatprep.mubr.bf16.mxu1 %v6820_v55 }
  0xa2   : > { %1709 = vmatmul.mubr.bf16.gmra.mrb[60].mxu0 %v6790_v40 }
  0xa3   : > { %1716 = vmatprep.mubr.bf16.mxu0 %v6834_v2 }
  0xa4   : > { %1822 = vmatmul.mubr.bf16.gmra.mrb[60].mxu1 %v6798_v44 }
  0xa5   : > { %1829 = vmatprep.mubr.bf16.mxu1 %v6850_v10 }
  0xaa   : > { %1717 = vmatmul.mubr.bf16.gmra.mrb[64].mxu0 %v6820_v55 }
  0xab   : > { %1724 = vmatprep.mubr.bf16.mxu0 %v6862_v19 }
  0xac   : > { %1830 = vmatmul.mubr.bf16.gmra.mrb[64].mxu1 %v6827_v59 }
  0xad   : > { %1837 = vmatprep.mubr.bf16.mxu1 %v6880_v29 }
  0xb2   : > { %1725 = vmatmul.mubr.bf16.gmra.mrb[68].mxu0 %v6850_v10 }
  0xb3   : > { %1732 = vmatprep.mubr.bf16.mxu0 %v6896_v39 }
  0xb4   : > { %1838 = vmatmul.mubr.bf16.gmra.mrb[68].mxu1 %v6858_v15 }
  0xb5   : > { %1845 = vmatprep.mubr.bf16.mxu1 %v6921_v52 }
  0xba   : > { %1733 = vmatmul.mubr.bf16.gmra.mrb[72].mxu0 %v6880_v29 }
  0xbb   : > { %1740 = vmatprep.mubr.bf16.mxu0 %v6925_v57 }
  0xbc   : > { %1846 = vmatmul.mubr.bf16.gmra.mrb[72].mxu1 %v6892_v35 }
  0xbd   : > { %1853 = vmatprep.mubr.bf16.mxu1 %v692_v0 }
  0xc2   : > { %1741 = vmatmul.mubr.bf16.gmra.mrb[76].mxu0 %v6921_v52 }
  0xc3   : > { %6157 = vmatprep.mubr.bf16.mxu0 %v709_v7 }
  0xc4   : > { %1854 = vmatmul.mubr.bf16.gmra.mrb[76].mxu1 %v652_v6 }
  0xca   : > { %6158 = vmatmul.mubr.bf16.vlgmr.msra.gmra.mrb[80].mxu0 %v710_v17 }
  0xcb   : > { %6161 = vmatprep.mubr.bf16.mxu0 %v711_v24 }
  0xd2   : > { %6162 = vmatmul.mubr.bf16.gmra.mrb[84].mxu0 %v6783_v36 }
  0xd3   : > { %6165 = vmatprep.mubr.bf16.mxu0 %v6803_v47 }
  0xda   : > { %6166 = vmatmul.mubr.bf16.gmra.mrb[88].mxu0 %v6834_v2 }
  0xdb   : > { %6169 = vmatprep.mubr.bf16.mxu0 %v6862_v19 }
  0xe2   : > { %6170 = vmatmul.mubr.bf16.gmra.mrb[92].mxu0 %v6896_v39 }
  0xe3   : > { %6173 = vmatprep.mubr.bf16.mxu0 %v6925_v57 }
  0xea   : > { %6174 = vmatmul.mubr.bf16.gmra.mrb[96].mxu0 %v732_v25 }
  0xfd   : > { %v5563_v1 = vpop.f32.mrb[0].mxu0 }
  0xfe   : > { %v5564_v9 = vpop.f32.mrb[1].mxu0 }
  0xff   : > { %v5565_v12 = vadd.f32 %v5564_v9, %v5563_v1  ;;  %v5566_v16 = vpop.f32.mrb[2].mxu0  ;;  %v5639_v20 = vpop.f32.mrb[0].mxu1 }
 0x100   : > { %v5567_v23 = vpop.f32.mrb[3].mxu0  ;;  %v5640_v36 = vpop.f32.mrb[1].mxu1 }
 0x101   : > { %v1445_v28 = vadd.f32 %v5565_v12, %v7069_v8  ;;  %v5568_v32 = vadd.f32 %v5567_v23, %v5566_v16  ;;  %v5641_v40 = vadd.f32 %v5640_v36, %v5639_v20  ;;  %v5642_v44 = vpop.f32.mrb[2].mxu1 }
 0x102   : > { %v5643_v55 = vpop.f32.mrb[3].mxu1 }
 0x103   : > { %v1448_v47 = vadd.f32 %v5568_v32, %v7069_v8  ;;  %v7073_v59 = vadd.f32 %v5641_v40, %v1445_v28  ;;  %v5644_v2 = vadd.f32 %v5643_v55, %v5642_v44 }
 0x105   : > { %v5569_v10 = vpop.f32.mrb[4].mxu0  ;;  %v7075_v15 = vadd.f32 %v5644_v2, %v1448_v47  ;;  %v2001_v47 = vld [vmem:[#allocation2 + $0xc] sm:$0x1] }
 0x106   : > { %v5570_v19 = vpop.f32.mrb[5].mxu0 }
 0x107   : > { %v5571_v29 = vadd.f32 %v5570_v19, %v5569_v10  ;;  %v5572_v30 = vpop.f32.mrb[6].mxu0  ;;  %v5645_v31 = vpop.f32.mrb[4].mxu1  ;;  %v2002_v10 = vsel %vm7097_vm2, 0, %v2001_v47 }
 0x108   : > { %v5573_v33 = vpop.f32.mrb[7].mxu0  ;;  %v5646_v37 = vpop.f32.mrb[5].mxu1  ;;  %2003 = vst [vmem:[#allocation2 + $0xc] sm:$0x1] %v2002_v10 }
 0x109   : > { %v1453_v34 = vadd.f32 %v5571_v29, %v7069_v8  ;;  %v5574_v35 = vadd.f32 %v5573_v33, %v5572_v30  ;;  %v5647_v38 = vadd.f32 %v5646_v37, %v5645_v31  ;;  %v5648_v39 = vpop.f32.mrb[6].mxu1  ;;  %v1998_v29 = vld [vmem:[#allocation2] sm:$0x1] }
 0x10a   : > { %v5649_v42 = vpop.f32.mrb[7].mxu1  ;;  %v1999_v33 = vsel %vm7097_vm2, 0, %v1998_v29  ;;  %v2013_v29 = vld [vmem:[#allocation2 + $0x3c] sm:$0x1] }
 0x10b   : > { %v1456_v41 = vadd.f32 %v5574_v35, %v7069_v8  ;;  %v7079_v43 = vadd.f32 %v5647_v38, %v1453_v34  ;;  %v5650_v45 = vadd.f32 %v5649_v42, %v5648_v39  ;;  %v2033_v34 = vld [vmem:[#allocation2 + $0x14] sm:$0x1]  ;;  %2000 = vst [vmem:[#allocation2] sm:$0x1] %v1999_v33  ;;  %v2030_v39 = vld [vmem:[#allocation2 + $0x8] sm:$0x1] }
 0x10c   : > { %v2034_v38 = vsel %vm7104_vm4, 0, %v2033_v34  ;;  %v2031_v42 = vsel %vm7104_vm4, 0, %v2030_v39  ;;  %v2014_v33 = vsel %vm7097_vm2, 0, %v2013_v29  ;;  %v2010_v34 = vld [vmem:[#allocation2 + $0x30] sm:$0x1] }
 0x10d   : > { %v5575_v46 = vpop.f32.mrb[8].mxu0  ;;  %v7081_v48 = vadd.f32 %v5650_v45, %v1456_v41  ;;  %2035 = vst [vmem:[#allocation2 + $0x14] sm:$0x1] %v2034_v38  ;;  %2032 = vst [vmem:[#allocation2 + $0x8] sm:$0x1] %v2031_v42  ;;  %v2011_v39 = vsel %vm7097_vm2, 0, %v2010_v34 }
 0x10e   : > { %v5576_v49 = vpop.f32.mrb[9].mxu0  ;;  %2015 = vst [vmem:[#allocation2 + $0x3c] sm:$0x1] %v2014_v33  ;;  %2012 = vst [vmem:[#allocation2 + $0x30] sm:$0x1] %v2011_v39 }
 0x10f   : > { %v5577_v52 = vadd.f32 %v5576_v49, %v5575_v46  ;;  %v5578_v53 = vpop.f32.mrb[10].mxu0  ;;  %v5651_v56 = vpop.f32.mrb[8].mxu1  ;;  %v2025_v33 = vld [vmem:[#allocation2 + $0x6c] sm:$0x1] }
 0x110   : > { %v5579_v57 = vpop.f32.mrb[11].mxu0  ;;  %v5652_v63 = vpop.f32.mrb[9].mxu1 }
 0x111   : > { %v1461_v58 = vadd.f32 %v5577_v52, %v7069_v8  ;;  %v5580_v60 = vadd.f32 %v5579_v57, %v5578_v53  ;;  %v5653_v0 = vadd.f32 %v5652_v63, %v5651_v56  ;;  %v5654_v3 = vpop.f32.mrb[10].mxu1  ;;  %v2007_v63 = vld [vmem:[#allocation2 + $0x24] sm:$0x1] }
 0x112   : > { %v5655_v5 = vpop.f32.mrb[11].mxu1 }
 0x113   : > { %v1464_v4 = vadd.f32 %v5580_v60, %v7069_v8  ;;  %v7085_v6 = vadd.f32 %v5653_v0, %v1461_v58  ;;  %v5656_v7 = vadd.f32 %v5655_v5, %v5654_v3  ;;  %v2004_v5 = vld [vmem:[#allocation2 + $0x18] sm:$0x1] }
 0x115   : > { %v5581_v11 = vpop.f32.mrb[12].mxu0  ;;  %v7087_v13 = vadd.f32 %v5656_v7, %v1464_v4  ;;  %v2008_v4 = vsel %vm7097_vm2, 0, %v2007_v63 }
 0x116   : > { %v5582_v14 = vpop.f32.mrb[13].mxu0  ;;  %2009 = vst [vmem:[#allocation2 + $0x24] sm:$0x1] %v2008_v4 }
 0x117   : > { %v5583_v17 = vadd.f32 %v5582_v14, %v5581_v11  ;;  %v5584_v18 = vpop.f32.mrb[14].mxu0  ;;  %v5657_v21 = vpop.f32.mrb[12].mxu1  ;;  %v2005_v14 = vsel %vm7097_vm2, 0, %v2004_v5 }
 0x118   : > { %v5585_v22 = vpop.f32.mrb[15].mxu0  ;;  %v5658_v26 = vpop.f32.mrb[13].mxu1  ;;  %2006 = vst [vmem:[#allocation2 + $0x18] sm:$0x1] %v2005_v14 }
 0x119   : > { %v1469_v24 = vadd.f32 %v5583_v17, %v7069_v8  ;;  %v5586_v25 = vadd.f32 %v5585_v22, %v5584_v18  ;;  %v5659_v27 = vadd.f32 %v5658_v26, %v5657_v21  ;;  %v5660_v54 = vpop.f32.mrb[14].mxu1 }
 0x11a   : > { %v5661_v51 = vpop.f32.mrb[15].mxu1 }
 0x11b   : > { %v1472_v50 = vadd.f32 %v5586_v25, %v7069_v8  ;;  %v7091_v61 = vadd.f32 %v5659_v27, %v1469_v24  ;;  %v5662_v62 = vadd.f32 %v5661_v51, %v5660_v54 }
 0x11d   : > { %v5587_v1 = vpop.f32.mrb[16].mxu0  ;;  %v7093_v9 = vadd.f32 %v5662_v62, %v1472_v50  ;;  %v2039_v50 = vld [vmem:[#allocation2 + $0x2c] sm:$0x1] }
 0x11e   : > { %v5588_v12 = vpop.f32.mrb[17].mxu0 }
 0x11f   : > { %v5589_v16 = vadd.f32 %v5588_v12, %v5587_v1  ;;  %v5590_v20 = vpop.f32.mrb[18].mxu0  ;;  %v5663_v23 = vpop.f32.mrb[16].mxu1  ;;  %v2040_v12 = vsel %vm7104_vm4, 0, %v2039_v50  ;;  %v2016_v50 = vld [vmem:[#allocation2 + $0x48] sm:$0x1] }
 0x120   : > { %v5591_v28 = vpop.f32.mrb[19].mxu0  ;;  %v5664_v40 = vpop.f32.mrb[17].mxu1  ;;  %2041 = vst [vmem:[#allocation2 + $0x2c] sm:$0x1] %v2040_v12  ;;  %v2017_v12 = vsel %vm7097_vm2, 0, %v2016_v50 }
 0x121   : > { %v1477_v32 = vadd.f32 %v5589_v16, %v7069_v8  ;;  %v5592_v36 = vadd.f32 %v5591_v28, %v5590_v20  ;;  %v5665_v55 = vadd.f32 %v5664_v40, %v5663_v23  ;;  %v5666_v2 = vpop.f32.mrb[18].mxu1  ;;  %v2036_v16 = vld [vmem:[#allocation2 + $0x20] sm:$0x1]  ;;  %2018 = vst [vmem:[#allocation2 + $0x48] sm:$0x1] %v2017_v12 }
 0x122   : > { %v5667_v31 = vpop.f32.mrb[19].mxu1  ;;  %v2037_v28 = vsel %vm7104_vm4, 0, %v2036_v16 }
 0x123   : > { %v1480_v30 = vadd.f32 %v5592_v36, %v7069_v8  ;;  %v7111_v35 = vadd.f32 %v5665_v55, %v1477_v32  ;;  %v5668_v37 = vadd.f32 %v5667_v31, %v5666_v2  ;;  %2038 = vst [vmem:[#allocation2 + $0x20] sm:$0x1] %v2037_v28  ;;  %v2048_v28 = vld [vmem:[#allocation2 + $0x50] sm:$0x1] }
 0x125   : > { %v5593_v41 = vpop.f32.mrb[20].mxu0  ;;  %v7117_v45 = vadd.f32 %v5668_v37, %v1480_v30 }
 0x126   : > { %v5594_v46 = vpop.f32.mrb[21].mxu0 }
 0x127   : > { %v5595_v49 = vadd.f32 %v5594_v46, %v5593_v41  ;;  %v5596_v52 = vpop.f32.mrb[22].mxu0  ;;  %v5669_v53 = vpop.f32.mrb[20].mxu1  ;;  %v2045_v41 = vld [vmem:[#allocation2 + $0x44] sm:$0x1] }
 0x128   : > { %v5597_v56 = vpop.f32.mrb[23].mxu0  ;;  %v5670_v60 = vpop.f32.mrb[21].mxu1 }
 0x129   : > { %v1485_v57 = vadd.f32 %v5595_v49, %v7069_v8  ;;  %v5598_v58 = vadd.f32 %v5597_v56, %v5596_v52  ;;  %v5671_v0 = vadd.f32 %v5670_v60, %v5669_v53  ;;  %v5672_v3 = vpop.f32.mrb[22].mxu1  ;;  %v2046_v52 = vsel %vm7104_vm4, 0, %v2045_v41 }
 0x12a   : > { %v5673_v11 = vpop.f32.mrb[23].mxu1  ;;  %2047 = vst [vmem:[#allocation2 + $0x44] sm:$0x1] %v2046_v52 }
 0x12b   : > { %v1488_v7 = vadd.f32 %v5598_v58, %v7069_v8  ;;  %v7125_v17 = vadd.f32 %v5671_v0, %v1485_v57  ;;  %v5674_v18 = vadd.f32 %v5673_v11, %v5672_v3  ;;  %v2042_v57 = vld [vmem:[#allocation2 + $0x38] sm:$0x1] }
 0x12c   : > { %v2043_v63 = vsel %vm7104_vm4, 0, %v2042_v57 }
 0x12d   : > { %v5599_v21 = vpop.f32.mrb[24].mxu0  ;;  %v7127_v22 = vadd.f32 %v5674_v18, %v1488_v7  ;;  %2044 = vst [vmem:[#allocation2 + $0x38] sm:$0x1] %v2043_v63  ;;  %v2019_v18 = vld [vmem:[#allocation2 + $0x54] sm:$0x1] }
 0x12e   : > { %v5600_v24 = vpop.f32.mrb[25].mxu0  ;;  %v2057_v63 = vld [vmem:[#allocation2 + $0x74] sm:$0x1] }
 0x12f   : > { %v5601_v25 = vadd.f32 %v5600_v24, %v5599_v21  ;;  %v5602_v26 = vpop.f32.mrb[26].mxu0  ;;  %v5675_v27 = vpop.f32.mrb[24].mxu1 }
 0x130   : > { %v5603_v54 = vpop.f32.mrb[27].mxu0  ;;  %v5676_v1 = vpop.f32.mrb[25].mxu1 }
 0x131   : > { %v1493_v51 = vadd.f32 %v5601_v25, %v7069_v8  ;;  %v5604_v62 = vadd.f32 %v5603_v54, %v5602_v26  ;;  %v5677_v20 = vadd.f32 %v5676_v1, %v5675_v27  ;;  %v5678_v23 = vpop.f32.mrb[26].mxu1  ;;  %v2020_v25 = vsel %vm7097_vm2, 0, %v2019_v18 }
 0x132   : > { %v5679_v36 = vpop.f32.mrb[27].mxu1  ;;  %2021 = vst [vmem:[#allocation2 + $0x54] sm:$0x1] %v2020_v25 }
 0x133   : > { %v1496_v32 = vadd.f32 %v5604_v62, %v7069_v8  ;;  %v7135_v40 = vadd.f32 %v5677_v20, %v1493_v51  ;;  %v5680_v47 = vadd.f32 %v5679_v36, %v5678_v23  ;;  %v2051_v51 = vld [vmem:[#allocation2 + $0x5c] sm:$0x1] }
 0x134   : > { %v2052_v16 = vsel %vm7104_vm4, 0, %v2051_v51 }
 0x135   : > { %v5605_v55 = vpop.f32.mrb[28].mxu0  ;;  %v7137_v2 = vadd.f32 %v5680_v47, %v1496_v32  ;;  %2053 = vst [vmem:[#allocation2 + $0x5c] sm:$0x1] %v2052_v16  ;;  %v2049_v47 = vsel %vm7104_vm4, 0, %v2048_v28 }
 0x136   : > { %v5606_v10 = vpop.f32.mrb[29].mxu0  ;;  %2050 = vst [vmem:[#allocation2 + $0x50] sm:$0x1] %v2049_v47 }
 0x137   : > { %v5607_v30 = vadd.f32 %v5606_v10, %v5605_v55  ;;  %v5608_v31 = vpop.f32.mrb[30].mxu0  ;;  %v5681_v37 = vpop.f32.mrb[28].mxu1 }
 0x138   : > { %v5609_v38 = vpop.f32.mrb[31].mxu0  ;;  %v5682_v49 = vpop.f32.mrb[29].mxu1 }
 0x139   : > { %v1501_v42 = vadd.f32 %v5607_v30, %v7069_v8  ;;  %v5610_v46 = vadd.f32 %v5609_v38, %v5608_v31  ;;  %v5683_v53 = vadd.f32 %v5682_v49, %v5681_v37  ;;  %v5684_v56 = vpop.f32.mrb[30].mxu1  ;;  %v2026_v38 = vsel %vm7097_vm2, 0, %v2025_v33 }
 0x13a   : > { %v5685_v60 = vpop.f32.mrb[31].mxu1  ;;  %2027 = vst [vmem:[#allocation2 + $0x6c] sm:$0x1] %v2026_v38 }
 0x13b   : > { %v1504_v58 = vadd.f32 %v5610_v46, %v7069_v8  ;;  %v7149_v0 = vadd.f32 %v5683_v53, %v1501_v42  ;;  %v5686_v3 = vadd.f32 %v5685_v60, %v5684_v56  ;;  %v2022_v46 = vld [vmem:[#allocation2 + $0x60] sm:$0x1] }
 0x13c   : > { %v2023_v53 = vsel %vm7097_vm2, 0, %v2022_v46 }
 0x13d   : > { %v5611_v4 = vpop.f32.mrb[32].mxu0  ;;  %v7151_v5 = vadd.f32 %v5686_v3, %v1504_v58  ;;  %2024 = vst [vmem:[#allocation2 + $0x60] sm:$0x1] %v2023_v53 }
 0x13e   : > { %v5612_v7 = vpop.f32.mrb[33].mxu0 }
 0x13f   : > { %v5613_v11 = vadd.f32 %v5612_v7, %v5611_v4  ;;  %v5614_v14 = vpop.f32.mrb[34].mxu0  ;;  %v5687_v21 = vpop.f32.mrb[32].mxu1  ;;  %v2058_v4 = vsel %vm7104_vm4, 0, %v2057_v63 }
 0x140   : > { %v5615_v24 = vpop.f32.mrb[35].mxu0  ;;  %v5688_v54 = vpop.f32.mrb[33].mxu1  ;;  %2059 = vst [vmem:[#allocation2 + $0x74] sm:$0x1] %v2058_v4 }
 0x141   : > { %v1509_v26 = vadd.f32 %v5613_v11, %v7069_v8  ;;  %v5616_v27 = vadd.f32 %v5615_v24, %v5614_v14  ;;  %v5689_v62 = vadd.f32 %v5688_v54, %v5687_v21  ;;  %v5690_v1 = vpop.f32.mrb[34].mxu1  ;;  %v2054_v14 = vld [vmem:[#allocation2 + $0x68] sm:$0x1] }
 0x142   : > { %v5691_v23 = vpop.f32.mrb[35].mxu1 }
 0x143   : > { %v1512_v20 = vadd.f32 %v5616_v27, %v7069_v8  ;;  %v7161_v32 = vadd.f32 %v5689_v62, %v1509_v26  ;;  %v5692_v36 = vadd.f32 %v5691_v23, %v5690_v1 }
 0x145   : > { %v5617_v55 = vpop.f32.mrb[36].mxu0  ;;  %v7165_v10 = vadd.f32 %v5692_v36, %v1512_v20 }
 0x146   : > { %v5618_v29 = vpop.f32.mrb[37].mxu0 }
 0x147   : > { %v5619_v30 = vadd.f32 %v5618_v29, %v5617_v55  ;;  %v5620_v31 = vpop.f32.mrb[38].mxu0  ;;  %v5693_v34 = vpop.f32.mrb[36].mxu1 }
 0x148   : > { %v5621_v37 = vpop.f32.mrb[39].mxu0  ;;  %v5694_v42 = vpop.f32.mrb[37].mxu1 }
 0x149   : > { %v1517_v39 = vadd.f32 %v5619_v30, %v7069_v8  ;;  %v5622_v41 = vadd.f32 %v5621_v37, %v5620_v31  ;;  %v5695_v49 = vadd.f32 %v5694_v42, %v5693_v34  ;;  %v5696_v52 = vpop.f32.mrb[38].mxu1 }
 0x14a   : > { %v5697_v57 = vpop.f32.mrb[39].mxu1 }
 0x14b   : > { %v1520_v56 = vadd.f32 %v5622_v41, %v7069_v8  ;;  %v7173_v58 = vadd.f32 %v5695_v49, %v1517_v39  ;;  %v5698_v60 = vadd.f32 %v5697_v57, %v5696_v52  ;;  %v2055_v8 = vsel %vm7104_vm4, 0, %v2054_v14 }
 0x14c   : > { %2056 = vst [vmem:[#allocation2 + $0x68] sm:$0x1] %v2055_v8 }
 0x14d   : > { %v5715_v3 = vpop.f32.mrb[40].mxu0  ;;  %v7177_v7 = vadd.f32 %v5698_v60, %v1520_v56 }
 0x14e   : > { %v5716_v11 = vpop.f32.mrb[41].mxu0 }
 0x14f   : > { %v5717_v18 = vadd.f32 %v5716_v11, %v5715_v3  ;;  %v5718_v21 = vpop.f32.mrb[42].mxu0  ;;  %v5791_v24 = vpop.f32.mrb[40].mxu1 }
 0x150   : > { %v5719_v25 = vpop.f32.mrb[43].mxu0  ;;  %v5792_v54 = vpop.f32.mrb[41].mxu1 }
 0x151   : > { %v1671_v26 = vadd.f32 %v5717_v18, %v7073_v59  ;;  %v5720_v27 = vadd.f32 %v5719_v25, %v5718_v21  ;;  %v5793_v50 = vadd.f32 %v5792_v54, %v5791_v24  ;;  %v5794_v51 = vpop.f32.mrb[42].mxu1 }
 0x152   : > { %v5795_v1 = vpop.f32.mrb[43].mxu1 }
 0x153   : > { %v1674_v62 = vadd.f32 %v5720_v27, %v7075_v15  ;;  %v5796_v12 = vadd.f32 %v5795_v1, %v5794_v51  ;;  %v7183_v16 = vadd.f32 %v5793_v50, %v1671_v26 }
 0x155   : > { %v5721_v20 = vpop.f32.mrb[44].mxu0  ;;  %v7185_v28 = vadd.f32 %v5796_v12, %v1674_v62 }
 0x156   : > { %v5722_v23 = vpop.f32.mrb[45].mxu0 }
 0x157   : > { %v5723_v19 = vadd.f32 %v5722_v23, %v5721_v20  ;;  %v5724_v36 = vpop.f32.mrb[46].mxu0  ;;  %v5797_v47 = vpop.f32.mrb[44].mxu1 }
 0x158   : > { %v5725_v55 = vpop.f32.mrb[47].mxu0  ;;  %v5798_v30 = vpop.f32.mrb[45].mxu1 }
 0x159   : > { %v1679_v59 = vadd.f32 %v5723_v19, %v7079_v43  ;;  %v5726_v29 = vadd.f32 %v5725_v55, %v5724_v36  ;;  %v5799_v31 = vadd.f32 %v5798_v30, %v5797_v47  ;;  %v5800_v33 = vpop.f32.mrb[46].mxu1 }
 0x15a   : > { %v5801_v34 = vpop.f32.mrb[47].mxu1 }
 0x15b   : > { %v1682_v15 = vadd.f32 %v5726_v29, %v7081_v48  ;;  %v5802_v37 = vadd.f32 %v5801_v34, %v5800_v33  ;;  %v7189_v38 = vadd.f32 %v5799_v31, %v1679_v59 }
 0x15d   : > { %v5727_v39 = vpop.f32.mrb[48].mxu0  ;;  %v7191_v42 = vadd.f32 %v5802_v37, %v1682_v15 }
 0x15e   : > { %v5728_v41 = vpop.f32.mrb[49].mxu0 }
 0x15f   : > { %v5729_v46 = vadd.f32 %v5728_v41, %v5727_v39  ;;  %v5730_v49 = vpop.f32.mrb[50].mxu0  ;;  %v5803_v52 = vpop.f32.mrb[48].mxu1 }
 0x160   : > { %v5731_v53 = vpop.f32.mrb[51].mxu0  ;;  %v5804_v57 = vpop.f32.mrb[49].mxu1 }
 0x161   : > { %v1687_v43 = vadd.f32 %v5729_v46, %v7085_v6  ;;  %v5732_v56 = vadd.f32 %v5731_v53, %v5730_v49  ;;  %v5805_v60 = vadd.f32 %v5804_v57, %v5803_v52  ;;  %v5806_v63 = vpop.f32.mrb[50].mxu1 }
 0x162   : > { %v5807_v3 = vpop.f32.mrb[51].mxu1 }
 0x163   : > { %v1690_v48 = vadd.f32 %v5732_v56, %v7087_v13  ;;  %v5808_v4 = vadd.f32 %v5807_v3, %v5806_v63  ;;  %v7195_v11 = vadd.f32 %v5805_v60, %v1687_v43 }
 0x165   : > { %v5733_v14 = vpop.f32.mrb[52].mxu0  ;;  %v7197_v21 = vadd.f32 %v5808_v4, %v1690_v48 }
 0x166   : > { %v5734_v18 = vpop.f32.mrb[53].mxu0 }
 0x167   : > { %v5735_v8 = vadd.f32 %v5734_v18, %v5733_v14  ;;  %v5736_v24 = vpop.f32.mrb[54].mxu0  ;;  %v5809_v25 = vpop.f32.mrb[52].mxu1 }
 0x168   : > { %v5737_v26 = vpop.f32.mrb[55].mxu0  ;;  %v5810_v54 = vpop.f32.mrb[53].mxu1 }
 0x169   : > { %v1695_v6 = vadd.f32 %v5735_v8, %v7091_v61  ;;  %v5738_v27 = vadd.f32 %v5737_v26, %v5736_v24  ;;  %v5811_v50 = vadd.f32 %v5810_v54, %v5809_v25  ;;  %v5812_v51 = vpop.f32.mrb[54].mxu1 }
 0x16a   : > { %v5813_v62 = vpop.f32.mrb[55].mxu1 }
 0x16b   : > { %v1698_v13 = vadd.f32 %v5738_v27, %v7093_v9  ;;  %v5814_v1 = vadd.f32 %v5813_v62, %v5812_v51  ;;  %v7201_v12 = vadd.f32 %v5811_v50, %v1695_v6 }
 0x16d   : > { %v5739_v20 = vpop.f32.mrb[56].mxu0  ;;  %v7203_v19 = vadd.f32 %v5814_v1, %v1698_v13 }
 0x16e   : > { %v5740_v23 = vpop.f32.mrb[57].mxu0 }
 0x16f   : > { %v5741_v36 = vadd.f32 %v5740_v23, %v5739_v20  ;;  %v5742_v47 = vpop.f32.mrb[58].mxu0  ;;  %v5815_v55 = vpop.f32.mrb[56].mxu1 }
 0x170   : > { %v5743_v59 = vpop.f32.mrb[59].mxu0  ;;  %v5816_v30 = vpop.f32.mrb[57].mxu1 }
 0x171   : > { %v1703_v61 = vadd.f32 %v5741_v36, %v7111_v35  ;;  %v5744_v29 = vadd.f32 %v5743_v59, %v5742_v47  ;;  %v5817_v31 = vadd.f32 %v5816_v30, %v5815_v55  ;;  %v5818_v33 = vpop.f32.mrb[58].mxu1 }
 0x172   : > { %v5819_v15 = vpop.f32.mrb[59].mxu1 }
 0x173   : > { %v1706_v9 = vadd.f32 %v5744_v29, %v7117_v45  ;;  %v5820_v34 = vadd.f32 %v5819_v15, %v5818_v33  ;;  %v7207_v37 = vadd.f32 %v5817_v31, %v1703_v61 }
 0x175   : > { %v5745_v39 = vpop.f32.mrb[60].mxu0  ;;  %v7209_v46 = vadd.f32 %v5820_v34, %v1706_v9 }
 0x176   : > { %v5746_v41 = vpop.f32.mrb[61].mxu0 }
 0x177   : > { %v5747_v49 = vadd.f32 %v5746_v41, %v5745_v39  ;;  %v5748_v52 = vpop.f32.mrb[62].mxu0  ;;  %v5821_v53 = vpop.f32.mrb[60].mxu1 }
 0x178   : > { %v5749_v43 = vpop.f32.mrb[63].mxu0  ;;  %v5822_v57 = vpop.f32.mrb[61].mxu1 }
 0x179   : > { %v1711_v35 = vadd.f32 %v5747_v49, %v7125_v17  ;;  %v5750_v56 = vadd.f32 %v5749_v43, %v5748_v52  ;;  %v5823_v60 = vadd.f32 %v5822_v57, %v5821_v53  ;;  %v5824_v63 = vpop.f32.mrb[62].mxu1 }
 0x17a   : > { %v5825_v48 = vpop.f32.mrb[63].mxu1 }
 0x17b   : > { %v1714_v45 = vadd.f32 %v5750_v56, %v7127_v22  ;;  %v5826_v3 = vadd.f32 %v5825_v48, %v5824_v63  ;;  %v7213_v4 = vadd.f32 %v5823_v60, %v1711_v35 }
 0x17d   : > { %v5751_v14 = vpop.f32.mrb[64].mxu0  ;;  %v7215_v8 = vadd.f32 %v5826_v3, %v1714_v45 }
 0x17e   : > { %v5752_v18 = vpop.f32.mrb[65].mxu0 }
 0x17f   : > { %v5753_v24 = vadd.f32 %v5752_v18, %v5751_v14  ;;  %v5754_v25 = vpop.f32.mrb[66].mxu0  ;;  %v5827_v26 = vpop.f32.mrb[64].mxu1 }
 0x180   : > { %v5755_v6 = vpop.f32.mrb[67].mxu0  ;;  %v5828_v54 = vpop.f32.mrb[65].mxu1 }
 0x181   : > { %v1719_v17 = vadd.f32 %v5753_v24, %v7135_v40  ;;  %v5756_v27 = vadd.f32 %v5755_v6, %v5754_v25  ;;  %v5829_v50 = vadd.f32 %v5828_v54, %v5827_v26  ;;  %v5830_v51 = vpop.f32.mrb[66].mxu1 }
 0x182   : > { %v5831_v13 = vpop.f32.mrb[67].mxu1 }
 0x183   : > { %v1722_v22 = vadd.f32 %v5756_v27, %v7137_v2  ;;  %v5832_v62 = vadd.f32 %v5831_v13, %v5830_v51  ;;  %v7219_v1 = vadd.f32 %v5829_v50, %v1719_v17 }
 0x185   : > { %v5757_v20 = vpop.f32.mrb[68].mxu0  ;;  %v7221_v36 = vadd.f32 %v5832_v62, %v1722_v22 }
 0x186   : > { %v5758_v23 = vpop.f32.mrb[69].mxu0 }
 0x187   : > { %v5759_v47 = vadd.f32 %v5758_v23, %v5757_v20  ;;  %v5760_v55 = vpop.f32.mrb[70].mxu0  ;;  %v5833_v59 = vpop.f32.mrb[68].mxu1 }
 0x188   : > { %v5761_v61 = vpop.f32.mrb[71].mxu0  ;;  %v5834_v30 = vpop.f32.mrb[69].mxu1 }
 0x189   : > { %v1727_v40 = vadd.f32 %v5759_v47, %v7149_v0  ;;  %v5762_v29 = vadd.f32 %v5761_v61, %v5760_v55  ;;  %v5835_v31 = vadd.f32 %v5834_v30, %v5833_v59  ;;  %v5836_v33 = vpop.f32.mrb[70].mxu1 }
 0x18a   : > { %v5837_v9 = vpop.f32.mrb[71].mxu1 }
 0x18b   : > { %v1730_v2 = vadd.f32 %v5762_v29, %v7151_v5  ;;  %v5838_v15 = vadd.f32 %v5837_v9, %v5836_v33  ;;  %v7225_v34 = vadd.f32 %v5835_v31, %v1727_v40 }
 0x18d   : > { %v5763_v39 = vpop.f32.mrb[72].mxu0  ;;  %v7227_v49 = vadd.f32 %v5838_v15, %v1730_v2 }
 0x18e   : > { %v5764_v41 = vpop.f32.mrb[73].mxu0 }
 0x18f   : > { %v5765_v52 = vadd.f32 %v5764_v41, %v5763_v39  ;;  %v5766_v53 = vpop.f32.mrb[74].mxu0  ;;  %v5839_v43 = vpop.f32.mrb[72].mxu1 }
 0x190   : > { %v5767_v35 = vpop.f32.mrb[75].mxu0  ;;  %v5840_v57 = vpop.f32.mrb[73].mxu1 }
 0x191   : > { %v1735_v0 = vadd.f32 %v5765_v52, %v7161_v32  ;;  %v5768_v56 = vadd.f32 %v5767_v35, %v5766_v53  ;;  %v5841_v60 = vadd.f32 %v5840_v57, %v5839_v43  ;;  %v5842_v63 = vpop.f32.mrb[74].mxu1  ;;  %v2331_v57 = vld [vmem:[#allocation2 + $0xc] sm:$0xf] }
 0x192   : > { %v5843_v45 = vpop.f32.mrb[75].mxu1 }
 0x193   : > { %v1738_v5 = vadd.f32 %v5768_v56, %v7165_v10  ;;  %v5844_v48 = vadd.f32 %v5843_v45, %v5842_v63  ;;  %v7231_v3 = vadd.f32 %v5841_v60, %v1735_v0 }
 0x195   : > { %v5769_v14 = vpop.f32.mrb[76].mxu0  ;;  %v7233_v24 = vadd.f32 %v5844_v48, %v1738_v5 }
 0x196   : > { %v5770_v18 = vpop.f32.mrb[77].mxu0 }
 0x197   : > { %v5771_v25 = vadd.f32 %v5770_v18, %v5769_v14  ;;  %v5772_v26 = vpop.f32.mrb[78].mxu0  ;;  %v5845_v6 = vpop.f32.mrb[76].mxu1 }
 0x198   : > { %v5773_v17 = vpop.f32.mrb[79].mxu0  ;;  %v5846_v54 = vpop.f32.mrb[77].mxu1 }
 0x199   : > { %v1743_v32 = vadd.f32 %v5771_v25, %v7173_v58  ;;  %v5774_v27 = vadd.f32 %v5773_v17, %v5772_v26  ;;  %v5847_v50 = vadd.f32 %v5846_v54, %v5845_v6  ;;  %v5848_v51 = vpop.f32.mrb[78].mxu1  ;;  %v2324_v25 = vld [vmem:[#allocation2] sm:$0xf]  ;;  %v2335_v54 = vld [vmem:[#allocation2 + $0x14] sm:$0x1] }
 0x19a   : > { %v5849_v22 = vpop.f32.mrb[79].mxu1 }
 0x19b   : > { %v1746_v10 = vadd.f32 %v5774_v27, %v7177_v7  ;;  %v5850_v13 = vadd.f32 %v5849_v22, %v5848_v51  ;;  %v7237_v62 = vadd.f32 %v5847_v50, %v1743_v32 }
 0x19d   : > { %v6159_v20 = vpop.f32.mrb[80].mxu0  ;;  %v7240_v55 = vadd.f32 %v5850_v13, %v1746_v10  ;;  %v2328_v13 = vld [vmem:[#allocation2 + $0x8] sm:$0x1] }
 0x19e   : > { %v1905_v23 = vadd.f32 %v6159_v20, %v7189_v38  ;;  %v1896_v47 = vpop.f32.mrb[81].mxu0 }
 0x19f   : > { %v1897_v59 = vadd.f32 %v1896_v47, %v7183_v16  ;;  %v6160_v61 = vpop.f32.mrb[82].mxu0 }
 0x1a0   : > { %v1977_v58 = vmax.f32 %v1905_v23, 0.0  ;;  %v1908_v40 = vadd.f32 %v6160_v61, %v7191_v42  ;;  %v1899_v29 = vpop.f32.mrb[83].mxu0 }
 0x1a1   : > { %v1975_v30 = vmax.f32 %v1897_v59, 0.0  ;;  %v1900_v7 = vadd.f32 %v1899_v29, %v7185_v28 }
 0x1a2   : > { %v5527_v31 = vpack.c.bf16 %v1977_v58, %v1977_v58  ;;  %v1978_v33 = vmax.f32 %v1908_v40, 0.0 }
 0x1a3   : > { %v5525_v2 = vpack.c.bf16 %v1975_v30, %v1975_v30  ;;  %v1976_v9 = vmax.f32 %v1900_v7, 0.0 }
 0x1a4   : > { %v2140_v15 = vshrl.u32 %v5527_v31, 16  ;;  %v5528_v38 = vpack.c.bf16 %v1978_v33, %v1978_v33  ;;  %v2143_v39 = vshll.u32 %v5527_v31, 16 }
 0x1a5   : > { %v2123_v41 = vshrl.u32 %v5525_v2, 16  ;;  %v2126_v52 = vshll.u32 %v5525_v2, 16  ;;  %v5526_v16 = vpack.c.bf16 %v1976_v9, %v1976_v9  ;;  %v6163_v53 = vpop.f32.mrb[84].mxu0 }
 0x1a6   : > { %v2142_v43 = vrot.slane %v2140_v15, 7  ;;  %v2148_v35 = vshrl.u32 %v5528_v38, 16  ;;  %v2151_v42 = vshll.u32 %v5528_v38, 16  ;;  %v1921_v0 = vadd.f32 %v6163_v53, %v7201_v12  ;;  %v1912_v56 = vpop.f32.mrb[85].mxu0 }
 0x1a7   : > { %v2125_v60 = vrot.slane %v2123_v41, 7  ;;  %v2131_v63 = vshrl.u32 %v5526_v16, 16  ;;  %v2134_v5 = vshll.u32 %v5526_v16, 16  ;;  %v1913_v45 = vadd.f32 %v1912_v56, %v7195_v11  ;;  %v6164_v48 = vpop.f32.mrb[86].mxu0  ;;  %v2338_v56 = vld [vmem:[#allocation2 + $0x18] sm:$0xf] }
 0x1a8   : > { %v2145_v14 = vor.u32 %v2143_v39, %v2142_v43  ;;  %v2146_v18 = vrot.slane %v2142_v43, 4  ;;  %v2150_v26 = vrot.slane %v2148_v35, 7  ;;  %v1981_v6 = vmax.f32 %v1921_v0, 0.0  ;;  %v1915_v17 = vpop.f32.mrb[87].mxu0 }
 0x1a9   : > { %v2128_v12 = vor.u32 %v2126_v52, %v2125_v60  ;;  %v2129_v32 = vrot.slane %v2125_v60, 4  ;;  %v2133_v50 = vrot.slane %v2131_v63, 7  ;;  %v1979_v51 = vmax.f32 %v1913_v45, 0.0  ;;  %v2345_v52 = vld [vmem:[#allocation2 + $0x24] sm:$0xf] }
 0x1aa   : > { %v2332_v11 = vsel %vm7247_vm7, %v2145_v14, %v2331_v57  ;;  %v2153_v10 = vor.u32 %v2151_v42, %v2150_v26  ;;  %v2155_v22 = vrot.slane %v2150_v26, 4  ;;  %v5531_v20 = vpack.c.bf16 %v1981_v6, %v1981_v6 }
 0x1ab   : > { %2333 = vst [vmem:[#allocation2 + $0xc] sm:$0xf] %v2332_v11  ;;  %v2325_v23 = vsel %vm7247_vm7, %v2128_v12, %v2324_v25  ;;  %v2136_v47 = vor.u32 %v2134_v5, %v2133_v50  ;;  %v2138_v59 = vrot.slane %v2133_v50, 4  ;;  %v5529_v61 = vpack.c.bf16 %v1979_v51, %v1979_v51  ;;  %v2349_v50 = vld [vmem:[#allocation2 + $0x2c] sm:$0x1] }
 0x1ac   : > { %2326 = vst [vmem:[#allocation2] sm:$0xf] %v2325_v23  ;;  %v2154_v58 = vsel %vm7254_vm8, %v2146_v18, %v2153_v10  ;;  %v2336_v40 = vsel %vm7097_vm2, %v2155_v22, %v2335_v54  ;;  %v2174_v29 = vshrl.u32 %v5531_v20, 16  ;;  %v2177_v31 = vshll.u32 %v5531_v20, 16  ;;  %v2342_v51 = vld [vmem:[#allocation2 + $0x20] sm:$0x1] }
 0x1ad   : > { %2334 = vst [vmem:[#allocation2 + $0x10] sm:$0xf] %v2154_v58  ;;  %2337 = vst [vmem:[#allocation2 + $0x14] sm:$0x1] %v2336_v40  ;;  %v2137_v30 = vsel %vm7254_vm8, %v2129_v32, %v2136_v47  ;;  %v2329_v7 = vsel %vm7097_vm2, %v2138_v59, %v2328_v13  ;;  %v2157_v33 = vshrl.u32 %v5529_v61, 16  ;;  %v6167_v2 = vpop.f32.mrb[88].mxu0  ;;  %v1924_v15 = vadd.f32 %v6164_v48, %v7203_v19 }
 0x1ae   : > { %2327 = vst [vmem:[#allocation2 + $0x4] sm:$0xf] %v2137_v30  ;;  %2330 = vst [vmem:[#allocation2 + $0x8] sm:$0x1] %v2329_v7  ;;  %v7270_v9 = vrot.slane %v2174_v29, 7  ;;  %v1916_v38 = vadd.f32 %v1915_v17, %v7197_v21  ;;  %v1937_v39 = vadd.f32 %v6167_v2, %v7213_v4  ;;  %v1928_v41 = vpop.f32.mrb[89].mxu0 }
 0x1af   : > { %v2159_v16 = vrot.slane %v2157_v33, 7  ;;  %v2160_v53 = vshll.u32 %v5529_v61, 16  ;;  %v1929_v43 = vadd.f32 %v1928_v41, %v7207_v37  ;;  %v6168_v35 = vpop.f32.mrb[90].mxu0  ;;  %v1982_v57 = vmax.f32 %v1924_v15, 0.0  ;;  %v2352_v15 = vld [vmem:[#allocation2 + $0x30] sm:$0xf] }
 0x1b0   : > { %v2179_v42 = vor.u32 %v2177_v31, %v7270_v9  ;;  %v2180_v0 = vrot.slane %v7270_v9, 4  ;;  %v1980_v60 = vmax.f32 %v1916_v38, 0.0  ;;  %v1931_v63 = vpop.f32.mrb[91].mxu0  ;;  %v1985_v21 = vmax.f32 %v1937_v39, 0.0 }
 0x1b1   : > { %v2162_v19 = vor.u32 %v2160_v53, %v2159_v16  ;;  %v2163_v5 = vrot.slane %v2159_v16, 4  ;;  %v1983_v45 = vmax.f32 %v1929_v43, 0.0  ;;  %v5532_v48 = vpack.c.bf16 %v1982_v57, %v1982_v57 }
 0x1b2   : > { %v2346_v4 = vsel %vm7247_vm7, %v2179_v42, %v2345_v52  ;;  %v5530_v14 = vpack.c.bf16 %v1980_v60, %v1980_v60  ;;  %v1940_v37 = vadd.f32 %v6168_v35, %v7215_v8  ;;  %v5535_v25 = vpack.c.bf16 %v1985_v21, %v1985_v21 }
 0x1b3   : > { %2347 = vst [vmem:[#allocation2 + $0x24] sm:$0xf] %v2346_v4  ;;  %v2339_v18 = vsel %vm7247_vm7, %v2162_v19, %v2338_v56  ;;  %v5533_v26 = vpack.c.bf16 %v1983_v45, %v1983_v45  ;;  %v1932_v6 = vadd.f32 %v1931_v63, %v7209_v46  ;;  %v2182_v17 = vshrl.u32 %v5532_v48, 16  ;;  %v2359_v46 = vld [vmem:[#allocation2 + $0x3c] sm:$0xf] }
 0x1b4   : > { %2340 = vst [vmem:[#allocation2 + $0x18] sm:$0xf] %v2339_v18  ;;  %v2185_v12 = vshll.u32 %v5532_v48, 16  ;;  %v2165_v32 = vshrl.u32 %v5530_v14, 16  ;;  %v2168_v54 = vshll.u32 %v5530_v14, 16  ;;  %v2208_v11 = vshrl.u32 %v5535_v25, 16 }
 0x1b5   : > { %v2211_v10 = vshll.u32 %v5535_v25, 16  ;;  %v2191_v22 = vshrl.u32 %v5533_v26, 16  ;;  %v2194_v13 = vshll.u32 %v5533_v26, 16  ;;  %v6171_v8 = vpop.f32.mrb[92].mxu0  ;;  %v2184_v20 = vrot.slane %v2182_v17, 7 }
 0x1b6   : > { %v2167_v23 = vrot.slane %v2165_v32, 7  ;;  %v1986_v47 = vmax.f32 %v1940_v37, 0.0  ;;  %v1984_v59 = vmax.f32 %v1932_v6, 0.0  ;;  %v1944_v61 = vpop.f32.mrb[93].mxu0  ;;  %v7284_v58 = vrot.slane %v2208_v11, 7 }
 0x1b7   : > { %v7286_v40 = vrot.slane %v2191_v22, 7  ;;  %v1953_v29 = vadd.f32 %v6171_v8, %v7225_v34  ;;  %v1945_v30 = vadd.f32 %v1944_v61, %v7219_v1  ;;  %v6172_v7 = vpop.f32.mrb[94].mxu0  ;;  %v2187_v31 = vor.u32 %v2185_v12, %v2184_v20  ;;  %v2363_v14 = vld [vmem:[#allocation2 + $0x44] sm:$0x1]  ;;  %v2356_v32 = vld [vmem:[#allocation2 + $0x38] sm:$0x1] }
 0x1b8   : > { %v2189_v33 = vrot.slane %v2184_v20, 4  ;;  %v2170_v2 = vor.u32 %v2168_v54, %v2167_v23  ;;  %v2172_v9 = vrot.slane %v2167_v23, 4  ;;  %v1947_v38 = vpop.f32.mrb[95].mxu0  ;;  %v2213_v39 = vor.u32 %v2211_v10, %v7284_v58 }
 0x1b9   : > { %v2214_v41 = vrot.slane %v7284_v58, 4  ;;  %v2196_v52 = vor.u32 %v2194_v13, %v7286_v40  ;;  %v2197_v16 = vrot.slane %v7286_v40, 4  ;;  %v2188_v34 = vsel %vm7254_vm8, %v2180_v0, %v2187_v31 }
 0x1ba   : > { %v2350_v1 = vsel %vm7097_vm2, %v2189_v33, %v2349_v50  ;;  %v2171_v53 = vsel %vm7254_vm8, %v2163_v5, %v2170_v2  ;;  %v2343_v43 = vsel %vm7097_vm2, %v2172_v9, %v2342_v51  ;;  %2348 = vst [vmem:[#allocation2 + $0x28] sm:$0xf] %v2188_v34  ;;  %v2360_v35 = vsel %vm7247_vm7, %v2213_v39, %v2359_v46 }
 0x1bb   : > { %2351 = vst [vmem:[#allocation2 + $0x2c] sm:$0x1] %v2350_v1  ;;  %2341 = vst [vmem:[#allocation2 + $0x1c] sm:$0xf] %v2171_v53  ;;  %v2353_v42 = vsel %vm7247_vm7, %v2196_v52, %v2352_v15  ;;  %v5536_v0 = vpack.c.bf16 %v1986_v47, %v1986_v47  ;;  %v5534_v56 = vpack.c.bf16 %v1984_v59, %v1984_v59  ;;  %v1989_v57 = vmax.f32 %v1953_v29, 0.0 }
 0x1bc   : > { %2344 = vst [vmem:[#allocation2 + $0x20] sm:$0x1] %v2343_v43  ;;  %2361 = vst [vmem:[#allocation2 + $0x3c] sm:$0xf] %v2360_v35  ;;  %v1987_v60 = vmax.f32 %v1945_v30, 0.0  ;;  %v1956_v63 = vadd.f32 %v6172_v7, %v7227_v49  ;;  %v1948_v19 = vadd.f32 %v1947_v38, %v7221_v36 }
 0x1bd   : > { %2354 = vst [vmem:[#allocation2 + $0x30] sm:$0xf] %v2353_v42  ;;  %v2216_v5 = vshrl.u32 %v5536_v0, 16  ;;  %v2219_v21 = vshll.u32 %v5536_v0, 16  ;;  %v2199_v45 = vshrl.u32 %v5534_v56, 16  ;;  %v2202_v4 = vshll.u32 %v5534_v56, 16 }
 0x1be   : > { %v6175_v48 = vpop.f32.mrb[96].mxu0  ;;  %v5539_v37 = vpack.c.bf16 %v1989_v57, %v1989_v57  ;;  %v5537_v18 = vpack.c.bf16 %v1987_v60, %v1987_v60  ;;  %v1990_v25 = vmax.f32 %v1956_v63, 0.0  ;;  %v1988_v26 = vmax.f32 %v1948_v19, 0.0  ;;  %v2373_v29 = vld [vmem:[#allocation2 + $0x54] sm:$0xf] }
 0x1bf   : > { %v1960_v6 = vpop.f32.mrb[97].mxu0  ;;  %v2218_v17 = vrot.slane %v2216_v5, 7  ;;  %v2201_v12 = vrot.slane %v2199_v45, 7  ;;  %v1969_v54 = vadd.f32 %v6175_v48, %v7237_v62  ;;  %v2366_v30 = vld [vmem:[#allocation2 + $0x48] sm:$0xf] }
 0x1c0   : > { %v1961_v49 = vadd.f32 %v1960_v6, %v7231_v3  ;;  %v6176_v50 = vpop.f32.mrb[98].mxu0  ;;  %v2242_v36 = vshrl.u32 %v5539_v37, 16  ;;  %v2245_v51 = vshll.u32 %v5539_v37, 16  ;;  %v2225_v11 = vshrl.u32 %v5537_v18, 16  ;;  %v2377_v42 = vld [vmem:[#allocation2 + $0x5c] sm:$0x1] }
 0x1c1   : > { %v2228_v10 = vshll.u32 %v5537_v18, 16  ;;  %v1963_v22 = vpop.f32.mrb[99].mxu0  ;;  %v2221_v13 = vor.u32 %v2219_v21, %v2218_v17  ;;  %v2223_v8 = vrot.slane %v2218_v17, 4  ;;  %v2204_v20 = vor.u32 %v2202_v4, %v2201_v12  ;;  %v2370_v0 = vld [vmem:[#allocation2 + $0x50] sm:$0x1] }
 0x1c2   : > { %v2206_v23 = vrot.slane %v2201_v12, 4  ;;  %v2244_v47 = vrot.slane %v2242_v36, 7  ;;  %v2227_v59 = vrot.slane %v2225_v11, 7  ;;  %v5540_v61 = vpack.c.bf16 %v1990_v25, %v1990_v25  ;;  %v2387_v17 = vld [vmem:[#allocation2 + $0x6c] sm:$0xf] }
 0x1c3   : > { %v5538_v58 = vpack.c.bf16 %v1988_v26, %v1988_v26  ;;  %v2222_v46 = vsel %vm7254_vm8, %v2214_v41, %v2221_v13  ;;  %v2364_v3 = vsel %vm7097_vm2, %v2223_v8, %v2363_v14  ;;  %v2205_v62 = vsel %vm7254_vm8, %v2197_v16, %v2204_v20  ;;  %v2380_v12 = vld [vmem:[#allocation2 + $0x60] sm:$0xf] }
 0x1c4   : > { %v2357_v40 = vsel %vm7097_vm2, %v2206_v23, %v2356_v32  ;;  %2362 = vst [vmem:[#allocation2 + $0x40] sm:$0xf] %v2222_v46  ;;  %2365 = vst [vmem:[#allocation2 + $0x44] sm:$0x1] %v2364_v3  ;;  %v2247_v7 = vor.u32 %v2245_v51, %v2244_v47  ;;  %v2230_v31 = vor.u32 %v2228_v10, %v2227_v59  ;;  %v2250_v33 = vshrl.u32 %v5540_v61, 16 }
 0x1c5   : > { %2355 = vst [vmem:[#allocation2 + $0x34] sm:$0xf] %v2205_v62  ;;  %2358 = vst [vmem:[#allocation2 + $0x38] sm:$0x1] %v2357_v40  ;;  %v2253_v2 = vshll.u32 %v5540_v61, 16  ;;  %v2233_v9 = vshrl.u32 %v5538_v58, 16  ;;  %v1972_v1 = vadd.f32 %v6176_v50, %v7240_v55  ;;  %v1964_v53 = vadd.f32 %v1963_v22, %v7233_v24 }
 0x1c6   : > { %v2236_v15 = vshll.u32 %v5538_v58, 16  ;;  %v2374_v38 = vsel %vm7247_vm7, %v2247_v7, %v2373_v29  ;;  %v2367_v39 = vsel %vm7247_vm7, %v2230_v31, %v2366_v30  ;;  %v1993_v41 = vmax.f32 %v1969_v54, 0.0  ;;  %v2384_v61 = vld [vmem:[#allocation2 + $0x68] sm:$0x1] }
 0x1c7   : > { %v1991_v52 = vmax.f32 %v1961_v49, 0.0  ;;  %2375 = vst [vmem:[#allocation2 + $0x54] sm:$0xf] %v2374_v38  ;;  %2368 = vst [vmem:[#allocation2 + $0x48] sm:$0xf] %v2367_v39  ;;  %v2252_v16 = vrot.slane %v2250_v33, 7 }
 0x1c8   : > { %v2235_v34 = vrot.slane %v2233_v9, 7  ;;  %v2248_v43 = vrot.slane %v2244_v47, 4  ;;  %v2231_v35 = vrot.slane %v2227_v59, 4  ;;  %v5543_v56 = vpack.c.bf16 %v1993_v41, %v1993_v41  ;;  %v2391_v59 = vld [vmem:[#allocation2 + $0x74] sm:$0x1] }
 0x1c9   : > { %v5541_v57 = vpack.c.bf16 %v1991_v52, %v1991_v52  ;;  %v2255_v60 = vor.u32 %v2253_v2, %v2252_v16  ;;  %v2257_v63 = vrot.slane %v2252_v16, 4  ;;  %v1994_v26 = vmax.f32 %v1972_v1, 0.0 }
 0x1ca   : > { %v2238_v19 = vor.u32 %v2236_v15, %v2235_v34  ;;  %v2240_v5 = vrot.slane %v2235_v34, 4  ;;  %v2276_v21 = vshrl.u32 %v5543_v56, 16  ;;  %v2279_v45 = vshll.u32 %v5543_v56, 16 }
 0x1cb   : > { %v2259_v4 = vshrl.u32 %v5541_v57, 16  ;;  %v2262_v48 = vshll.u32 %v5541_v57, 16  ;;  %v2256_v14 = vsel %vm7254_vm8, %v2248_v43, %v2255_v60  ;;  %v2378_v24 = vsel %vm7097_vm2, %v2257_v63, %v2377_v42 }
 0x1cc   : > { %v2239_v55 = vsel %vm7254_vm8, %v2231_v35, %v2238_v19  ;;  %v2371_v37 = vsel %vm7097_vm2, %v2240_v5, %v2370_v0  ;;  %2376 = vst [vmem:[#allocation2 + $0x58] sm:$0xf] %v2256_v14  ;;  %2379 = vst [vmem:[#allocation2 + $0x5c] sm:$0x1] %v2378_v24  ;;  %v2278_v18 = vrot.slane %v2276_v21, 7  ;;  %v1992_v6 = vmax.f32 %v1964_v53, 0.0 }
 0x1cd   : > { %2369 = vst [vmem:[#allocation2 + $0x4c] sm:$0xf] %v2239_v55  ;;  %2372 = vst [vmem:[#allocation2 + $0x50] sm:$0x1] %v2371_v37  ;;  %v2261_v25 = vrot.slane %v2259_v4, 7  ;;  %v5544_v49 = vpack.c.bf16 %v1994_v26, %v1994_v26  ;;  %v6462_v7 = vmov (!%p5329_p9), 0  }
 0x1ce   : > { %v2281_v32 = vor.u32 %v2279_v45, %v2278_v18  ;;  %v5542_v50 = vpack.c.bf16 %v1992_v6, %v1992_v6  ;;  %v2282_v23 = vrot.slane %v2278_v18, 4  ;;  %2398 = vst [vmem:[#allocation2] sm:$0xf] (!%p5329_p9), %v6462_v7  ;;  %2399 = vst [vmem:[#allocation2 + $0x4] sm:$0xf] (!%p5329_p9), %v6462_v7 }
 0x1cf   : > { %v2264_v54 = vor.u32 %v2262_v48, %v2261_v25  ;;  %v2284_v11 = vshrl.u32 %v5544_v49, 16  ;;  %v2287_v13 = vshll.u32 %v5544_v49, 16  ;;  %v2265_v47 = vrot.slane %v2261_v25, 4  ;;  %2400 = vst [vmem:[#allocation2 + $0x8] sm:$0x1] (!%p5329_p9), %v6462_v7 }
 0x1d0   : > { %v2388_v36 = vsel %vm7247_vm7, %v2281_v32, %v2387_v17  ;;  %v2267_v10 = vshrl.u32 %v5542_v50, 16  ;;  %v2270_v20 = vshll.u32 %v5542_v50, 16 }
 0x1d1   : > { %v2381_v51 = vsel %vm7247_vm7, %v2264_v54, %v2380_v12  ;;  %2389 = vst [vmem:[#allocation2 + $0x6c] sm:$0xf] %v2388_v36  ;;  %v2286_v22 = vrot.slane %v2284_v11, 7  ;;  %2397 = sbr.rel (%p5329_p9) target bundleno = 472 (0x1d8), region = 48 }
 0x1d2   : > { %2382 = vst [vmem:[#allocation2 + $0x60] sm:$0xf] %v2381_v51  ;;  %v2269_v8 = vrot.slane %v2267_v10, 7 }
 0x1d3   : > { %v2289_v58 = vor.u32 %v2287_v13, %v2286_v22  ;;  %v2291_v46 = vrot.slane %v2286_v22, 4 }
 0x1d4   : > { %v2272_v3 = vor.u32 %v2270_v20, %v2269_v8  ;;  %v2274_v62 = vrot.slane %v2269_v8, 4 }
 0x1d5   : > { %v2290_v28 = vsel %vm7254_vm8, %v2282_v23, %v2289_v58  ;;  %v2392_v40 = vsel %vm7097_vm2, %v2291_v46, %v2391_v59 }
 0x1d6   : > { %v2273_v29 = vsel %vm7254_vm8, %v2265_v47, %v2272_v3  ;;  %v2385_v30 = vsel %vm7097_vm2, %v2274_v62, %v2384_v61  ;;  %2390 = vst [vmem:[#allocation2 + $0x70] sm:$0xf] %v2290_v28  ;;  %2393 = vst [vmem:[#allocation2 + $0x74] sm:$0x1] %v2392_v40 }
 0x1d7   : > { %2383 = vst [vmem:[#allocation2 + $0x64] sm:$0xf] %v2273_v29  ;;  %2386 = vst [vmem:[#allocation2 + $0x68] sm:$0x1] %v2385_v30 }
 0x1d8 PF: > { %p5330_p10 = scmp.ne.s32.totalorder %s6444_s21, 1 }
 0x1d9   : > { %v6463_v27 = vmov (!%p5330_p10), 0  }
 0x1da   : > { %2404 = sbr.rel (%p5330_p10) target bundleno = 481 (0x1e1), region = 52  ;;  %2406 = vst [vmem:[#allocation2 + $0x6c] sm:$0xf] (!%p5330_p10), %v6463_v27  ;;  %2407 = vst [vmem:[#allocation2 + $0x70] sm:$0xf] (!%p5330_p10), %v6463_v27 }
 0x1db   : > { %2408 = vst [vmem:[#allocation2 + $0x74] sm:$0x1] (!%p5330_p10), %v6463_v27 }
 0x1e1 PF: > { %v6326_v44 = vld [vmem:[%s7958_s4 + $0x40] sm:$0xff]   ;;  %v6330_v9 = vld [vmem:[%s7958_s4 + $0x48] sm:$0xff]   ;;  %v6334_v41 = vld [vmem:[%s7958_s4 + $0x50] sm:$0xff]   ;;  %vm2788_vm9 = vcmask 1042432   ;;  %vm2505_vm10 = vsmask.f32 3328 }
 0x1e2   : > { %v6327_v31 = vld [vmem:[%s7958_s4] sm:$0xff]   ;;  %5869 = vmatprep.subr.bf16.mxu1 %v6326_v44  ;;  %v6331_v15 = vld [vmem:[%s7958_s4 + $0x8] sm:$0xff]   ;;  %v6335_v52 = vld [vmem:[%s7958_s4 + $0x10] sm:$0xff]   ;;  %vm2506_vm11 = vsmask.f32 7440  ;;  %vm2789_vm13 = vcmask 1046532  }
 0x1e3   : > { %v6328_v33 = vld [vmem:[%s7958_s4 + $0xc0] sm:$0xff]   ;;  %5870 = vmatpush3.bf16.msra.mxu1 %v6327_v31  ;;  %v6332_v38 = vld [vmem:[%s7958_s4 + $0xc8] sm:$0xff]   ;;  %v6336_v16 = vld [vmem:[%s7958_s4 + $0xd0] sm:$0xff]  }
 0x1e4   : > { %v6329_v2 = vld [vmem:[%s7958_s4 + $0x80] sm:$0xff]   ;;  %5933 = vmatprep.subr.bf16.mxu0 %v6328_v33  ;;  %5871 = vmatprep.subr.bf16.mxu1 %v6330_v9  ;;  %v6333_v39 = vld [vmem:[%s7958_s4 + $0x88] sm:$0xff]   ;;  %v6337_v34 = vld [vmem:[%s7958_s4 + $0x90] sm:$0xff]  }
 0x1e5   : > { %5934 = vmatpush3.bf16.msra.mxu0 %v6329_v2  ;;  %v6338_v1 = vld [vmem:[%s7958_s4 + $0x58] sm:$0xff]   ;;  %v6342_v42 = vld [vmem:[%s7958_s4 + $0x60] sm:$0xff]   ;;  %v6346_v60 = vld [vmem:[%s7958_s4 + $0x68] sm:$0xff]  }
 0x1e6   : > { %5935 = vmatprep.subr.bf16.mxu0 %v6332_v38  ;;  %v6339_v53 = vld [vmem:[%s7958_s4 + $0x18] sm:$0xff]   ;;  %v6343_v0 = vld [vmem:[%s7958_s4 + $0x20] sm:$0xff]   ;;  %v6347_v63 = vld [vmem:[%s7958_s4 + $0x28] sm:$0xff]  }
 0x1e7   : > { %5872 = vmatpush3.bf16.msra.mxu1 %v6331_v15  ;;  %v6340_v43 = vld [vmem:[%s7958_s4 + $0xd8] sm:$0xff]   ;;  %v6344_v56 = vld [vmem:[%s7958_s4 + $0xe0] sm:$0xff]   ;;  %v6348_v19 = vld [vmem:[%s7958_s4 + $0xe8] sm:$0xff]  }
 0x1e8   : > { %5873 = vmatprep.subr.bf16.mxu1 %v6334_v41  ;;  %v6341_v35 = vld [vmem:[%s7958_s4 + $0x98] sm:$0xff]   ;;  %v6345_v57 = vld [vmem:[%s7958_s4 + $0xa0] sm:$0xff]   ;;  %v6349_v5 = vld [vmem:[%s7958_s4 + $0xa8] sm:$0xff]  }
 0x1e9   : > { %5936 = vmatpush3.bf16.msra.mxu0 %v6333_v39  ;;  %v6350_v21 = vld [vmem:[%s7958_s4 + $0x70] sm:$0xff]   ;;  %v6354_v14 = vld [vmem:[%s7958_s4 + $0x78] sm:$0xff]   ;;  %v2481_v37 = vld [vmem:[#allocation2] sm:$0xf] }
 0x1ea   : > { %5937 = vmatprep.subr.bf16.mxu0 %v6336_v16  ;;  %v6351_v45 = vld [vmem:[%s7958_s4 + $0x30] sm:$0xff]   ;;  %v6355_v24 = vld [vmem:[%s7958_s4 + $0x38] sm:$0xff]   ;;  %v2482_v18 = vld [vmem:[#allocation2 + $0x4] sm:$0xf]  ;;  %v2509_v26 = vshrl.u32 %v2481_v37, 16  ;;  %v2512_v6 = vshll.u32 %v2481_v37, 16 }
 0x1eb   : > { %5874 = vmatpush3.bf16.msra.mxu1 %v6335_v52  ;;  %v6352_v4 = vld [vmem:[%s7958_s4 + $0xf0] sm:$0xff]   ;;  %v6356_v55 = vld [vmem:[%s7958_s4 + $0xf8] sm:$0xff]   ;;  %v2483_v25 = vld [vmem:[#allocation2 + $0x8] sm:$0x1]  ;;  %v2518_v17 = vshll.u32 %v2482_v18, 16  ;;  %v2522_v12 = vshrl.u32 %v2482_v18, 16 }
 0x1ec   : > { %5875 = vmatprep.subr.bf16.mxu1 %v6338_v1  ;;  %v6353_v48 = vld [vmem:[%s7958_s4 + $0xb0] sm:$0xff]   ;;  %v2528_v32 = vshll.u32 %v2483_v25, 16  ;;  %v6357_v54 = vld [vmem:[%s7958_s4 + $0xb8] sm:$0xff]   ;;  %v2511_v49 = vrot.slane %v2509_v26, 4  ;;  %v2514_v50 = vrot.slane %v2512_v6, 5  ;;  %vm7442_vm12 = vmor %vm2505_vm10, %vm2506_vm11 }
 0x1ed   : > { %5938 = vmatpush3.bf16.msra.mxu0 %v6337_v34  ;;  %v2520_v51 = vrot.slane %v2518_v17, 5  ;;  %v2524_v11 = vrot.slane %v2522_v12, 4  ;;  %v6358_v10 = vld [vmem:[#allocation2] sm:$0xff]   ;;  %v6360_v23 = vld [vmem:[#allocation2 + $0xc] sm:$0xff]   ;;  %vm7450_vm14 = vmor %vm2788_vm9, %vm2789_vm13 }
 0x1ee   : > { %5939 = vmatprep.subr.bf16.mxu0 %v6340_v43  ;;  %v2515_v22 = vor.u32 %v2514_v50, %v2511_v49  ;;  %v6359_v13 = vld [vmem:[%s7958_s4 + $0x140] sm:$0xff]   ;;  %v2530_v20 = vrot.slane %v2528_v32, 5  ;;  %4617 = vmatprep.mubr.bf16.mxu0 %v6360_v23  ;;  %v7454_v3 = vld [vmem:[#allocation2 + $0xc] sm:$0xff]   ;;  %v2742_v40 = vld [vmem:[#allocation2 + $0x8] sm:$0x1] }
 0x1ef   : > { %5876 = vmatpush3.bf16.msra.mxu1 %v6339_v53  ;;  %v2525_v8 = vor.u32 %v2524_v11, %v2520_v51  ;;  %v2740_v58 = vld [vmem:[#allocation2] sm:$0xe]  ;;  %v2741_v46 = vld [vmem:[#allocation2 + $0x4] sm:$0xf]  ;;  %v2484_v7 = vld [vmem:[#allocation2 + $0xc] sm:$0xf] }
 0x1f0   : > { %5877 = vmatprep.subr.bf16.mxu1 %v6342_v42  ;;  %v2516_v47 = vrot.slane %v2515_v22, 4  ;;  %v6361_v28 = vld [vmem:[%s7958_s4 + $0x100] sm:$0xff]   ;;  %v5347_v29 = vrot.slane %v2740_v58, 9  ;;  %v2793_v30 = vrot.slane %v2741_v46, 5  ;;  %v2796_v44 = vrot.slane %v2742_v40, 5  ;;  %v6363_v43 = vld [vmem:[%s7958_s4 + $0x148] sm:$0xff]  }
 0x1f1   : > { %5940 = vmatpush3.bf16.msra.mxu0 %v6341_v35  ;;  %v2526_v61 = vrot.slane %v2525_v8, 4  ;;  %v2485_v31 = vld [vmem:[#allocation2 + $0x10] sm:$0xf]  ;;  %v2486_v33 = vld [vmem:[#allocation2 + $0x14] sm:$0x1]  ;;  %v2533_v2 = vshrl.u32 %v2484_v7, 16 }
 0x1f2   : > { %5941 = vmatprep.subr.bf16.mxu0 %v6344_v56  ;;  %v2521_v62 = vsel %vm7442_vm12, %v2516_v47, %v2520_v51  ;;  %v2794_v15 = vsel %vm7450_vm14, %v5347_v29, %v2793_v30  ;;  %v2795_v38 = vrot.slane %v2793_v30, 4  ;;  %v2536_v39 = vshll.u32 %v2484_v7, 16  ;;  %v6364_v56 = vld [vmem:[#allocation2 + $0x18] sm:$0xff]   ;;  %v2489_v25 = vld [vmem:[#allocation2 + $0x20] sm:$0x1]  ;;  %v6368_v23 = vld [vmem:[#allocation2 + $0x24] sm:$0xff]  }
 0x1f3   : > { %5878 = vmatpush3.bf16.msra.mxu1 %v6343_v0  ;;  %v2531_v27 = vsel %vm7442_vm12, %v2526_v61, %v2530_v20  ;;  %v2535_v41 = vrot.slane %v2533_v2, 4  ;;  %v2542_v52 = vshll.u32 %v2485_v31, 16  ;;  %v2546_v16 = vshrl.u32 %v2485_v31, 16  ;;  %v2488_v18 = vld [vmem:[#allocation2 + $0x1c] sm:$0xf]  ;;  %v6367_v20 = vld [vmem:[%s7958_s4 + $0x150] sm:$0xff]  }
 0x1f4   : > { %5879 = vmatprep.subr.bf16.mxu1 %v6346_v60  ;;  %v5339_v9 = vcombine.low %v2521_v62, %v2531_v27  ;;  %v2552_v34 = vshll.u32 %v2486_v33, 16  ;;  %v2797_v1 = vsel %vm7450_vm14, %v2795_v38, %v2796_v44  ;;  %v2538_v53 = vrot.slane %v2536_v39, 5  ;;  %v6366_v11 = vld [vmem:[#allocation2 + $0x18] sm:$0xff]   ;;  %v2748_v7 = vld [vmem:[#allocation2 + $0x20] sm:$0x1] }
 0x1f5   : > { %5942 = vmatpush3.bf16.msra.mxu0 %v6345_v57  ;;  %v5355_v35 = vcombine.low %v2794_v15, %v2797_v1  ;;  %v2544_v42 = vrot.slane %v2542_v52, 5  ;;  %v2548_v0 = vrot.slane %v2546_v16, 4  ;;  %v2566_v50 = vshll.u32 %v2488_v18, 16  ;;  %v2746_v29 = vld [vmem:[#allocation2 + $0x18] sm:$0xe] }
 0x1f6   : > { %5943 = vmatprep.subr.bf16.mxu0 %v6348_v19  ;;  %4520 = vmatprep.mubr.bf16.mxu1 %v5339_v9  ;;  %v2539_v57 = vor.u32 %v2538_v53, %v2535_v41  ;;  %v2554_v60 = vrot.slane %v2552_v34, 5  ;;  %v2570_v51 = vshrl.u32 %v2488_v18, 16  ;;  %v2576_v8 = vshll.u32 %v2489_v25, 16  ;;  %v2747_v30 = vld [vmem:[#allocation2 + $0x1c] sm:$0xf] }
 0x1f7   : > { %5880 = vmatpush3.bf16.msra.mxu1 %v6347_v63  ;;  %v6365_v63 = vld [vmem:[%s7958_s4 + $0x108] sm:$0xff]   ;;  %v2549_v19 = vor.u32 %v2548_v0, %v2544_v42  ;;  %v2568_v61 = vrot.slane %v2566_v50, 5  ;;  %v5349_v44 = vrot.slane %v2746_v29, 9  ;;  %v2807_v31 = vrot.slane %v2747_v30, 5  ;;  %v2490_v2 = vld [vmem:[#allocation2 + $0x24] sm:$0xf] }
 0x1f8   : > { %5881 = vmatprep.subr.bf16.mxu1 %v6350_v21  ;;  %v2744_v21 = vld [vmem:[#allocation2 + $0x10] sm:$0xf]  ;;  %v2572_v58 = vrot.slane %v2570_v51, 4  ;;  %v2578_v62 = vrot.slane %v2576_v8, 5  ;;  %v2810_v33 = vrot.slane %v2748_v7, 5  ;;  %v2581_v39 = vshrl.u32 %v2490_v2, 16 }
 0x1f9   : > { %5944 = vmatpush3.bf16.msra.mxu0 %v6349_v5  ;;  %v2743_v5 = vld [vmem:[#allocation2 + $0xc] sm:$0xe]  ;;  %v2550_v37 = vrot.slane %v2549_v19, 4  ;;  %v2491_v15 = vld [vmem:[#allocation2 + $0x28] sm:$0xf]  ;;  %v2809_v52 = vrot.slane %v2807_v31, 4 }
 0x1fa   : > { %5945 = vmatprep.subr.bf16.mxu0 %v6352_v4  ;;  %v2540_v4 = vrot.slane %v2539_v57, 4  ;;  %v2573_v40 = vor.u32 %v2572_v58, %v2568_v61  ;;  %v2492_v38 = vld [vmem:[#allocation2 + $0x2c] sm:$0x1]  ;;  %v2584_v16 = vshll.u32 %v2490_v2, 16  ;;  %v2583_v1 = vrot.slane %v2581_v39, 4  ;;  %v6375_v50 = vld [vmem:[%s7958_s4 + $0x180] sm:$0xff]  }
 0x1fb   : > { %5882 = vmatpush3.bf16.msra.mxu1 %v6351_v45  ;;  %v2745_v45 = vld [vmem:[#allocation2 + $0x14] sm:$0x1]  ;;  %v2590_v53 = vshll.u32 %v2491_v15, 16  ;;  %v2811_v0 = vsel %vm7450_vm14, %v2809_v52, %v2810_v33  ;;  %v2600_v57 = vshll.u32 %v2492_v38, 16  ;;  %v2493_v51 = vld [vmem:[#allocation2 + $0x30] sm:$0xf] }
 0x1fc   : > { %5883 = vmatprep.subr.bf16.mxu1 %v6354_v14  ;;  %v2800_v14 = vrot.slane %v2744_v21, 5  ;;  %v2545_v6 = vsel %vm7442_vm12, %v2540_v4, %v2544_v42  ;;  %v2574_v9 = vrot.slane %v2573_v40, 4  ;;  %v2608_v8 = vshll.u32 %v2493_v51, 16  ;;  %v6376_v40 = vld [vmem:[#allocation2 + $0x30] sm:$0xff]   ;;  %v6377_v7 = vld [vmem:[%s7958_s4 + $0x160] sm:$0xff]  }
 0x1fd   : > { %5946 = vmatpush3.bf16.msra.mxu0 %v6353_v48  ;;  %v5348_v48 = vrot.slane %v2743_v5, 9  ;;  %v2592_v5 = vrot.slane %v2590_v53, 5  ;;  %v2602_v4 = vrot.slane %v2600_v57, 5  ;;  %v6379_v33 = vld [vmem:[%s7958_s4 + $0x120] sm:$0xff]   ;;  %v2753_v38 = vld [vmem:[#allocation2 + $0x34] sm:$0xf] }
 0x1fe   : > { %5947 = vmatprep.subr.bf16.mxu0 %v6356_v55  ;;  %v2487_v55 = vld [vmem:[#allocation2 + $0x18] sm:$0xf]  ;;  %v2802_v12 = vrot.slane %v2800_v14, 4  ;;  %v2579_v34 = vsel %vm7442_vm12, %v2574_v9, %v2578_v62  ;;  %v2610_v62 = vrot.slane %v2608_v8, 5  ;;  %v2752_v9 = vld [vmem:[#allocation2 + $0x30] sm:$0xe] }
 0x1ff   : > { %5884 = vmatpush3.bf16.msra.mxu1 %v6355_v24  ;;  %v2803_v24 = vrot.slane %v2745_v45, 5  ;;  %v2557_v26 = vshrl.u32 %v2487_v55, 16  ;;  %v2801_v17 = vsel %vm7450_vm14, %v5348_v48, %v2800_v14  ;;  %v2560_v32 = vshll.u32 %v2487_v55, 16  ;;  %v6373_v48 = vld [vmem:[%s7958_s4 + $0x118] sm:$0xff]   ;;  %v2750_v55 = vld [vmem:[#allocation2 + $0x28] sm:$0xf] }
 0x200   : > { %5997 = vmatprep.subr.bf16.mxu1 %v6359_v13  ;;  %v2754_v39 = vld [vmem:[#allocation2 + $0x38] sm:$0x1]  ;;  %v2821_v52 = vrot.slane %v2753_v38, 5  ;;  %v6386_v8 = vld [vmem:[%s7958_s4 + $0x1d0] sm:$0xff]  }
 0x201   : > { %5948 = vmatpush3.bf16.msra.mxu0 %v6357_v54  ;;  %v2555_v54 = vsel %vm7442_vm12, %v2550_v37, %v2554_v60  ;;  %v2559_v49 = vrot.slane %v2557_v26, 4  ;;  %v2804_v22 = vsel %vm7450_vm14, %v2802_v12, %v2803_v24  ;;  %v2562_v13 = vrot.slane %v2560_v32, 5  ;;  %v6371_v60 = vld [vmem:[%s7958_s4 + $0x158] sm:$0xff]   ;;  %v2749_v24 = vld [vmem:[#allocation2 + $0x24] sm:$0xe] }
 0x202   : > { %4521 = vmatmul.mubr.bf16.vlgmr.msra.gmra.mrb[80].mxu1 %v6358_v10  ;;  %v5340_v10 = vcombine.low %v2545_v6, %v2555_v54  ;;  %v5356_v47 = vcombine.low %v2801_v17, %v2804_v22  ;;  %v2751_v37 = vld [vmem:[#allocation2 + $0x2c] sm:$0x1]  ;;  %v5350_v25 = vrot.slane %v2749_v24, 9  ;;  %v2814_v26 = vrot.slane %v2750_v55, 5  ;;  %v6374_v12 = vld [vmem:[%s7958_s4 + $0x1c0] sm:$0xff]  }
 0x203   : > { %5998 = vmatpush3.bf16.msra.mxu1 %v6361_v28  ;;  %v2563_v46 = vor.u32 %v2562_v13, %v2559_v49  ;;  %v6369_v28 = vld [vmem:[%s7958_s4 + $0x110] sm:$0xff]   ;;  %v2817_v6 = vrot.slane %v2751_v37, 5  ;;  %6061 = vmatprep.subr.bf16.mxu0 %v6374_v12  ;;  %v2495_v22 = vld [vmem:[#allocation2 + $0x38] sm:$0x1]  ;;  %v2605_v13 = vshrl.u32 %v2493_v51, 16 }
 0x204   : > { %4618 = vmatmul.mubr.bf16.vlgmr.msra.gmra.mrb[100].mxu0 %v5355_v35  ;;  %5999 = vmatprep.subr.bf16.mxu1 %v6363_v43  ;;  %v2594_v43 = vshrl.u32 %v2491_v15, 16  ;;  %v6370_v35 = vld [vmem:[#allocation2 + $0x24] sm:$0xff]   ;;  %v2815_v54 = vsel %vm7450_vm14, %v5350_v25, %v2814_v26  ;;  %v2816_v49 = vrot.slane %v2814_v26, 4 }
 0x205   : > { %4625 = vmatprep.mubr.bf16.mxu0 %v6364_v56  ;;  %4528 = vmatprep.mubr.bf16.mxu1 %v5340_v10  ;;  %v2564_v27 = vrot.slane %v2563_v46, 4  ;;  %v2586_v56 = vrot.slane %v2584_v16, 5  ;;  %v2494_v10 = vld [vmem:[#allocation2 + $0x34] sm:$0xf]  ;;  %v2607_v46 = vrot.slane %v2605_v13, 4  ;;  %v2824_v16 = vrot.slane %v2754_v39, 5 }
 0x206   : > { %v2596_v21 = vrot.slane %v2594_v43, 4  ;;  %6062 = vmatpush3.bf16.msra.mxu0 %v6375_v50  ;;  %v2756_v50 = vld [vmem:[#allocation2 + $0x40] sm:$0xf]  ;;  %v2757_v51 = vld [vmem:[#allocation2 + $0x44] sm:$0x1] }
 0x207   : > { %6000 = vmatpush3.bf16.msra.mxu1 %v6365_v63  ;;  %v2569_v41 = vsel %vm7442_vm12, %v2564_v27, %v2568_v61  ;;  %v6372_v63 = vld [vmem:[#allocation2 + $0x30] sm:$0xff]   ;;  %v2587_v45 = vor.u32 %v2586_v56, %v2583_v1  ;;  %v2618_v61 = vshrl.u32 %v2494_v10, 16  ;;  %v6378_v27 = vld [vmem:[#allocation2 + $0x3c] sm:$0xff]   ;;  %v2831_v13 = vrot.slane %v2757_v51, 5 }
 0x208   : > { %6001 = vmatprep.subr.bf16.mxu1 %v6367_v20  ;;  %v5341_v42 = vcombine.low %v2569_v41, %v2579_v34  ;;  %v2597_v14 = vor.u32 %v2596_v21, %v2592_v5  ;;  %v5351_v41 = vrot.slane %v2752_v9, 9  ;;  %v6380_v34 = vld [vmem:[%s7958_s4 + $0x1c8] sm:$0xff]   ;;  %v2497_v56 = vld [vmem:[#allocation2 + $0x40] sm:$0xf] }
 0x209   : > { %v2588_v18 = vrot.slane %v2587_v45, 4  ;;  %v2620_v30 = vrot.slane %v2618_v61, 4  ;;  %6063 = vmatprep.subr.bf16.mxu0 %v6380_v34  ;;  %v6382_v21 = vld [vmem:[#allocation2 + $0x3c] sm:$0xff]  }
 0x20a   : > { %4529 = vmatmul.mubr.bf16.gmra.mrb[84].mxu1 %v7454_v3  ;;  %v2808_v3 = vsel %vm7450_vm14, %v5349_v44, %v2807_v31  ;;  %v2598_v17 = vrot.slane %v2597_v14, 4  ;;  %v2611_v44 = vor.u32 %v2610_v62, %v2607_v46  ;;  %v2822_v43 = vsel %vm7450_vm14, %v5351_v41, %v2821_v52  ;;  %v6388_v62 = vld [vmem:[%s7958_s4 + $0x1d8] sm:$0xff]   ;;  %v6390_v41 = vld [vmem:[#allocation2 + $0x48] sm:$0xff]  }
 0x20b   : > { %6002 = vmatpush3.bf16.msra.mxu1 %v6369_v28  ;;  %v5357_v19 = vcombine.low %v2808_v3, %v2811_v0  ;;  %4536 = vmatprep.mubr.bf16.mxu1 %v5341_v42  ;;  %v2593_v32 = vsel %vm7442_vm12, %v2588_v18, %v2592_v5  ;;  %v2624_v28 = vshll.u32 %v2495_v22, 16  ;;  %v6381_v42 = vld [vmem:[%s7958_s4 + $0x188] sm:$0xff]   ;;  %v2496_v0 = vld [vmem:[#allocation2 + $0x3c] sm:$0xf]  ;;  %v2638_v5 = vshll.u32 %v2497_v56, 16 }
 0x20c   : > { %4626 = vmatmul.mubr.bf16.gmra.mrb[104].mxu0 %v5356_v47  ;;  %6003 = vmatprep.subr.bf16.mxu1 %v6371_v60  ;;  %v2614_v47 = vshll.u32 %v2494_v10, 16  ;;  %v2612_v15 = vrot.slane %v2611_v44, 4  ;;  %v2498_v60 = vld [vmem:[#allocation2 + $0x44] sm:$0x1]  ;;  %v6383_v18 = vld [vmem:[%s7958_s4 + $0x168] sm:$0xff]   ;;  %v2828_v22 = vrot.slane %v2756_v50, 5 }
 0x20d   : > { %4633 = vmatprep.mubr.bf16.mxu0 %v6368_v23  ;;  %v2818_v23 = vsel %vm7450_vm14, %v2816_v49, %v2817_v6  ;;  %v2626_v31 = vrot.slane %v2624_v28, 5  ;;  %6064 = vmatpush3.bf16.msra.mxu0 %v6381_v42  ;;  %v2640_v37 = vrot.slane %v2638_v5, 5  ;;  %v6384_v6 = vld [vmem:[#allocation2 + $0x48] sm:$0xff]  }
 0x20e   : > { %v5358_v58 = vcombine.low %v2815_v54, %v2818_v23  ;;  %v2616_v29 = vrot.slane %v2614_v47, 5  ;;  %v2755_v54 = vld [vmem:[#allocation2 + $0x3c] sm:$0xe]  ;;  %v2830_v61 = vrot.slane %v2828_v22, 4  ;;  %6065 = vmatprep.subr.bf16.mxu0 %v6386_v8  ;;  %v2499_v28 = vld [vmem:[#allocation2 + $0x48] sm:$0xf] }
 0x20f   : > { %6004 = vmatpush3.bf16.msra.mxu1 %v6373_v48  ;;  %v2648_v48 = vshll.u32 %v2498_v60, 16  ;;  %v2758_v42 = vld [vmem:[#allocation2 + $0x48] sm:$0xe] }
 0x210   : > { %v2621_v2 = vor.u32 %v2620_v30, %v2616_v29  ;;  %6005 = vmatprep.subr.bf16.mxu1 %v6377_v7  ;;  %v2617_v1 = vsel %vm7442_vm12, %v2612_v15, %v2616_v29  ;;  %v2832_v29 = vsel %vm7450_vm14, %v2830_v61, %v2831_v13  ;;  %v2501_v30 = vld [vmem:[#allocation2 + $0x50] sm:$0x1]  ;;  %v2653_v7 = vshrl.u32 %v2499_v28, 16  ;;  %v6400_v61 = vld [vmem:[#allocation2 + $0x60] sm:$0xff]  }
 0x211   : > { %v2650_v12 = vrot.slane %v2648_v48, 5  ;;  %v2672_v9 = vshll.u32 %v2501_v30, 16  ;;  %v5353_v60 = vrot.slane %v2758_v42, 9  ;;  %v2960_v42 = vld [vmem:[#allocation2 + $0xc] sm:$0xf] }
 0x212   : > { %4537 = vmatmul.mubr.bf16.gmra.mrb[88].mxu1 %v6366_v11  ;;  %v2603_v11 = vsel %vm7442_vm12, %v2598_v17, %v2602_v4  ;;  %v2622_v3 = vrot.slane %v2621_v2, 4  ;;  %v2642_v4 = vshrl.u32 %v2497_v56, 16  ;;  %v2655_v15 = vrot.slane %v2653_v7, 4  ;;  %v2759_v56 = vld [vmem:[#allocation2 + $0x4c] sm:$0xf] }
 0x213   : > { %v5342_v20 = vcombine.low %v2593_v32, %v2603_v11  ;;  %6006 = vmatpush3.bf16.msra.mxu1 %v6379_v33  ;;  %v6385_v32 = vld [vmem:[%s7958_s4 + $0x128] sm:$0xff]   ;;  %v5352_v11 = vrot.slane %v2755_v54, 9 }
 0x214   : > { %4634 = vmatmul.mubr.bf16.gmra.mrb[108].mxu0 %v5357_v19  ;;  %v2627_v53 = vsel %vm7442_vm12, %v2622_v3, %v2626_v31  ;;  %v2632_v19 = vshll.u32 %v2496_v0, 16  ;;  %v2644_v25 = vrot.slane %v2642_v4, 4  ;;  %6007 = vmatprep.subr.bf16.mxu1 %v6383_v18  ;;  %v6389_v31 = vld [vmem:[%s7958_s4 + $0x198] sm:$0xff]  }
 0x215   : > { %4641 = vmatprep.mubr.bf16.mxu0 %v6372_v63  ;;  %4544 = vmatprep.mubr.bf16.mxu1 %v5342_v20  ;;  %v5343_v57 = vcombine.low %v2617_v1, %v2627_v53  ;;  %v2629_v63 = vshrl.u32 %v2496_v0, 16  ;;  %v2829_v47 = vsel %vm7450_vm14, %v5352_v11, %v2828_v22  ;;  %v2674_v1 = vrot.slane %v2672_v9, 5  ;;  %v6392_v53 = vld [vmem:[#allocation2 + $0x54] sm:$0xff]  }
 0x216   : > { %v2634_v55 = vrot.slane %v2632_v19, 5  ;;  %v2645_v17 = vor.u32 %v2644_v25, %v2640_v37  ;;  %v5360_v33 = vcombine.low %v2829_v47, %v2832_v29  ;;  %v2835_v19 = vrot.slane %v2759_v56, 5  ;;  %v2503_v18 = vld [vmem:[#allocation2 + $0x58] sm:$0xf]  ;;  %v2763_v29 = vld [vmem:[#allocation2 + $0x5c] sm:$0x1] }
 0x217   : > { %v2631_v24 = vrot.slane %v2629_v63, 4  ;;  %6008 = vmatpush3.bf16.msra.mxu1 %v6385_v32  ;;  %v6397_v32 = vld [vmem:[%s7958_s4 + $0x1a8] sm:$0xff]   ;;  %v6398_v22 = vld [vmem:[#allocation2 + $0x54] sm:$0xff]  }
 0x218   : > { %v2646_v10 = vrot.slane %v2645_v17, 4  ;;  %v2836_v48 = vsel %vm7450_vm14, %v5353_v60, %v2835_v19  ;;  %v2962_v60 = vld [vmem:[#allocation2 + $0x14] sm:$0x1] }
 0x219   : > { %v2635_v26 = vor.u32 %v2634_v55, %v2631_v24  ;;  %v6395_v24 = vld [vmem:[%s7958_s4 + $0x1a0] sm:$0xff]   ;;  %v6396_v55 = vld [vmem:[%s7958_s4 + $0x1e8] sm:$0xff]  }
 0x21a   : > { %4545 = vmatmul.mubr.bf16.gmra.mrb[92].mxu1 %v6370_v35  ;;  %v2823_v35 = vrot.slane %v2821_v52, 4  ;;  %v2651_v23 = vsel %vm7442_vm12, %v2646_v10, %v2650_v12  ;;  %v2686_v12 = vshll.u32 %v2503_v18, 16 }
 0x21b   : > { %4552 = vmatprep.mubr.bf16.mxu1 %v5343_v57  ;;  %v2636_v49 = vrot.slane %v2635_v26, 4  ;;  %v2760_v57 = vld [vmem:[#allocation2 + $0x50] sm:$0x1]  ;;  %v2504_v26 = vld [vmem:[#allocation2 + $0x5c] sm:$0x1] }
 0x21c   : > { %4642 = vmatmul.mubr.bf16.gmra.mrb[112].mxu0 %v5358_v58  ;;  %v2825_v45 = vsel %vm7450_vm14, %v2823_v35, %v2824_v16  ;;  %v6387_v58 = vld [vmem:[%s7958_s4 + $0x190] sm:$0xff]   ;;  %v2838_v5 = vrot.slane %v2760_v57, 5  ;;  %v2696_v50 = vshll.u32 %v2504_v26, 16  ;;  %v2688_v10 = vrot.slane %v2686_v12, 5  ;;  %v3434_v26 = vld [vmem:[#allocation2 + $0x1c] sm:$0xf] }
 0x21d   : > { %4649 = vmatprep.mubr.bf16.mxu0 %v6378_v27  ;;  %v5359_v14 = vcombine.low %v2822_v43, %v2825_v45  ;;  %v2641_v20 = vsel %vm7442_vm12, %v2636_v49, %v2640_v37  ;;  %6066 = vmatpush3.bf16.msra.mxu0 %v6387_v58  ;;  %v2656_v27 = vshll.u32 %v2499_v28, 16  ;;  %v6391_v16 = vld [vmem:[%s7958_s4 + $0x170] sm:$0xff]   ;;  %v6394_v45 = vld [vmem:[%s7958_s4 + $0x1e0] sm:$0xff]   ;;  %v2690_v49 = vshrl.u32 %v2503_v18, 16 }
 0x21e   : > { %v5344_v46 = vcombine.low %v2641_v20, %v2651_v23  ;;  %6067 = vmatprep.subr.bf16.mxu0 %v6388_v62  ;;  %6009 = vmatprep.subr.bf16.mxu1 %v6391_v16  ;;  %v6393_v35 = vld [vmem:[%s7958_s4 + $0x130] sm:$0xff]   ;;  %v6399_v20 = vld [vmem:[%s7958_s4 + $0x178] sm:$0xff]   ;;  %v2698_v47 = vrot.slane %v2696_v50, 5  ;;  %v3435_v12 = vld [vmem:[#allocation2 + $0x20] sm:$0x1] }
 0x21f   : > { %v2658_v38 = vrot.slane %v2656_v27, 5  ;;  %6010 = vmatpush3.bf16.msra.mxu1 %v6393_v35  ;;  %v2502_v37 = vld [vmem:[#allocation2 + $0x54] sm:$0xf]  ;;  %v2692_v13 = vrot.slane %v2690_v49, 4  ;;  %v6405_v35 = vld [vmem:[%s7958_s4 + $0x1b8] sm:$0xff]   ;;  %v3467_v49 = vshll.u32 %v3434_v26, 16 }
 0x220   : > { %v2680_v17 = vshll.u32 %v2502_v37, 16  ;;  %6011 = vmatprep.subr.bf16.mxu1 %v6399_v20  ;;  %v2761_v62 = vld [vmem:[#allocation2 + $0x54] sm:$0xe]  ;;  %v3218_v16 = vld [vmem:[#allocation2 + $0x14] sm:$0x1] }
 0x221   : > { %v2659_v52 = vor.u32 %v2658_v38, %v2655_v15  ;;  %6068 = vmatpush3.bf16.msra.mxu0 %v6389_v31  ;;  %v2693_v23 = vor.u32 %v2692_v13, %v2688_v10  ;;  %v5354_v30 = vrot.slane %v2761_v62, 9  ;;  %v6403_v38 = vld [vmem:[%s7958_s4 + $0x1b0] sm:$0xff]   ;;  %v3219_v20 = vld [vmem:[#allocation2 + $0x18] sm:$0xe] }
 0x222   : > { %4553 = vmatmul.mubr.bf16.gmra.mrb[96].mxu1 %v6376_v40  ;;  %v2500_v40 = vld [vmem:[#allocation2 + $0x4c] sm:$0xf]  ;;  %6069 = vmatprep.subr.bf16.mxu0 %v6394_v45  ;;  %v2682_v11 = vrot.slane %v2680_v17, 5  ;;  %v2961_v57 = vld [vmem:[#allocation2 + $0x10] sm:$0xf]  ;;  %v3004_v45 = vshll.u32 %v2962_v60, 16 }
 0x223   : > { %v2662_v44 = vshll.u32 %v2500_v40, 16  ;;  %4560 = vmatprep.mubr.bf16.mxu1 %v5344_v46  ;;  %v2666_v2 = vshrl.u32 %v2500_v40, 16  ;;  %v2660_v43 = vrot.slane %v2659_v52, 4  ;;  %v6401_v46 = vld [vmem:[%s7958_s4 + $0x138] sm:$0xff]   ;;  %v2694_v28 = vrot.slane %v2693_v23, 4 }
 0x224   : > { %4650 = vmatmul.mubr.bf16.gmra.mrb[116].mxu0 %v5359_v14  ;;  %v2837_v14 = vrot.slane %v2835_v19, 4  ;;  %v2762_v40 = vld [vmem:[#allocation2 + $0x58] sm:$0xf]  ;;  %6012 = vmatpush3.bf16.msra.mxu1 %v6401_v46  ;;  %v2988_v19 = vshll.u32 %v2960_v42, 16  ;;  %v3006_v17 = vrot.slane %v3004_v45, 5 }
 0x225   : > { %4657 = vmatprep.mubr.bf16.mxu0 %v6384_v6  ;;  %v2664_v39 = vrot.slane %v2662_v44, 5  ;;  %v2668_v3 = vrot.slane %v2666_v2, 4  ;;  %6070 = vmatpush3.bf16.msra.mxu0 %v6395_v24  ;;  %v2677_v6 = vshrl.u32 %v2502_v37, 16  ;;  %v2842_v27 = vrot.slane %v2762_v40, 5  ;;  %v3433_v24 = vld [vmem:[#allocation2 + $0x18] sm:$0xf] }
 0x226   : > { %v2839_v25 = vsel %vm7450_vm14, %v2837_v14, %v2838_v5  ;;  %6071 = vmatprep.subr.bf16.mxu0 %v6396_v55  ;;  %v2845_v44 = vrot.slane %v2763_v29, 5  ;;  %v2699_v31 = vsel %vm7442_vm12, %v2694_v28, %v2698_v47  ;;  %v2994_v5 = vshll.u32 %v2961_v57, 16  ;;  %v6406_v14 = vld [vmem:[%s7958_s4 + $0x200] sm:$0xff]   ;;  %v3220_v46 = vld [vmem:[#allocation2 + $0x1c] sm:$0xf] }
 0x227   : > { %v2669_v34 = vor.u32 %v2668_v3, %v2664_v39  ;;  %v2665_v63 = vsel %vm7442_vm12, %v2660_v43, %v2664_v39  ;;  %v5361_v54 = vcombine.low %v2836_v48, %v2839_v25  ;;  %v2679_v51 = vrot.slane %v2677_v6, 4  ;;  %v6404_v39 = vld [vmem:[%s7958_s4 + $0x1f8] sm:$0xff]   ;;  %v3217_v3 = vld [vmem:[#allocation2 + $0x10] sm:$0xf]  ;;  %6177 = vmatprep.subr.bf16.mxu1 %v6406_v14  ;;  %v3221_v28 = vld [vmem:[#allocation2 + $0x20] sm:$0x1] }
 0x228   : > { %v2843_v9 = vsel %vm7450_vm14, %v5354_v30, %v2842_v27  ;;  %v2844_v15 = vrot.slane %v2842_v27, 4  ;;  %v3269_v43 = vrot.slane %v3218_v16, 5  ;;  %v2990_v37 = vrot.slane %v2988_v19, 5  ;;  %v7621_v6 = vld [vmem:[#allocation2 + $0x18] sm:$0xff]  }
 0x229   : > { %v2670_v0 = vrot.slane %v2669_v34, 4  ;;  %v2683_v8 = vor.u32 %v2682_v11, %v2679_v51  ;;  %6072 = vmatpush3.bf16.msra.mxu0 %v6397_v32  ;;  %v2996_v18 = vrot.slane %v2994_v5, 5  ;;  %v3458_v32 = vshrl.u32 %v3433_v24, 16  ;;  %v2963_v30 = vld [vmem:[#allocation2 + $0x18] sm:$0xf] }
 0x22a   : > { %4561 = vmatmul.mubr.bf16.gmra.mrb[100].mxu1 %v6382_v21  ;;  %v2846_v52 = vsel %vm7450_vm14, %v2844_v15, %v2845_v44  ;;  %v3471_v11 = vshrl.u32 %v3434_v26, 16  ;;  %v5380_v40 = vrot.slane %v3219_v20, 9  ;;  %v3273_v29 = vrot.slane %v3220_v46, 5  ;;  %v7630_v15 = vld [vmem:[#allocation2 + $0x24] sm:$0xff]  }
 0x22b   : > { %v2675_v21 = vsel %vm7442_vm12, %v2670_v0, %v2674_v1  ;;  %v2684_v58 = vrot.slane %v2683_v8, 4  ;;  %v3266_v1 = vrot.slane %v3217_v3, 5  ;;  %v3469_v8 = vrot.slane %v3467_v49, 5  ;;  %v3224_v49 = vld [vmem:[#allocation2 + $0x2c] sm:$0x1] }
 0x22c   : > { %4658 = vmatmul.mubr.bf16.gmra.mrb[120].mxu0 %v5360_v33  ;;  %v5345_v4 = vcombine.low %v2665_v63, %v2675_v21  ;;  %v6402_v33 = vld [vmem:[%s7958_s4 + $0x1f0] sm:$0xff]   ;;  %v2985_v63 = vshrl.u32 %v2960_v42, 16  ;;  %v2998_v21 = vshrl.u32 %v2961_v57, 16  ;;  %v3275_v3 = vrot.slane %v3273_v29, 4  ;;  %v3438_v57 = vld [vmem:[#allocation2 + $0x2c] sm:$0x1] }
 0x22d   : > { %4665 = vmatprep.mubr.bf16.mxu0 %v6392_v53  ;;  %v2689_v7 = vsel %vm7442_vm12, %v2684_v58, %v2688_v10  ;;  %6073 = vmatprep.subr.bf16.mxu0 %v6402_v33  ;;  %v5362_v53 = vcombine.low %v2843_v9, %v2846_v52  ;;  %v3268_v56 = vrot.slane %v3266_v1, 4  ;;  %v3477_v10 = vshll.u32 %v3435_v12, 16  ;;  %v2965_v9 = vld [vmem:[#allocation2 + $0x20] sm:$0x1] }
 0x22e   : > { %4568 = vmatprep.mubr.bf16.mxu1 %v5345_v4  ;;  %v5346_v2 = vcombine.low %v2689_v7, %v2699_v31  ;;  %6074 = vmatpush3.bf16.msra.mxu0 %v6403_v38  ;;  %v2987_v48 = vrot.slane %v2985_v63, 4  ;;  %v3000_v25 = vrot.slane %v2998_v21, 4  ;;  %v6408_v7 = vld [vmem:[%s7958_s4 + $0x208] sm:$0xff]   ;;  %v3276_v33 = vrot.slane %v3221_v28, 5 }
 0x22f   : > { %6075 = vmatprep.subr.bf16.mxu0 %v6404_v39  ;;  %v3270_v4 = vsel %vm7450_vm14, %v3268_v56, %v3269_v43  ;;  %v3479_v58 = vrot.slane %v3477_v10, 5  ;;  %v3009_v16 = vshrl.u32 %v2963_v30, 16  ;;  %v3437_v56 = vld [vmem:[#allocation2 + $0x28] sm:$0xf]  ;;  %v3283_v28 = vrot.slane %v3224_v49, 5 }
 0x230   : > { %v2991_v50 = vor.u32 %v2990_v37, %v2987_v48  ;;  %v3001_v51 = vor.u32 %v3000_v25, %v2996_v18  ;;  %v3491_v26 = vshll.u32 %v3437_v56, 16 }
 0x231   : > { %v3011_v19 = vrot.slane %v3009_v16, 4 }
 0x232   : > { %4569 = vmatmul.mubr.bf16.gmra.mrb[104].mxu1 %v6390_v41  ;;  %v3216_v41 = vld [vmem:[#allocation2 + $0xc] sm:$0xe]  ;;  %6076 = vmatpush3.bf16.msra.mxu0 %v6405_v35  ;;  %v2992_v23 = vrot.slane %v2991_v50, 4  ;;  %v3002_v47 = vrot.slane %v3001_v51, 4  ;;  %v3277_v35 = vsel %vm7450_vm14, %v3275_v3, %v3276_v33  ;;  %v6412_v51 = vld [vmem:[%s7958_s4 + $0x218] sm:$0xff]  }
 0x233   : > { %4576 = vmatprep.mubr.bf16.mxu1 %v5346_v2  ;;  %v5379_v34 = vrot.slane %v3216_v41, 9  ;;  %v2964_v2 = vld [vmem:[#allocation2 + $0x1c] sm:$0xf]  ;;  %v3274_v41 = vsel %vm7450_vm14, %v5380_v40, %v3273_v29  ;;  %v2968_v40 = vld [vmem:[#allocation2 + $0x2c] sm:$0x1] }
 0x234   : > { %4666 = vmatmul.mubr.bf16.gmra.mrb[124].mxu0 %v5361_v54  ;;  %v3461_v54 = vshll.u32 %v3433_v24, 16  ;;  %v2997_v27 = vsel %vm7442_vm12, %v2992_v23, %v2996_v18  ;;  %v3007_v44 = vsel %vm7442_vm12, %v3002_v47, %v3006_v17  ;;  %v3022_v42 = vshrl.u32 %v2964_v2, 16  ;;  %v3222_v24 = vld [vmem:[#allocation2 + $0x24] sm:$0xe]  ;;  %v3223_v17 = vld [vmem:[#allocation2 + $0x28] sm:$0xf] }
 0x235   : > { %4673 = vmatprep.mubr.bf16.mxu0 %v6400_v61  ;;  %v3267_v0 = vsel %vm7450_vm14, %v5379_v34, %v3266_v1  ;;  %v3473_v61 = vrot.slane %v3471_v11, 4  ;;  %v5371_v38 = vcombine.low %v2997_v27, %v3007_v44  ;;  %v3012_v34 = vshll.u32 %v2963_v30, 16  ;;  %v3439_v44 = vld [vmem:[#allocation2 + $0x30] sm:$0xf] }
 0x236   : > { %v5387_v55 = vcombine.low %v3267_v0, %v3270_v4  ;;  %v3463_v13 = vrot.slane %v3461_v54, 5  ;;  %v3018_v1 = vshll.u32 %v2964_v2, 16  ;;  %v3028_v0 = vshll.u32 %v2965_v9, 16 }
 0x237   : > { %v3474_v31 = vor.u32 %v3473_v61, %v3469_v8  ;;  %v5388_v63 = vcombine.low %v3274_v41, %v3277_v35  ;;  %v3014_v5 = vrot.slane %v3012_v34, 5  ;;  %v3024_v4 = vrot.slane %v3022_v42, 4  ;;  %v6414_v41 = vld [vmem:[%s7958_s4 + $0x220] sm:$0xff]  }
 0x238   : > { %v3020_v45 = vrot.slane %v3018_v1, 5  ;;  %v3030_v48 = vrot.slane %v3028_v0, 5  ;;  %v3501_v54 = vshll.u32 %v3438_v57, 16  ;;  %v5381_v50 = vrot.slane %v3222_v24, 9  ;;  %v3441_v1 = vld [vmem:[#allocation2 + $0x38] sm:$0x1] }
 0x239   : > { %v3475_v52 = vrot.slane %v3474_v31, 4  ;;  %v3015_v37 = vor.u32 %v3014_v5, %v3011_v19  ;;  %v3280_v61 = vrot.slane %v3223_v17, 5  ;;  %v7655_v31 = vld [vmem:[#allocation2 + $0x3c] sm:$0xff]   ;;  %v3052_v0 = vshll.u32 %v2968_v40, 16  ;;  %v3225_v19 = vld [vmem:[#allocation2 + $0x30] sm:$0xe] }
 0x23a   : > { %4577 = vmatmul.mubr.bf16.gmra.mrb[108].mxu1 %v6398_v22  ;;  %v3460_v22 = vrot.slane %v3458_v32, 4  ;;  %v3025_v12 = vor.u32 %v3024_v4, %v3020_v45  ;;  %v3495_v32 = vshrl.u32 %v3437_v56, 16  ;;  %v3503_v47 = vrot.slane %v3501_v54, 5  ;;  %v6416_v24 = vld [vmem:[%s7958_s4 + $0x228] sm:$0xff]   ;;  %v7671_v17 = vld [vmem:[#allocation2 + $0x54] sm:$0xff]  }
 0x23b   : > { %4714 = vmatprep.mubr.bf16.mxu1 %v5387_v55  ;;  %v3480_v60 = vsel %vm7442_vm12, %v3475_v52, %v3479_v58  ;;  %v6410_v55 = vld [vmem:[%s7958_s4 + $0x210] sm:$0xff]   ;;  %v3016_v11 = vrot.slane %v3015_v37, 4  ;;  %v2967_v58 = vld [vmem:[#allocation2 + $0x28] sm:$0xf]  ;;  %v3282_v27 = vrot.slane %v3280_v61, 4  ;;  %v3509_v4 = vshll.u32 %v3439_v44, 16 }
 0x23c   : > { %4674 = vmatmul.mubr.bf16.gmra.mrb[128].mxu0 %v5362_v53  ;;  %v3464_v62 = vor.u32 %v3463_v13, %v3460_v22  ;;  %v3436_v53 = vld [vmem:[#allocation2 + $0x24] sm:$0xf]  ;;  %v3493_v13 = vrot.slane %v3491_v26, 5  ;;  %v3026_v20 = vrot.slane %v3025_v12, 4  ;;  %v3497_v23 = vrot.slane %v3495_v32, 4 }
 0x23d   : > { %v3482_v18 = vshrl.u32 %v3436_v53, 16  ;;  %v3485_v25 = vshll.u32 %v3436_v53, 16  ;;  %v3021_v46 = vsel %vm7442_vm12, %v3016_v11, %v3020_v45  ;;  %v3284_v52 = vsel %vm7450_vm14, %v3282_v27, %v3283_v28  ;;  %v7662_v53 = vld [vmem:[#allocation2 + $0x48] sm:$0xff]   ;;  %v3227_v26 = vld [vmem:[#allocation2 + $0x38] sm:$0x1]  ;;  %v6418_v27 = vld [vmem:[%s7958_s4 + $0x230] sm:$0xff]  }
 0x23e   : > { %v3465_v39 = vrot.slane %v3464_v62, 4  ;;  %v3498_v30 = vor.u32 %v3497_v23, %v3493_v13  ;;  %v3042_v16 = vshll.u32 %v2967_v58, 16  ;;  %v3046_v34 = vshrl.u32 %v2967_v58, 16  ;;  %v3442_v28 = vld [vmem:[#allocation2 + $0x3c] sm:$0xf] }
 0x23f   : > { %v3484_v10 = vrot.slane %v3482_v18, 4  ;;  %v3487_v22 = vrot.slane %v3485_v25, 5  ;;  %v3054_v45 = vrot.slane %v3052_v0, 5  ;;  %v3511_v32 = vrot.slane %v3509_v4, 5  ;;  %v7694_v0 = vld [vmem:[#allocation2 + $0x6c] sm:$0xff]  }
 0x240   : > { %v3470_v43 = vsel %vm7442_vm12, %v3465_v39, %v3469_v8  ;;  %v2966_v8 = vld [vmem:[#allocation2 + $0x24] sm:$0xf]  ;;  %v3440_v39 = vld [vmem:[#allocation2 + $0x34] sm:$0xf]  ;;  %v3499_v3 = vrot.slane %v3498_v30, 4  ;;  %v3044_v57 = vrot.slane %v3042_v16, 5 }
 0x241   : > { %v5403_v21 = vcombine.low %v3470_v43, %v3480_v60  ;;  %v3488_v62 = vor.u32 %v3487_v22, %v3484_v10  ;;  %v3033_v29 = vshrl.u32 %v2966_v8, 16  ;;  %v3048_v60 = vrot.slane %v3046_v34, 4  ;;  %v3444_v16 = vld [vmem:[#allocation2 + $0x44] sm:$0x1] }
 0x242   : > { %4715 = vmatmul.mubr.bf16.vlgmr.msra.gmra.mrb[112].mxu1 %v5371_v38  ;;  %v3036_v38 = vshll.u32 %v2966_v8, 16  ;;  %v3504_v56 = vsel %vm7442_vm12, %v3499_v3, %v3503_v47  ;;  %v3515_v18 = vshll.u32 %v3440_v39, 16  ;;  %v3519_v25 = vshrl.u32 %v3440_v39, 16 }
 0x243   : > { %6178 = vmatpush3.bf16.msra.mxu1 %v6406_v14  ;;  %4722 = vmatprep.mubr.bf16.mxu1 %v5388_v63  ;;  %v7643_v14 = vld [vmem:[#allocation2 + $0x30] sm:$0xff]   ;;  %v3489_v2 = vrot.slane %v3488_v62, 4  ;;  %v3035_v9 = vrot.slane %v3033_v29, 4  ;;  %v3506_v63 = vshrl.u32 %v3439_v44, 16  ;;  %v3525_v54 = vshll.u32 %v3441_v1, 16  ;;  %v7683_v44 = vld [vmem:[#allocation2 + $0x60] sm:$0xff]  }
 0x244   : > { %6179 = vmatprep.subr.bf16.mxu1 %v6408_v7  ;;  %4811 = vmatprep.mubr.bf16.mxu0 %v5403_v21  ;;  %v3038_v42 = vrot.slane %v3036_v38, 5  ;;  %v5382_v49 = vrot.slane %v3225_v19, 9  ;;  %v3517_v11 = vrot.slane %v3515_v18, 5  ;;  %v3521_v10 = vrot.slane %v3519_v25, 4  ;;  %v2971_v62 = vld [vmem:[#allocation2 + $0x38] sm:$0x1] }
 0x245   : > { %4812 = vmatmul.mubr.bf16.vlgmr.msra.gmra.mrb[132].mxu0 %v7621_v6  ;;  %v3031_v6 = vsel %vm7442_vm12, %v3026_v20, %v3030_v48  ;;  %v3494_v43 = vsel %vm7442_vm12, %v3489_v2, %v3493_v13  ;;  %v3226_v48 = vld [vmem:[#allocation2 + $0x34] sm:$0xf]  ;;  %v3508_v37 = vrot.slane %v3506_v63, 4  ;;  %v3527_v23 = vrot.slane %v3525_v54, 5  ;;  %v3228_v19 = vld [vmem:[#allocation2 + $0x3c] sm:$0xe] }
 0x246   : > { %v5372_v33 = vcombine.low %v3021_v46, %v3031_v6  ;;  %v5404_v5 = vcombine.low %v3494_v43, %v3504_v56  ;;  %v3039_v21 = vor.u32 %v3038_v42, %v3035_v9  ;;  %v3287_v22 = vrot.slane %v3226_v48, 5  ;;  %v2970_v13 = vld [vmem:[#allocation2 + $0x34] sm:$0xf]  ;;  %v6420_v42 = vld [vmem:[%s7958_s4 + $0x238] sm:$0xff]  }
 0x247   : > { %6180 = vmatpush3.bf16.msra.mxu1 %v6408_v7  ;;  %v3281_v7 = vsel %vm7450_vm14, %v5381_v50, %v3280_v61  ;;  %v2969_v50 = vld [vmem:[#allocation2 + $0x30] sm:$0xf]  ;;  %v3512_v20 = vor.u32 %v3511_v32, %v3508_v37  ;;  %v3290_v47 = vrot.slane %v3227_v26, 5  ;;  %v3522_v58 = vor.u32 %v3521_v10, %v3517_v11  ;;  %v2972_v26 = vld [vmem:[#allocation2 + $0x3c] sm:$0xf] }
 0x248   : > { %6181 = vmatprep.subr.bf16.mxu1 %v6410_v55  ;;  %v5389_v35 = vcombine.low %v3281_v7, %v3284_v52  ;;  %4819 = vmatprep.mubr.bf16.mxu0 %v5404_v5  ;;  %v3040_v12 = vrot.slane %v3039_v21, 4  ;;  %v3288_v46 = vsel %vm7450_vm14, %v5382_v49, %v3287_v22  ;;  %v3057_v6 = vshrl.u32 %v2969_v50, 16  ;;  %v3443_v7 = vld [vmem:[#allocation2 + $0x40] sm:$0xf] }
 0x249   : > { %v3513_v29 = vrot.slane %v3512_v20, 4  ;;  %v3060_v30 = vshll.u32 %v2969_v50, 16  ;;  %v3066_v9 = vshll.u32 %v2970_v13, 16  ;;  %v3070_v38 = vshrl.u32 %v2970_v13, 16  ;;  %v3229_v5 = vld [vmem:[#allocation2 + $0x40] sm:$0xf] }
 0x24a   : > { %4723 = vmatmul.mubr.bf16.gmra.mrb[116].mxu1 %v5372_v33  ;;  %v3045_v8 = vsel %vm7442_vm12, %v3040_v12, %v3044_v57  ;;  %v3523_v33 = vrot.slane %v3522_v58, 4  ;;  %v3059_v3 = vrot.slane %v3057_v6, 4  ;;  %v3533_v63 = vshll.u32 %v3442_v28, 16  ;;  %v3446_v6 = vld [vmem:[#allocation2 + $0x4c] sm:$0xf] }
 0x24b   : > { %6182 = vmatpush3.bf16.msra.mxu1 %v6410_v55  ;;  %4730 = vmatprep.mubr.bf16.mxu1 %v5389_v35  ;;  %v3049_v55 = vor.u32 %v3048_v60, %v3044_v57  ;;  %v3518_v39 = vsel %vm7442_vm12, %v3513_v29, %v3517_v11  ;;  %v3062_v52 = vrot.slane %v3060_v30, 5  ;;  %v3068_v1 = vrot.slane %v3066_v9, 5  ;;  %v3231_v9 = vld [vmem:[#allocation2 + $0x48] sm:$0xe] }
 0x24c   : > { %6183 = vmatprep.subr.bf16.mxu1 %v6412_v51  ;;  %v3528_v34 = vsel %vm7442_vm12, %v3523_v33, %v3527_v23  ;;  %v3072_v43 = vrot.slane %v3070_v38, 4  ;;  %v3076_v35 = vshll.u32 %v2971_v62, 16  ;;  %v3530_v60 = vshrl.u32 %v3442_v28, 16  ;;  %v2974_v23 = vld [vmem:[#allocation2 + $0x44] sm:$0x1] }
 0x24d   : > { %4820 = vmatmul.mubr.bf16.gmra.mrb[136].mxu0 %v7630_v15  ;;  %v3289_v15 = vrot.slane %v3287_v22, 4  ;;  %v5405_v56 = vcombine.low %v3518_v39, %v3528_v34  ;;  %v3063_v57 = vor.u32 %v3062_v52, %v3059_v3  ;;  %v3539_v4 = vshll.u32 %v3443_v7, 16  ;;  %v2973_v22 = vld [vmem:[#allocation2 + $0x40] sm:$0xf]  ;;  %v3232_v52 = vld [vmem:[#allocation2 + $0x4c] sm:$0xf] }
 0x24e   : > { %v3073_v21 = vor.u32 %v3072_v43, %v3068_v1  ;;  %v3543_v48 = vshrl.u32 %v3443_v7, 16  ;;  %v3532_v37 = vrot.slane %v3530_v60, 4  ;;  %v3535_v18 = vrot.slane %v3533_v63, 5 }
 0x24f   : > { %6184 = vmatpush3.bf16.msra.mxu1 %v6412_v51  ;;  %v3050_v51 = vrot.slane %v3049_v55, 4  ;;  %v3291_v2 = vsel %vm7450_vm14, %v3289_v15, %v3290_v47  ;;  %v3230_v55 = vld [vmem:[#allocation2 + $0x44] sm:$0x1]  ;;  %4827 = vmatprep.mubr.bf16.mxu0 %v5405_v56  ;;  %v3549_v25 = vshll.u32 %v3444_v16, 16  ;;  %v3541_v32 = vrot.slane %v3539_v4, 5 }
 0x250   : > { %6185 = vmatprep.subr.bf16.mxu1 %v6414_v41  ;;  %v3074_v12 = vrot.slane %v3073_v21, 4  ;;  %v3545_v54 = vrot.slane %v3543_v48, 4  ;;  %v5383_v49 = vrot.slane %v3228_v19, 9  ;;  %v3294_v10 = vrot.slane %v3229_v5, 5  ;;  %v3445_v47 = vld [vmem:[#allocation2 + $0x48] sm:$0xf] }
 0x251   : > { %v3055_v61 = vsel %vm7442_vm12, %v3050_v51, %v3054_v45  ;;  %v3078_v45 = vrot.slane %v3076_v35, 5  ;;  %v3536_v51 = vor.u32 %v3535_v18, %v3532_v37  ;;  %v3551_v11 = vrot.slane %v3549_v25, 5  ;;  %v3233_v16 = vld [vmem:[#allocation2 + $0x50] sm:$0x1] }
 0x252   : > { %v5373_v40 = vcombine.low %v3045_v8, %v3055_v61  ;;  %v3546_v8 = vor.u32 %v3545_v54, %v3541_v32  ;;  %v3297_v20 = vrot.slane %v3230_v55, 5  ;;  %v3296_v15 = vrot.slane %v3294_v10, 4 }
 0x253   : > { %6186 = vmatpush3.bf16.msra.mxu1 %v6414_v41  ;;  %v5390_v41 = vcombine.low %v3288_v46, %v3291_v2  ;;  %v3079_v13 = vsel %vm7442_vm12, %v3074_v12, %v3078_v45  ;;  %v3537_v58 = vrot.slane %v3536_v51, 4  ;;  %v3295_v46 = vsel %vm7450_vm14, %v5383_v49, %v3294_v10  ;;  %v3447_v2 = vld [vmem:[#allocation2 + $0x50] sm:$0x1]  ;;  %v2976_v49 = vld [vmem:[#allocation2 + $0x4c] sm:$0xf] }
 0x254   : > { %6187 = vmatprep.subr.bf16.mxu1 %v6416_v24  ;;  %4731 = vmatmul.mubr.bf16.gmra.mrb[120].mxu1 %v5373_v40  ;;  %v3547_v62 = vrot.slane %v3546_v8, 4  ;;  %v3084_v40 = vshll.u32 %v2972_v26, 16  ;;  %v3090_v29 = vshll.u32 %v2973_v22, 16  ;;  %v3298_v7 = vsel %vm7450_vm14, %v3296_v15, %v3297_v20  ;;  %v2977_v10 = vld [vmem:[#allocation2 + $0x50] sm:$0x1] }
 0x255   : > { %4738 = vmatprep.mubr.bf16.mxu1 %v5390_v41  ;;  %4828 = vmatmul.mubr.bf16.gmra.mrb[140].mxu0 %v7643_v14  ;;  %v3081_v14 = vshrl.u32 %v2972_v26, 16  ;;  %v3542_v30 = vsel %vm7442_vm12, %v3537_v58, %v3541_v32  ;;  %v3100_v33 = vshll.u32 %v2974_v23, 16  ;;  %v5391_v39 = vcombine.low %v3295_v46, %v3298_v7  ;;  %v3449_v15 = vld [vmem:[#allocation2 + $0x58] sm:$0xf] }
 0x256   : > { %v3552_v38 = vsel %vm7442_vm12, %v3547_v62, %v3551_v11  ;;  %v3086_v41 = vrot.slane %v3084_v40, 5  ;;  %v3092_v3 = vrot.slane %v3090_v29, 5  ;;  %v3554_v35 = vshrl.u32 %v3445_v47, 16 }
 0x257   : > { %6188 = vmatpush3.bf16.msra.mxu1 %v6416_v24  ;;  %v3064_v24 = vrot.slane %v3063_v57, 4  ;;  %v3083_v28 = vrot.slane %v3081_v14, 4  ;;  %v5406_v34 = vcombine.low %v3542_v30, %v3552_v38  ;;  %v3102_v43 = vrot.slane %v3100_v33, 5  ;;  %v3448_v14 = vld [vmem:[#allocation2 + $0x54] sm:$0xf] }
 0x258   : > { %6189 = vmatprep.subr.bf16.mxu1 %v6418_v27  ;;  %v3557_v57 = vshll.u32 %v3445_v47, 16  ;;  %v3563_v60 = vshll.u32 %v3446_v6, 16  ;;  %v3567_v63 = vshrl.u32 %v3446_v6, 16  ;;  %v3556_v5 = vrot.slane %v3554_v35, 4  ;;  %v3450_v6 = vld [vmem:[#allocation2 + $0x5c] sm:$0x1] }
 0x259   : > { %v3069_v50 = vsel %vm7442_vm12, %v3064_v24, %v3068_v1  ;;  %v3087_v56 = vor.u32 %v3086_v41, %v3083_v28  ;;  %4835 = vmatprep.mubr.bf16.mxu0 %v5406_v34  ;;  %v3573_v21 = vshll.u32 %v3447_v2, 16  ;;  %v5384_v45 = vrot.slane %v3231_v9, 9  ;;  %v3234_v30 = vld [vmem:[#allocation2 + $0x54] sm:$0xe]  ;;  %v3235_v9 = vld [vmem:[#allocation2 + $0x58] sm:$0xf] }
 0x25a   : > { %v5374_v61 = vcombine.low %v3069_v50, %v3079_v13  ;;  %v3559_v48 = vrot.slane %v3557_v57, 5  ;;  %v3565_v55 = vrot.slane %v3563_v60, 5  ;;  %v3569_v24 = vrot.slane %v3567_v63, 4  ;;  %v3236_v38 = vld [vmem:[#allocation2 + $0x5c] sm:$0x1] }
 0x25b   : > { %6190 = vmatpush3.bf16.msra.mxu1 %v6418_v27  ;;  %v3094_v27 = vshrl.u32 %v2973_v22, 16  ;;  %v3088_v4 = vrot.slane %v3087_v56, 4  ;;  %v3575_v18 = vrot.slane %v3573_v21, 5  ;;  %v3301_v25 = vrot.slane %v3232_v52, 5  ;;  %v2978_v35 = vld [vmem:[#allocation2 + $0x54] sm:$0xf] }
 0x25c   : > { %6191 = vmatprep.subr.bf16.mxu1 %v6420_v42  ;;  %4739 = vmatmul.mubr.bf16.gmra.mrb[124].mxu1 %v5374_v61  ;;  %v3304_v26 = vrot.slane %v3233_v16, 5  ;;  %v3560_v32 = vor.u32 %v3559_v48, %v3556_v5  ;;  %v3570_v54 = vor.u32 %v3569_v24, %v3565_v55  ;;  %v3114_v58 = vshll.u32 %v2976_v49, 16  ;;  %v2979_v63 = vld [vmem:[#allocation2 + $0x58] sm:$0xf] }
 0x25d   : > { %v3096_v1 = vrot.slane %v3094_v27, 4  ;;  %4746 = vmatprep.mubr.bf16.mxu1 %v5391_v39  ;;  %4836 = vmatmul.mubr.bf16.gmra.mrb[144].mxu0 %v7655_v31  ;;  %v3093_v12 = vsel %vm7442_vm12, %v3088_v4, %v3092_v3  ;;  %v3302_v31 = vsel %vm7450_vm14, %v5384_v45, %v3301_v25  ;;  %v3303_v11 = vrot.slane %v3301_v25, 4 }
 0x25e   : > { %v3561_v8 = vrot.slane %v3560_v32, 4  ;;  %v3571_v20 = vrot.slane %v3570_v54, 4  ;;  %v3118_v46 = vshrl.u32 %v2976_v49, 16  ;;  %v3124_v29 = vshll.u32 %v2977_v10, 16 }
 0x25f   : > { %6192 = vmatpush3.bf16.msra.mxu1 %v6420_v42  ;;  %v2975_v42 = vld [vmem:[#allocation2 + $0x48] sm:$0xf]  ;;  %v3097_v19 = vor.u32 %v3096_v1, %v3092_v3  ;;  %v3305_v47 = vsel %vm7450_vm14, %v3303_v11, %v3304_v26  ;;  %v3116_v33 = vrot.slane %v3114_v58, 5  ;;  %v3578_v41 = vshrl.u32 %v3448_v14, 16 }
 0x260   : > { %v3105_v50 = vshrl.u32 %v2975_v42, 16  ;;  %v3108_v22 = vshll.u32 %v2975_v42, 16  ;;  %v3566_v62 = vsel %vm7442_vm12, %v3561_v8, %v3565_v55  ;;  %v3576_v28 = vsel %vm7442_vm12, %v3571_v20, %v3575_v18 }
 0x261   : > { %v3098_v37 = vrot.slane %v3097_v19, 4  ;;  %v5392_v40 = vcombine.low %v3302_v31, %v3305_v47  ;;  %v5407_v7 = vcombine.low %v3566_v62, %v3576_v28  ;;  %v3120_v2 = vrot.slane %v3118_v46, 4  ;;  %v3237_v47 = vld [vmem:[#allocation2 + $0x60] sm:$0xe] }
 0x262   : > { %v3107_v23 = vrot.slane %v3105_v50, 4  ;;  %v3110_v61 = vrot.slane %v3108_v22, 5  ;;  %v3126_v39 = vrot.slane %v3124_v29, 5  ;;  %v3581_v3 = vshll.u32 %v3448_v14, 16  ;;  %v3451_v50 = vld [vmem:[#allocation2 + $0x60] sm:$0xf] }
 0x263   : > { %v3103_v51 = vsel %vm7442_vm12, %v3098_v37, %v3102_v43  ;;  %v3587_v52 = vshll.u32 %v3449_v15, 16  ;;  %4843 = vmatprep.mubr.bf16.mxu0 %v5407_v7  ;;  %v3121_v34 = vor.u32 %v3120_v2, %v3116_v33  ;;  %v3591_v1 = vshrl.u32 %v3449_v15, 16 }
 0x264   : > { %v5375_v13 = vcombine.low %v3093_v12, %v3103_v51  ;;  %v3111_v27 = vor.u32 %v3110_v61, %v3107_v23  ;;  %v3597_v43 = vshll.u32 %v3450_v6, 16  ;;  %v3580_v42 = vrot.slane %v3578_v41, 4  ;;  %v3452_v51 = vld [vmem:[#allocation2 + $0x64] sm:$0xf] }
 0x265   : > { %4844 = vmatmul.mubr.bf16.gmra.mrb[148].mxu0 %v7662_v53  ;;  %v3583_v56 = vrot.slane %v3581_v3, 5  ;;  %v3589_v57 = vrot.slane %v3587_v52, 5  ;;  %v5385_v60 = vrot.slane %v3234_v30, 9  ;;  %v3122_v5 = vrot.slane %v3121_v34, 4  ;;  %v2980_v53 = vld [vmem:[#allocation2 + $0x5c] sm:$0x1] }
 0x266   : > { %4747 = vmatmul.mubr.bf16.gmra.mrb[128].mxu1 %v5375_v13  ;;  %v3112_v16 = vrot.slane %v3111_v27, 4  ;;  %v3593_v21 = vrot.slane %v3591_v1, 4  ;;  %v3599_v45 = vrot.slane %v3597_v43, 5  ;;  %v3308_v48 = vrot.slane %v3235_v9, 5  ;;  %v3453_v13 = vld [vmem:[#allocation2 + $0x68] sm:$0x1] }
 0x267   : > { %4754 = vmatprep.mubr.bf16.mxu1 %v5392_v40  ;;  %v3584_v4 = vor.u32 %v3583_v56, %v3580_v42  ;;  %v3311_v55 = vrot.slane %v3236_v38, 5  ;;  %v3129_v24 = vshrl.u32 %v2978_v35, 16  ;;  %v3127_v37 = vsel %vm7442_vm12, %v3122_v5, %v3126_v39  ;;  %v3238_v61 = vld [vmem:[#allocation2 + $0x64] sm:$0xf]  ;;  %v3239_v30 = vld [vmem:[#allocation2 + $0x68] sm:$0x1] }
 0x268   : > { %v3117_v19 = vsel %vm7442_vm12, %v3112_v16, %v3116_v33  ;;  %v3594_v18 = vor.u32 %v3593_v21, %v3589_v57  ;;  %v3132_v25 = vshll.u32 %v2978_v35, 16  ;;  %v3138_v26 = vshll.u32 %v2979_v63, 16  ;;  %v2981_v9 = vld [vmem:[#allocation2 + $0x60] sm:$0xf]  ;;  %v2982_v52 = vld [vmem:[#allocation2 + $0x64] sm:$0xf] }
 0x269   : > { %v5376_v12 = vcombine.low %v3117_v19, %v3127_v37  ;;  %v3585_v32 = vrot.slane %v3584_v4, 4  ;;  %v3309_v54 = vsel %vm7450_vm14, %v5385_v60, %v3308_v48  ;;  %v3310_v49 = vrot.slane %v3308_v48, 4  ;;  %v2983_v5 = vld [vmem:[#allocation2 + $0x68] sm:$0x1] }
 0x26a   : > { %v3595_v31 = vrot.slane %v3594_v18, 4  ;;  %v3131_v11 = vrot.slane %v3129_v24, 4  ;;  %v3134_v10 = vrot.slane %v3132_v25, 5  ;;  %v3140_v22 = vrot.slane %v3138_v26, 5  ;;  %v3455_v25 = vld [vmem:[#allocation2 + $0x70] sm:$0xf] }
 0x26b   : > { %v3590_v8 = vsel %vm7442_vm12, %v3585_v32, %v3589_v57  ;;  %v3312_v20 = vsel %vm7450_vm14, %v3310_v49, %v3311_v55  ;;  %v3142_v23 = vshrl.u32 %v2979_v63, 16  ;;  %v3148_v14 = vshll.u32 %v2980_v53, 16  ;;  %v3454_v55 = vld [vmem:[#allocation2 + $0x6c] sm:$0xf]  ;;  %v3456_v49 = vld [vmem:[#allocation2 + $0x74] sm:$0x1] }
 0x26c   : > { %v3600_v58 = vsel %vm7442_vm12, %v3595_v31, %v3599_v45  ;;  %v5393_v46 = vcombine.low %v3309_v54, %v3312_v20  ;;  %v3135_v15 = vor.u32 %v3134_v10, %v3131_v11  ;;  %v3602_v62 = vshrl.u32 %v3451_v50, 16  ;;  %v3689_v10 = vld [vmem:[#allocation2 + $0x18] sm:$0xe] }
 0x26d   : > { %v5408_v28 = vcombine.low %v3590_v8, %v3600_v58  ;;  %v3144_v40 = vrot.slane %v3142_v23, 4  ;;  %v3150_v29 = vrot.slane %v3148_v14, 5  ;;  %v3605_v6 = vshll.u32 %v3451_v50, 16  ;;  %v3690_v23 = vld [vmem:[#allocation2 + $0x1c] sm:$0xf] }
 0x26e   : > { %4755 = vmatmul.mubr.bf16.gmra.mrb[132].mxu1 %v5376_v12  ;;  %v3136_v7 = vrot.slane %v3135_v15, 4  ;;  %v3604_v27 = vrot.slane %v3602_v62, 4  ;;  %v3611_v33 = vshll.u32 %v3452_v51, 16  ;;  %v3615_v2 = vshrl.u32 %v3452_v51, 16  ;;  %v3691_v14 = vld [vmem:[#allocation2 + $0x20] sm:$0x1] }
 0x26f   : > { %4762 = vmatprep.mubr.bf16.mxu1 %v5393_v46  ;;  %4851 = vmatprep.mubr.bf16.mxu0 %v5408_v28  ;;  %v3145_v38 = vor.u32 %v3144_v40, %v3140_v22  ;;  %v3607_v39 = vrot.slane %v3605_v6, 5  ;;  %v3621_v41 = vshll.u32 %v3453_v13, 16  ;;  %v5386_v3 = vrot.slane %v3237_v47, 9  ;;  %v3692_v15 = vld [vmem:[#allocation2 + $0x24] sm:$0xe] }
 0x270   : > { %4852 = vmatmul.mubr.bf16.gmra.mrb[152].mxu0 %v7671_v17  ;;  %v3141_v16 = vsel %vm7442_vm12, %v3136_v7, %v3140_v22  ;;  %v3613_v34 = vrot.slane %v3611_v33, 5  ;;  %v3617_v1 = vrot.slane %v3615_v2, 4  ;;  %v3315_v43 = vrot.slane %v3238_v61, 5  ;;  %v3693_v6 = vld [vmem:[#allocation2 + $0x28] sm:$0xf] }
 0x271   : > { %v3146_v35 = vrot.slane %v3145_v38, 4  ;;  %v3608_v42 = vor.u32 %v3607_v39, %v3604_v27  ;;  %v3623_v56 = vrot.slane %v3621_v41, 5  ;;  %v3318_v57 = vrot.slane %v3239_v30, 5  ;;  %v3694_v2 = vld [vmem:[#allocation2 + $0x2c] sm:$0x1] }
 0x272   : > { %v3618_v60 = vor.u32 %v3617_v1, %v3613_v34  ;;  %v3316_v63 = vsel %vm7450_vm14, %v5386_v3, %v3315_v43  ;;  %v3317_v19 = vrot.slane %v3315_v43, 4  ;;  %v3153_v21 = vshrl.u32 %v2981_v9, 16  ;;  %v3695_v3 = vld [vmem:[#allocation2 + $0x30] sm:$0xe]  ;;  %v3696_v43 = vld [vmem:[#allocation2 + $0x34] sm:$0xf] }
 0x273   : > { %v3151_v17 = vsel %vm7442_vm12, %v3146_v35, %v3150_v29  ;;  %v3609_v45 = vrot.slane %v3608_v42, 4  ;;  %v3156_v4 = vshll.u32 %v2981_v9, 16  ;;  %v3162_v48 = vshll.u32 %v2982_v52, 16 }
 0x274   : > { %v5377_v24 = vcombine.low %v3141_v16, %v3151_v17  ;;  %v3619_v37 = vrot.slane %v3618_v60, 4  ;;  %v3319_v18 = vsel %vm7450_vm14, %v3317_v19, %v3318_v57  ;;  %v3155_v53 = vrot.slane %v3153_v21, 4  ;;  %v3698_v60 = vld [vmem:[#allocation2 + $0x3c] sm:$0xe]  ;;  %v3699_v17 = vld [vmem:[#allocation2 + $0x40] sm:$0xf] }
 0x275   : > { %v3614_v26 = vsel %vm7442_vm12, %v3609_v45, %v3613_v34  ;;  %v5394_v12 = vcombine.low %v3316_v63, %v3319_v18  ;;  %v3158_v32 = vrot.slane %v3156_v4, 5  ;;  %v3164_v54 = vrot.slane %v3162_v48, 5  ;;  %v3700_v45 = vld [vmem:[#allocation2 + $0x44] sm:$0x1]  ;;  %v3702_v18 = vld [vmem:[#allocation2 + $0x4c] sm:$0xf] }
 0x276   : > { %4763 = vmatmul.mubr.bf16.gmra.mrb[136].mxu1 %v5377_v24  ;;  %v3624_v50 = vsel %vm7442_vm12, %v3619_v37, %v3623_v56  ;;  %v3166_v51 = vshrl.u32 %v2982_v52, 16  ;;  %v3172_v31 = vshll.u32 %v2983_v5, 16  ;;  %v3626_v11 = vshrl.u32 %v3454_v55, 16  ;;  %v3701_v37 = vld [vmem:[#allocation2 + $0x48] sm:$0xe] }
 0x277   : > { %v5409_v22 = vcombine.low %v3614_v26, %v3624_v50  ;;  %4770 = vmatprep.mubr.bf16.mxu1 %v5394_v12  ;;  %v3159_v13 = vor.u32 %v3158_v32, %v3155_v53  ;;  %v3629_v8 = vshll.u32 %v3454_v55, 16  ;;  %v3635_v20 = vshll.u32 %v3455_v25, 16  ;;  %v3703_v53 = vld [vmem:[#allocation2 + $0x50] sm:$0x1] }
 0x278   : > { %v3168_v47 = vrot.slane %v3166_v51, 4  ;;  %v3174_v61 = vrot.slane %v3172_v31, 5  ;;  %v3628_v58 = vrot.slane %v3626_v11, 4  ;;  %v3639_v46 = vshrl.u32 %v3455_v25, 16  ;;  %v3705_v11 = vld [vmem:[#allocation2 + $0x58] sm:$0xf] }
 0x279   : > { %4859 = vmatprep.mubr.bf16.mxu0 %v5409_v22  ;;  %v3160_v62 = vrot.slane %v3159_v13, 4  ;;  %v3631_v28 = vrot.slane %v3629_v8, 5  ;;  %v3637_v40 = vrot.slane %v3635_v20, 5  ;;  %v3645_v29 = vshll.u32 %v3456_v49, 16  ;;  %v3706_v8 = vld [vmem:[#allocation2 + $0x5c] sm:$0x1] }
 0x27a   : > { %4860 = vmatmul.mubr.bf16.gmra.mrb[156].mxu0 %v7683_v44  ;;  %v3169_v30 = vor.u32 %v3168_v47, %v3164_v54  ;;  %v3641_v7 = vrot.slane %v3639_v46, 4  ;;  %v5411_v27 = vrot.slane %v3689_v10, 9  ;;  %v3739_v33 = vrot.slane %v3690_v23, 5  ;;  %v3697_v44 = vld [vmem:[#allocation2 + $0x38] sm:$0x1] }
 0x27b   : > { %v3165_v9 = vsel %vm7442_vm12, %v3160_v62, %v3164_v54  ;;  %v3632_v38 = vor.u32 %v3631_v28, %v3628_v58  ;;  %v3647_v39 = vrot.slane %v3645_v29, 5  ;;  %v3742_v41 = vrot.slane %v3691_v14, 5  ;;  %v3704_v54 = vld [vmem:[#allocation2 + $0x54] sm:$0xe]  ;;  %v3708_v58 = vld [vmem:[#allocation2 + $0x64] sm:$0xf] }
 0x27c   : > { %v3170_v52 = vrot.slane %v3169_v30, 4  ;;  %v3642_v16 = vor.u32 %v3641_v7, %v3637_v40  ;;  %v3740_v34 = vsel %vm7450_vm14, %v5411_v27, %v3739_v33  ;;  %v3741_v1 = vrot.slane %v3739_v33, 4  ;;  %v3710_v27 = vld [vmem:[#allocation2 + $0x6c] sm:$0xe]  ;;  %v3711_v33 = vld [vmem:[#allocation2 + $0x70] sm:$0xf] }
 0x27d   : > { %v3633_v35 = vrot.slane %v3632_v38, 4  ;;  %v5412_v42 = vrot.slane %v3692_v15, 9  ;;  %v3746_v56 = vrot.slane %v3693_v6, 5  ;;  %v3749_v57 = vrot.slane %v3694_v2, 5 }
 0x27e   : > { %v3175_v63 = vsel %vm7442_vm12, %v3170_v52, %v3174_v61  ;;  %v3643_v19 = vrot.slane %v3642_v16, 4  ;;  %v3743_v5 = vsel %vm7450_vm14, %v3741_v1, %v3742_v41  ;;  %v5413_v21 = vrot.slane %v3695_v3, 9  ;;  %v3707_v61 = vld [vmem:[#allocation2 + $0x60] sm:$0xe] }
 0x27f   : > { %v5378_v4 = vcombine.low %v3165_v9, %v3175_v63  ;;  %v3638_v48 = vsel %vm7442_vm12, %v3633_v35, %v3637_v40  ;;  %v5419_v55 = vcombine.low %v3740_v34, %v3743_v5  ;;  %v3747_v24 = vsel %vm7450_vm14, %v5412_v42, %v3746_v56  ;;  %v3709_v40 = vld [vmem:[#allocation2 + $0x68] sm:$0x1] }
 0x280   : > { %v3648_v25 = vsel %vm7442_vm12, %v3643_v19, %v3647_v39  ;;  %v3748_v26 = vrot.slane %v3746_v56, 4  ;;  %v3753_v12 = vrot.slane %v3696_v43, 5  ;;  %v3756_v32 = vrot.slane %v3697_v44, 5  ;;  %v3712_v39 = vld [vmem:[#allocation2 + $0x74] sm:$0x1] }
 0x281   : > { %4771 = vmatmul.mubr.bf16.gmra.mrb[140].mxu1 %v5378_v4  ;;  %v5410_v49 = vcombine.low %v3638_v48, %v3648_v25  ;;  %v5414_v50 = vrot.slane %v3698_v60, 9  ;;  %v3760_v51 = vrot.slane %v3699_v17, 5  ;;  %v3763_v31 = vrot.slane %v3700_v45, 5  ;;  %v7793_v4 = vld [vmem:[%s7959_s5] ss:$0 sm:$0xff] }
 0x282   : > { %6193 = vmatprep.mubr.bf16.mxu1 %v5419_v55  ;;  %v3750_v10 = vsel %vm7450_vm14, %v3748_v26, %v3749_v57  ;;  %v3754_v22 = vsel %vm7450_vm14, %v5413_v21, %v3753_v12  ;;  %v3755_v13 = vrot.slane %v3753_v12, 4  ;;  %v5415_v36 = vrot.slane %v3701_v37, 9 }
 0x283   : > { %4867 = vmatprep.mubr.bf16.mxu0 %v5410_v49  ;;  %v5420_v20 = vcombine.low %v3747_v24, %v3750_v10  ;;  %v3761_v23 = vsel %vm7450_vm14, %v5414_v50, %v3760_v51  ;;  %v3762_v14 = vrot.slane %v3760_v51, 4  ;;  %v3767_v47 = vrot.slane %v3702_v18, 5 }
 0x284   : > { %4868 = vmatmul.mubr.bf16.gmra.mrb[160].mxu0 %v7694_v0  ;;  %v3757_v46 = vsel %vm7450_vm14, %v3755_v13, %v3756_v32  ;;  %v3770_v15 = vrot.slane %v3703_v53, 5  ;;  %v5416_v62 = vrot.slane %v3704_v54, 9  ;;  %v3774_v28 = vrot.slane %v3705_v11, 5 }
 0x285   : > { %v5421_v29 = vcombine.low %v3754_v22, %v3757_v46  ;;  %v3764_v6 = vsel %vm7450_vm14, %v3762_v14, %v3763_v31  ;;  %v3768_v30 = vsel %vm7450_vm14, %v5415_v36, %v3767_v47  ;;  %v3769_v7 = vrot.slane %v3767_v47, 4 }
 0x286   : > { %v5422_v2 = vcombine.low %v3761_v23, %v3764_v6  ;;  %v3775_v0 = vsel %vm7450_vm14, %v5416_v62, %v3774_v28  ;;  %v3776_v9 = vrot.slane %v3774_v28, 4  ;;  %v3777_v38 = vrot.slane %v3706_v8, 5 }
 0x287   : > { %v3771_v41 = vsel %vm7450_vm14, %v3769_v7, %v3770_v15  ;;  %v5417_v3 = vrot.slane %v3707_v61, 9  ;;  %v3781_v52 = vrot.slane %v3708_v58, 5  ;;  %v3784_v16 = vrot.slane %v3709_v40, 5 }
 0x288   : > { %v5423_v34 = vcombine.low %v3768_v30, %v3771_v41  ;;  %v3778_v1 = vsel %vm7450_vm14, %v3776_v9, %v3777_v38  ;;  %v5418_v43 = vrot.slane %v3710_v27, 9  ;;  %v3788_v44 = vrot.slane %v3711_v33, 5 }
 0x289   : > { %6194 = vmatmul.mubr.bf16.vlgmr.msra.gmra.mrb[144].mxu1 %v5420_v20  ;;  %v5424_v35 = vcombine.low %v3775_v0, %v3778_v1  ;;  %v3782_v42 = vsel %vm7450_vm14, %v5417_v3, %v3781_v52  ;;  %v3783_v56 = vrot.slane %v3781_v52, 4  ;;  %v3791_v57 = vrot.slane %v3712_v39, 5 }
 0x28a   : > { %6197 = vmatprep.mubr.bf16.mxu1 %v5421_v29  ;;  %v3789_v60 = vsel %vm7450_vm14, %v5418_v43, %v3788_v44  ;;  %v3790_v63 = vrot.slane %v3788_v44, 4 }
 0x28b   : > { %v3785_v19 = vsel %vm7450_vm14, %v3783_v56, %v3784_v16 }
 0x28c   : > { %v5425_v5 = vcombine.low %v3782_v42, %v3785_v19  ;;  %v3792_v21 = vsel %vm7450_vm14, %v3790_v63, %v3791_v57 }
 0x28d   : > { %v5426_v17 = vcombine.low %v3789_v60, %v3792_v21 }
 0x291   : > { %6198 = vmatmul.mubr.bf16.gmra.mrb[148].mxu1 %v5422_v2 }
 0x292   : > { %6201 = vmatprep.mubr.bf16.mxu1 %v5423_v34 }
 0x299   : > { %6202 = vmatmul.mubr.bf16.gmra.mrb[152].mxu1 %v5424_v35 }
 0x29a   : > { %6205 = vmatprep.mubr.bf16.mxu1 %v5425_v5 }
 0x2a1   : > { %6206 = vmatmul.mubr.bf16.gmra.mrb[156].mxu1 %v5426_v17 }
 0x2d5   : > { %v5885_v45 = vpop.f32.mrb[80].mxu1 }
 0x2d6   : > { %v5886_v48 = vpop.f32.mrb[81].mxu1 }
 0x2d7   : > { %v5887_v55 = vadd.f32 %v5886_v48, %v5885_v45  ;;  %v5888_v24 = vpop.f32.mrb[82].mxu1  ;;  %v5949_v37 = vpop.f32.mrb[100].mxu0 }
 0x2d8   : > { %v5889_v18 = vpop.f32.mrb[83].mxu1  ;;  %v5950_v53 = vpop.f32.mrb[101].mxu0 }
 0x2d9   : > { %v4523_v59 = vadd.f32 %v5887_v55, %v7793_v4  ;;  %v5890_v25 = vadd.f32 %v5889_v18, %v5888_v24  ;;  %v5951_v26 = vadd.f32 %v5950_v53, %v5949_v37  ;;  %v5952_v12 = vpop.f32.mrb[102].mxu0 }
 0x2da   : > { %v5953_v32 = vpop.f32.mrb[103].mxu0 }
 0x2db   : > { %v4526_v54 = vadd.f32 %v5890_v25, %v7793_v4  ;;  %v7797_v49 = vadd.f32 %v5951_v26, %v4523_v59  ;;  %v5954_v50 = vadd.f32 %v5953_v32, %v5952_v12 }
 0x2dd   : > { %v7799_v51 = vadd.f32 %v5954_v50, %v4526_v54  ;;  %v5891_v31 = vpop.f32.mrb[84].mxu1 }
 0x2de   : > { %v5892_v10 = vpop.f32.mrb[85].mxu1 }
 0x2df   : > { %v5955_v11 = vpop.f32.mrb[104].mxu0  ;;  %v5893_v13 = vadd.f32 %v5892_v10, %v5891_v31  ;;  %v5894_v36 = vpop.f32.mrb[86].mxu1 }
 0x2e0   : > { %v5956_v22 = vpop.f32.mrb[105].mxu0  ;;  %v5895_v23 = vpop.f32.mrb[87].mxu1 }
 0x2e1   : > { %v5957_v8 = vadd.f32 %v5956_v22, %v5955_v11  ;;  %v5958_v20 = vpop.f32.mrb[106].mxu0  ;;  %v4531_v47 = vadd.f32 %v5893_v13, %v7793_v4  ;;  %v5896_v61 = vadd.f32 %v5895_v23, %v5894_v36 }
 0x2e2   : > { %v5959_v14 = vpop.f32.mrb[107].mxu0 }
 0x2e3   : > { %v5960_v58 = vadd.f32 %v5959_v14, %v5958_v20  ;;  %v4534_v46 = vadd.f32 %v5896_v61, %v7793_v4  ;;  %v7803_v15 = vadd.f32 %v5957_v8, %v4531_v47 }
 0x2e5   : > { %v7805_v62 = vadd.f32 %v5960_v58, %v4534_v46  ;;  %v5897_v28 = vpop.f32.mrb[88].mxu1 }
 0x2e6   : > { %v5898_v29 = vpop.f32.mrb[89].mxu1 }
 0x2e7   : > { %v5961_v40 = vpop.f32.mrb[108].mxu0  ;;  %v5899_v30 = vadd.f32 %v5898_v29, %v5897_v28  ;;  %v5900_v7 = vpop.f32.mrb[90].mxu1 }
 0x2e8   : > { %v5962_v6 = vpop.f32.mrb[109].mxu0  ;;  %v5901_v2 = vpop.f32.mrb[91].mxu1 }
 0x2e9   : > { %v5963_v27 = vadd.f32 %v5962_v6, %v5961_v40  ;;  %v5964_v33 = vpop.f32.mrb[110].mxu0  ;;  %v4539_v9 = vadd.f32 %v5899_v30, %v7793_v4  ;;  %v5902_v38 = vadd.f32 %v5901_v2, %v5900_v7 }
 0x2ea   : > { %v5965_v0 = vpop.f32.mrb[111].mxu0 }
 0x2eb   : > { %v5966_v39 = vadd.f32 %v5965_v0, %v5964_v33  ;;  %v4542_v41 = vadd.f32 %v5902_v38, %v7793_v4  ;;  %v7809_v3 = vadd.f32 %v5963_v27, %v4539_v9 }
 0x2ed   : > { %v7811_v52 = vadd.f32 %v5966_v39, %v4542_v41  ;;  %v5903_v16 = vpop.f32.mrb[92].mxu1 }
 0x2ee   : > { %v5904_v1 = vpop.f32.mrb[93].mxu1 }
 0x2ef   : > { %v5967_v34 = vpop.f32.mrb[112].mxu0  ;;  %v5905_v44 = vadd.f32 %v5904_v1, %v5903_v16  ;;  %v5906_v35 = vpop.f32.mrb[94].mxu1 }
 0x2f0   : > { %v5968_v43 = vpop.f32.mrb[113].mxu0  ;;  %v5907_v57 = vpop.f32.mrb[95].mxu1 }
 0x2f1   : > { %v5969_v42 = vadd.f32 %v5968_v43, %v5967_v34  ;;  %v5970_v56 = vpop.f32.mrb[114].mxu0  ;;  %v4547_v63 = vadd.f32 %v5905_v44, %v7793_v4  ;;  %v5908_v19 = vadd.f32 %v5907_v57, %v5906_v35 }
 0x2f2   : > { %v5971_v60 = vpop.f32.mrb[115].mxu0 }
 0x2f3   : > { %v5972_v5 = vadd.f32 %v5971_v60, %v5970_v56  ;;  %v4550_v21 = vadd.f32 %v5908_v19, %v7793_v4  ;;  %v7815_v17 = vadd.f32 %v5969_v42, %v4547_v63 }
 0x2f5   : > { %v7817_v45 = vadd.f32 %v5972_v5, %v4550_v21  ;;  %v5909_v48 = vpop.f32.mrb[96].mxu1 }
 0x2f6   : > { %v5910_v55 = vpop.f32.mrb[97].mxu1 }
 0x2f7   : > { %v5973_v24 = vpop.f32.mrb[116].mxu0  ;;  %v5911_v37 = vadd.f32 %v5910_v55, %v5909_v48  ;;  %v5912_v18 = vpop.f32.mrb[98].mxu1 }
 0x2f8   : > { %v5974_v53 = vpop.f32.mrb[117].mxu0  ;;  %v5913_v59 = vpop.f32.mrb[99].mxu1 }
 0x2f9   : > { %v5975_v25 = vadd.f32 %v5974_v53, %v5973_v24  ;;  %v5976_v26 = vpop.f32.mrb[118].mxu0  ;;  %v4555_v12 = vadd.f32 %v5911_v37, %v7793_v4  ;;  %v5914_v32 = vadd.f32 %v5913_v59, %v5912_v18 }
 0x2fa   : > { %v5977_v54 = vpop.f32.mrb[119].mxu0 }
 0x2fb   : > { %v5978_v50 = vadd.f32 %v5977_v54, %v5976_v26  ;;  %v4558_v31 = vadd.f32 %v5914_v32, %v7793_v4  ;;  %v7821_v11 = vadd.f32 %v5975_v25, %v4555_v12 }
 0x2fd   : > { %v7823_v10 = vadd.f32 %v5978_v50, %v4558_v31  ;;  %v5915_v22 = vpop.f32.mrb[100].mxu1 }
 0x2fe   : > { %v5916_v13 = vpop.f32.mrb[101].mxu1 }
 0x2ff   : > { %v5979_v36 = vpop.f32.mrb[120].mxu0  ;;  %v5917_v8 = vadd.f32 %v5916_v13, %v5915_v22  ;;  %v5918_v20 = vpop.f32.mrb[102].mxu1 }
 0x300   : > { %v5980_v23 = vpop.f32.mrb[121].mxu0  ;;  %v5919_v14 = vpop.f32.mrb[103].mxu1 }
 0x301   : > { %v5981_v47 = vadd.f32 %v5980_v23, %v5979_v36  ;;  %v5982_v61 = vpop.f32.mrb[122].mxu0  ;;  %v4563_v58 = vadd.f32 %v5917_v8, %v7793_v4  ;;  %v5920_v46 = vadd.f32 %v5919_v14, %v5918_v20 }
 0x302   : > { %v5983_v28 = vpop.f32.mrb[123].mxu0 }
 0x303   : > { %v5984_v40 = vadd.f32 %v5983_v28, %v5982_v61  ;;  %v4566_v29 = vadd.f32 %v5920_v46, %v7793_v4  ;;  %v7827_v6 = vadd.f32 %v5981_v47, %v4563_v58 }
 0x305   : > { %v7829_v30 = vadd.f32 %v5984_v40, %v4566_v29  ;;  %v5921_v7 = vpop.f32.mrb[104].mxu1 }
 0x306   : > { %v5922_v27 = vpop.f32.mrb[105].mxu1 }
 0x307   : > { %v5923_v33 = vadd.f32 %v5922_v27, %v5921_v7  ;;  %v5924_v2 = vpop.f32.mrb[106].mxu1  ;;  %v5985_v0 = vpop.f32.mrb[124].mxu0 }
 0x308   : > { %v5925_v9 = vpop.f32.mrb[107].mxu1  ;;  %v5986_v38 = vpop.f32.mrb[125].mxu0 }
 0x309   : > { %v4571_v39 = vadd.f32 %v5923_v33, %v7793_v4  ;;  %v5926_v41 = vadd.f32 %v5925_v9, %v5924_v2  ;;  %v5987_v16 = vadd.f32 %v5986_v38, %v5985_v0  ;;  %v5988_v34 = vpop.f32.mrb[126].mxu0 }
 0x30a   : > { %v5989_v1 = vpop.f32.mrb[127].mxu0 }
 0x30b   : > { %v4574_v43 = vadd.f32 %v5926_v41, %v7793_v4  ;;  %v7833_v44 = vadd.f32 %v5987_v16, %v4571_v39  ;;  %v5990_v35 = vadd.f32 %v5989_v1, %v5988_v34 }
 0x30d   : > { %v7835_v42 = vadd.f32 %v5990_v35, %v4574_v43  ;;  %v5927_v56 = vpop.f32.mrb[108].mxu1 }
 0x30e   : > { %v5928_v57 = vpop.f32.mrb[109].mxu1 }
 0x30f   : > { %v5929_v60 = vadd.f32 %v5928_v57, %v5927_v56  ;;  %v5930_v63 = vpop.f32.mrb[110].mxu1  ;;  %v5991_v19 = vpop.f32.mrb[128].mxu0 }
 0x310   : > { %v5931_v5 = vpop.f32.mrb[111].mxu1  ;;  %v5992_v21 = vpop.f32.mrb[129].mxu0 }
 0x311   : > { %v4579_v48 = vadd.f32 %v5929_v60, %v7793_v4  ;;  %v5932_v55 = vadd.f32 %v5931_v5, %v5930_v63  ;;  %v5993_v24 = vadd.f32 %v5992_v21, %v5991_v19  ;;  %v5994_v37 = vpop.f32.mrb[130].mxu0 }
 0x312   : > { %v5995_v18 = vpop.f32.mrb[131].mxu0 }
 0x313   : > { %v4582_v53 = vadd.f32 %v5932_v55, %v7793_v4  ;;  %v7839_v59 = vadd.f32 %v5993_v24, %v4579_v48  ;;  %v5996_v25 = vadd.f32 %v5995_v18, %v5994_v37 }
 0x315   : > { %v7841_v26 = vadd.f32 %v5996_v25, %v4582_v53  ;;  %v6013_v12 = vpop.f32.mrb[112].mxu1 }
 0x316   : > { %v6014_v32 = vpop.f32.mrb[113].mxu1 }
 0x317   : > { %v6015_v54 = vadd.f32 %v6014_v32, %v6013_v12  ;;  %v6016_v50 = vpop.f32.mrb[114].mxu1 }
 0x318   : > { %v6017_v31 = vpop.f32.mrb[115].mxu1  ;;  %v6077_v36 = vpop.f32.mrb[132].mxu0 }
 0x319   : > { %v4717_v22 = vadd.f32 %v6015_v54, %v7797_v49  ;;  %v6018_v13 = vadd.f32 %v6017_v31, %v6016_v50  ;;  %v6078_v20 = vpop.f32.mrb[133].mxu0 }
 0x31a   : > { %v6079_v23 = vadd.f32 %v6078_v20, %v6077_v36  ;;  %v6080_v14 = vpop.f32.mrb[134].mxu0 }
 0x31b   : > { %v4720_v8 = vadd.f32 %v6018_v13, %v7799_v51  ;;  %v6081_v4 = vpop.f32.mrb[135].mxu0 }
 0x31c   : > { %v6082_v47 = vadd.f32 %v6081_v4, %v6080_v14  ;;  %v7845_v61 = vadd.f32 %v6079_v23, %v4717_v22 }
 0x31d   : > { %v6019_v58 = vpop.f32.mrb[116].mxu1 }
 0x31e   : > { %v7847_v46 = vadd.f32 %v6082_v47, %v4720_v8  ;;  %v6020_v28 = vpop.f32.mrb[117].mxu1 }
 0x31f   : > { %v6021_v40 = vadd.f32 %v6020_v28, %v6019_v58  ;;  %v6022_v29 = vpop.f32.mrb[118].mxu1 }
 0x320   : > { %v6023_v7 = vpop.f32.mrb[119].mxu1  ;;  %v6083_v33 = vpop.f32.mrb[136].mxu0 }
 0x321   : > { %v4725_v49 = vadd.f32 %v6021_v40, %v7803_v15  ;;  %v6024_v27 = vadd.f32 %v6023_v7, %v6022_v29  ;;  %v6084_v2 = vpop.f32.mrb[137].mxu0 }
 0x322   : > { %v6085_v0 = vadd.f32 %v6084_v2, %v6083_v33  ;;  %v6086_v9 = vpop.f32.mrb[138].mxu0 }
 0x323   : > { %v4728_v51 = vadd.f32 %v6024_v27, %v7805_v62  ;;  %v6087_v38 = vpop.f32.mrb[139].mxu0 }
 0x324   : > { %v6088_v39 = vadd.f32 %v6087_v38, %v6086_v9  ;;  %v7851_v41 = vadd.f32 %v6085_v0, %v4725_v49 }
 0x326   : > { %v7853_v1 = vadd.f32 %v6088_v39, %v4728_v51 }
 0x327   : > { %v6025_v16 = vpop.f32.mrb[120].mxu1 }
 0x328   : > { %v6026_v34 = vpop.f32.mrb[121].mxu1  ;;  %v6089_v60 = vpop.f32.mrb[140].mxu0 }
 0x329   : > { %v6027_v43 = vadd.f32 %v6026_v34, %v6025_v16  ;;  %v6028_v35 = vpop.f32.mrb[122].mxu1  ;;  %v6090_v63 = vpop.f32.mrb[141].mxu0 }
 0x32a   : > { %v6029_v56 = vpop.f32.mrb[123].mxu1  ;;  %v6091_v19 = vadd.f32 %v6090_v63, %v6089_v60  ;;  %v6092_v5 = vpop.f32.mrb[142].mxu0 }
 0x32b   : > { %v4733_v15 = vadd.f32 %v6027_v43, %v7809_v3  ;;  %v6030_v57 = vadd.f32 %v6029_v56, %v6028_v35  ;;  %v6093_v21 = vpop.f32.mrb[143].mxu0 }
 0x32c   : > { %v6094_v48 = vadd.f32 %v6093_v21, %v6092_v5 }
 0x32d   : > { %v4736_v62 = vadd.f32 %v6030_v57, %v7811_v52  ;;  %v7857_v55 = vadd.f32 %v6091_v19, %v4733_v15 }
 0x32f   : > { %v6031_v24 = vpop.f32.mrb[124].mxu1  ;;  %v7859_v18 = vadd.f32 %v6094_v48, %v4736_v62 }
 0x330   : > { %v6032_v37 = vpop.f32.mrb[125].mxu1  ;;  %v6095_v54 = vpop.f32.mrb[144].mxu0 }
 0x331   : > { %v6033_v53 = vadd.f32 %v6032_v37, %v6031_v24  ;;  %v6034_v25 = vpop.f32.mrb[126].mxu1  ;;  %v6096_v50 = vpop.f32.mrb[145].mxu0 }
 0x332   : > { %v6035_v12 = vpop.f32.mrb[127].mxu1  ;;  %v6097_v31 = vadd.f32 %v6096_v50, %v6095_v54  ;;  %v6098_v22 = vpop.f32.mrb[146].mxu0 }
 0x333   : > { %v4741_v3 = vadd.f32 %v6033_v53, %v7815_v17  ;;  %v6036_v32 = vadd.f32 %v6035_v12, %v6034_v25  ;;  %v6099_v13 = vpop.f32.mrb[147].mxu0 }
 0x334   : > { %v6100_v36 = vadd.f32 %v6099_v13, %v6098_v22 }
 0x335   : > { %v4744_v52 = vadd.f32 %v6036_v32, %v7817_v45  ;;  %v7863_v8 = vadd.f32 %v6097_v31, %v4741_v3 }
 0x337   : > { %v7865_v23 = vadd.f32 %v6100_v36, %v4744_v52 }
 0x338   : > { %v6101_v28 = vpop.f32.mrb[148].mxu0 }
 0x339   : > { %v6037_v20 = vpop.f32.mrb[128].mxu1  ;;  %v6102_v29 = vpop.f32.mrb[149].mxu0 }
 0x33a   : > { %v6038_v14 = vpop.f32.mrb[129].mxu1  ;;  %v6103_v7 = vadd.f32 %v6102_v29, %v6101_v28  ;;  %v6104_v49 = vpop.f32.mrb[150].mxu0 }
 0x33b   : > { %v6039_v4 = vadd.f32 %v6038_v14, %v6037_v20  ;;  %v6040_v47 = vpop.f32.mrb[130].mxu1  ;;  %v6105_v27 = vpop.f32.mrb[151].mxu0 }
 0x33c   : > { %v6041_v58 = vpop.f32.mrb[131].mxu1  ;;  %v6106_v33 = vadd.f32 %v6105_v27, %v6104_v49 }
 0x33d   : > { %v4749_v17 = vadd.f32 %v6039_v4, %v7821_v11  ;;  %v6042_v40 = vadd.f32 %v6041_v58, %v6040_v47 }
 0x33f   : > { %v4752_v45 = vadd.f32 %v6042_v40, %v7823_v10  ;;  %v7869_v51 = vadd.f32 %v6103_v7, %v4749_v17  ;;  %v5502_v7 = vld [vmem:[%s6645_s20 + $0x49] sm:$0xff] }
 0x341   : > { %v6043_v2 = vpop.f32.mrb[132].mxu1  ;;  %v7871_v0 = vadd.f32 %v6106_v33, %v4752_v45 }
 0x342   : > { %v6044_v9 = vpop.f32.mrb[133].mxu1 }
 0x343   : > { %v6045_v38 = vadd.f32 %v6044_v9, %v6043_v2  ;;  %v6046_v39 = vpop.f32.mrb[134].mxu1  ;;  %v6107_v43 = vpop.f32.mrb[152].mxu0  ;;  %v5503_v9 = vld [vmem:[%s6645_s20 + $0x51] sm:$0xff] }
 0x344   : > { %v6047_v16 = vpop.f32.mrb[135].mxu1  ;;  %v6108_v10 = vpop.f32.mrb[153].mxu0 }
 0x345   : > { %v4757_v11 = vadd.f32 %v6045_v38, %v7827_v6  ;;  %v6048_v34 = vadd.f32 %v6047_v16, %v6046_v39  ;;  %v6109_v56 = vadd.f32 %v6108_v10, %v6107_v43  ;;  %v6110_v15 = vpop.f32.mrb[154].mxu0  ;;  %v5506_v10 = vld [vmem:[%s6645_s20 + $0x79] sm:$0xff] }
 0x346   : > { %v6111_v57 = vpop.f32.mrb[155].mxu0 }
 0x347   : > { %v4760_v35 = vadd.f32 %v6048_v34, %v7829_v30  ;;  %v6112_v60 = vadd.f32 %v6111_v57, %v6110_v15  ;;  %v7875_v62 = vadd.f32 %v6109_v56, %v4757_v11  ;;  %v5501_v11 = vld [vmem:[%s6645_s20 + $0x39] sm:$0xff]  ;;  %v5504_v15 = vld [vmem:[%s6645_s20 + $0x61] sm:$0xff] }
 0x349   : > { %v6049_v63 = vpop.f32.mrb[136].mxu1  ;;  %v7877_v19 = vadd.f32 %v6112_v60, %v4760_v35  ;;  %v5507_v60 = vld [vmem:[%s6645_s20 + $0x81] sm:$0xff] }
 0x34a   : > { %v6050_v5 = vpop.f32.mrb[137].mxu1 }
 0x34b   : > { %v6051_v21 = vadd.f32 %v6050_v5, %v6049_v63  ;;  %v6052_v48 = vpop.f32.mrb[138].mxu1 }
 0x34c   : > { %v6053_v24 = vpop.f32.mrb[139].mxu1 }
 0x34d   : > { %v4765_v6 = vadd.f32 %v6051_v21, %v7833_v44  ;;  %v6113_v37 = vpop.f32.mrb[156].mxu0  ;;  %v6054_v53 = vadd.f32 %v6053_v24, %v6052_v48  ;;  %v5505_v48 = vld [vmem:[%s6645_s20 + $0x69] sm:$0xff] }
 0x34e   : > { %v6114_v25 = vpop.f32.mrb[157].mxu0 }
 0x34f   : > { %v4768_v30 = vadd.f32 %v6054_v53, %v7835_v42  ;;  %v6115_v12 = vadd.f32 %v6114_v25, %v6113_v37  ;;  %v6116_v3 = vpop.f32.mrb[158].mxu0  ;;  %v5510_v53 = vld [vmem:[%s6645_s20 + $0xa9] sm:$0xff] }
 0x350   : > { %v6117_v32 = vpop.f32.mrb[159].mxu0 }
 0x351   : > { %v6118_v54 = vadd.f32 %v6117_v32, %v6116_v3  ;;  %v7881_v52 = vadd.f32 %v6115_v12, %v4765_v6  ;;  %v5511_v3 = vld [vmem:[%s6645_s20 + $0xb1] sm:$0xff] }
 0x353   : > { %v7883_v50 = vadd.f32 %v6118_v54, %v4768_v30  ;;  %v5508_v30 = vld [vmem:[%s6645_s20 + $0x91] sm:$0xff] }
 0x354   : > { %v6055_v31 = vpop.f32.mrb[140].mxu1 }
 0x355   : > { %v6056_v22 = vpop.f32.mrb[141].mxu1 }
 0x356   : > { %v6057_v13 = vadd.f32 %v6056_v22, %v6055_v31  ;;  %v6058_v36 = vpop.f32.mrb[142].mxu1  ;;  %v5509_v22 = vld [vmem:[%s6645_s20 + $0x99] sm:$0xff] }
 0x357   : > { %v6119_v44 = vpop.f32.mrb[160].mxu0  ;;  %v6059_v20 = vpop.f32.mrb[143].mxu1 }
 0x358   : > { %v4773_v14 = vadd.f32 %v6057_v13, %v7839_v59  ;;  %v6060_v4 = vadd.f32 %v6059_v20, %v6058_v36  ;;  %v6120_v42 = vpop.f32.mrb[161].mxu0  ;;  %v5500_v59 = vld [vmem:[%s6645_s20 + $0x31] sm:$0xff]  ;;  %v5011_v20 = vld [vmem:[%s6811_s17 + $0x19] sm:$0xff] }
 0x359   : > { %v6121_v47 = vadd.f32 %v6120_v42, %v6119_v44  ;;  %v6122_v58 = vpop.f32.mrb[162].mxu0 }
 0x35a   : > { %v4776_v17 = vadd.f32 %v6060_v4, %v7841_v26  ;;  %v6123_v28 = vpop.f32.mrb[163].mxu0  ;;  %v5009_v4 = vld [vmem:[%s6811_s17 + $0x1] sm:$0xff] }
 0x35b   : > { %v6124_v40 = vadd.f32 %v6123_v28, %v6122_v58  ;;  %v7887_v29 = vadd.f32 %v6121_v47, %v4773_v14  ;;  %v5012_v47 = vld [vmem:[%s6811_s17 + $0x21] sm:$0xff] }
 0x35c   : > { %v6195_v45 = vpop.f32.mrb[144].mxu1 }
 0x35d   : > { %v4919_v49 = vadd.f32 %v6195_v45, %v7851_v41  ;;  %v4910_v27 = vpop.f32.mrb[145].mxu1  ;;  %v7892_v33 = vadd.f32 %v6124_v40, %v4776_v17  ;;  %v5010_v40 = vld [vmem:[%s6811_s17 + $0x9] sm:$0xff] }
 0x35e   : > { %v4911_v2 = vadd.f32 %v4910_v27, %v7845_v61  ;;  %v6196_v26 = vpop.f32.mrb[146].mxu1 }
 0x35f   : > { %v4987_v38 = vadd.f32 %v5502_v7, %v4919_v49  ;;  %v4922_v39 = vadd.f32 %v6196_v26, %v7853_v1  ;;  %v4913_v16 = vpop.f32.mrb[147].mxu1 }
 0x360   : > { %v4985_v34 = vadd.f32 %v5500_v59, %v4911_v2  ;;  %v4914_v41 = vadd.f32 %v4913_v16, %v7847_v46 }
 0x361   : > { %4999 = vst [vmem:[%s6601_s14 + $0x10] sm:$0xff] %v4987_v38  ;;  %v4988_v43 = vadd.f32 %v5503_v9, %v4922_v39 }
 0x362   : > { %4997 = vst [vmem:[%s6601_s14] sm:$0xff] %v4985_v34  ;;  %v4986_v35 = vadd.f32 %v5501_v11, %v4914_v41 }
 0x363   : > { %5000 = vst [vmem:[%s6601_s14 + $0x18] sm:$0xff] %v4988_v43 }
 0x364   : > { %4998 = vst [vmem:[%s6601_s14 + $0x8] sm:$0xff] %v4986_v35  ;;  %v6199_v61 = vpop.f32.mrb[148].mxu1 }
 0x365   : > { %v4935_v56 = vadd.f32 %v6199_v61, %v7863_v8  ;;  %v4926_v1 = vpop.f32.mrb[149].mxu1 }
 0x366   : > { %v4927_v57 = vadd.f32 %v4926_v1, %v7857_v55  ;;  %v6200_v46 = vpop.f32.mrb[150].mxu1 }
 0x367   : > { %v4991_v63 = vadd.f32 %v5506_v10, %v4935_v56  ;;  %v4938_v5 = vadd.f32 %v6200_v46, %v7865_v23  ;;  %v4929_v21 = vpop.f32.mrb[151].mxu1 }
 0x368   : > { %v4989_v24 = vadd.f32 %v5504_v15, %v4927_v57  ;;  %v4930_v6 = vadd.f32 %v4929_v21, %v7859_v18 }
 0x369   : > { %5003 = vst [vmem:[%s6601_s14 + $0x30] sm:$0xff] %v4991_v63  ;;  %v4992_v8 = vadd.f32 %v5507_v60, %v4938_v5 }
 0x36a   : > { %5001 = vst [vmem:[%s6601_s14 + $0x20] sm:$0xff] %v4989_v24  ;;  %v4990_v37 = vadd.f32 %v5505_v48, %v4930_v6 }
 0x36b   : > { %5004 = vst [vmem:[%s6601_s14 + $0x38] sm:$0xff] %v4992_v8 }
 0x36c   : > { %5002 = vst [vmem:[%s6601_s14 + $0x28] sm:$0xff] %v4990_v37  ;;  %v6203_v55 = vpop.f32.mrb[152].mxu1 }
 0x36d   : > { %v4951_v25 = vadd.f32 %v6203_v55, %v7875_v62  ;;  %v4942_v23 = vpop.f32.mrb[153].mxu1 }
 0x36e   : > { %v4943_v12 = vadd.f32 %v4942_v23, %v7869_v51  ;;  %v6204_v18 = vpop.f32.mrb[154].mxu1 }
 0x36f   : > { %v4995_v32 = vadd.f32 %v5510_v53, %v4951_v25  ;;  %v4954_v54 = vadd.f32 %v6204_v18, %v7877_v19  ;;  %v4945_v31 = vpop.f32.mrb[155].mxu1 }
 0x370   : > { %v4993_v13 = vadd.f32 %v5508_v30, %v4943_v12  ;;  %v4946_v36 = vadd.f32 %v4945_v31, %v7871_v0 }
 0x371   : > { %5007 = vst [vmem:[%s6601_s14 + $0x50] sm:$0xff] %v4995_v32  ;;  %v4996_v62 = vadd.f32 %v5511_v3, %v4954_v54 }
 0x372   : > { %5005 = vst [vmem:[%s6601_s14 + $0x40] sm:$0xff] %v4993_v13  ;;  %v4994_v44 = vadd.f32 %v5509_v22, %v4946_v36 }
 0x373   : > { %5008 = vst [vmem:[%s6601_s14 + $0x58] sm:$0xff] %v4996_v62 }
 0x374   : > { %5006 = vst [vmem:[%s6601_s14 + $0x48] sm:$0xff] %v4994_v44  ;;  %v6207_v51 = vpop.f32.mrb[156].mxu1 }
 0x375   : > { %v4967_v14 = vadd.f32 %v6207_v51, %v7887_v29  ;;  %v4958_v19 = vpop.f32.mrb[157].mxu1 }
 0x376   : > { %v4959_v42 = vadd.f32 %v4958_v19, %v7881_v52  ;;  %v6208_v0 = vpop.f32.mrb[158].mxu1 }
 0x377   : > { %v5015_v58 = vadd.f32 %v5011_v20, %v4967_v14  ;;  %v4970_v17 = vadd.f32 %v6208_v0, %v7892_v33  ;;  %v4961_v28 = vpop.f32.mrb[159].mxu1 }
 0x378   : > { %v5013_v45 = vadd.f32 %v5009_v4, %v4959_v42  ;;  %v4962_v7 = vadd.f32 %v4961_v28, %v7883_v50 }
 0x379   : > { %5514 = vst [vmem:[%s6601_s14 + $0x70] sm:$0xff] %v5015_v58  ;;  %v5016_v49 = vadd.f32 %v5012_v47, %v4970_v17 }
 0x37a   : > { %5512 = vst [vmem:[%s6601_s14 + $0x60] sm:$0xff] %v5013_v45  ;;  %v5014_v29 = vadd.f32 %v5010_v40, %v4962_v7 }
 0x37b   : > { %5515 = vst [vmem:[%s6601_s14 + $0x78] sm:$0xff] %v5016_v49 }
 0x37c   : > { %5513 = vst [vmem:[%s6601_s14 + $0x68] sm:$0xff] %v5014_v29 }
 0x37d PF: > { %s16_s25 = sadd.s32 1, %s6460_s25   ;;  %s7974_s21 = smov %s6452_s23 }
 0x37e   : > { %p13_p11 = scmp.ge.s32.totalorder %s16_s25, 6   ;;  %s7975_s22 = smov %s6456_s24 }
 0x37f   : > { %s7976_s23 = smov %s7979_s26  ;;  %s7977_s24 = smov %s7983_s27 }
 0x380   :  { %15 = sbr.rel (!%p13_p11) target bundleno = 3 (0x3), region = 91 }

</bundles_post_ra>
